<compile_context>
chip_gen: v7x
topology: tpu7x:2x2x1
jax: 0.10.0
libtpu: 0.0.40
codegen_flags: <defaults>
</compile_context>

<pallas_src>
import jax
import jax.numpy as jnp
from jax.experimental import pallas as pl
from jax.experimental.pallas import tpu as pltpu


# --------------------------------------------------------------------------- #
# In-kernel building blocks (operate on loaded VMEM arrays)
# --------------------------------------------------------------------------- #
def _temporal_conv(x, w, b, relu=True):
    """Temporal conv along the leading (time) axis.

    x: (T_in, N, C_in)   w: (Kt, C_in, C_out)   b: (1, C_out)
    returns (T_out, N, C_out), T_out = T_in - Kt + 1.
    Every matmul covers all T_out*N rows at once (MXU M dim filled).
    """
    Kt, C_in, C_out = w.shape
    T_in, N = x.shape[0], x.shape[1]
    T_out = T_in - Kt + 1
    acc = jnp.zeros((T_out * N, C_out), jnp.float32)
    for tau in range(Kt):                                   # Kt static & small
        xt = x[tau:tau + T_out].reshape(T_out * N, C_in)    # leading-dim merge
        acc = acc + jnp.dot(xt, w[tau], preferred_element_type=jnp.float32)
    acc = acc + b
    if relu:
        acc = jnp.maximum(acc, 0.0)
    return acc.reshape(T_out, N, C_out)


def _layer_norm_joint(x, gamma, beta, eps=1e-5):
    """torch nn.LayerNorm([N, C]): normalize jointly over the last two dims."""
    if x.ndim == 3:
        cnt = float(x.shape[1] * x.shape[2])
        mean = jnp.sum(jnp.sum(x, axis=2, keepdims=True), axis=1,
                       keepdims=True) / cnt                 # (T, 1, 1)
        d = x - mean
        var = jnp.sum(jnp.sum(d * d, axis=2, keepdims=True), axis=1,
                      keepdims=True) / cnt
    else:
        cnt = float(x.shape[0] * x.shape[1])
        mean = jnp.sum(x) / cnt
        d = x - mean
        var = jnp.sum(d * d) / cnt
    return d * jax.lax.rsqrt(var + eps) * gamma + beta


# --------------------------------------------------------------------------- #
# Fully-fused STGCN kernel: all STConvBlocks + tail in one body, grid=(B,)
# --------------------------------------------------------------------------- #
def _make_fused_kernel(n_blocks, cheb_k):
    n_in = 2 + 8 * n_blocks + 8   # x, A, 8 tensors per block, 8 head tensors

    def kernel(*args):
        in_refs = args[:n_in]
        o_ref = args[n_in]
        g_scr = args[n_in + 1:]                 # one VMEM scratch per block

        x_ref, a_ref = in_refs[0], in_refs[1]
        a = a_ref[...]                          # (K, N, N) Chebyshev supports
        h = x_ref[0]                            # (T0, N, C0) this batch element

        # ----------------------- STConvBlocks -------------------------------
        for l in range(n_blocks):
            w1, b1, wg, bg, w2, b2, ln_g, ln_b = (
                r[...] for r in in_refs[2 + 8 * l: 2 + 8 * (l + 1)])

            # temporal conv 1 (+ReLU)
            h1 = _temporal_conv(h, w1, b1)                      # (T1, N, C1)
            T1, N, C1 = h1.shape
            C2 = wg.shape[2]

            # Chebyshev graph conv (+ReLU):
            # P_k = H1 @ W_k as one big (T1*N, C1)x(C1, C2) matmul per order,
            # then A_k applied per time step (N is tiny); staged in VMEM.
            h1f = h1.reshape(T1 * N, C1)
            p = [jnp.dot(h1f, wg[k], preferred_element_type=jnp.float32)
                 .reshape(T1, N, C2) for k in range(cheb_k)]
            g_ref = g_scr[l]
            for t in range(T1):
                acc_g = jnp.zeros((N, C2), jnp.float32)
                for k in range(cheb_k):
                    acc_g = acc_g + jnp.dot(a[k], p[k][t],
                                            preferred_element_type=jnp.float32)
                g_ref[t] = jnp.maximum(acc_g + bg, 0.0)
            g = g_ref[...]                                      # (T1, N, C2)

            # temporal conv 2 (+ReLU)
            h2 = _temporal_conv(g, w2, b2)                      # (T2, N, C3)

            # LayerNorm([N, C3]); dropout is identity at inference.
            # TODO(synk): dropout omitted (eval mode); act assumed ReLU (GLU
            # variants of TemporalConvLayer not implemented).
            h = _layer_norm_joint(h2, ln_g, ln_b)

        # --------------------------- tail ------------------------------------
        wt, bt, lng, lnb, wo1, bo1, wo2, bo2 = (
            r[...] for r in in_refs[2 + 8 * n_blocks:])
        Tr, N = h.shape[0], h.shape[1]
        D = wt.shape[2]

        # Final temporal conv spans all remaining time: T_out = 1.
        acc = jnp.zeros((N, D), jnp.float32)
        for tau in range(Tr):
            acc = acc + jnp.dot(h[tau], wt[tau],
                                preferred_element_type=jnp.float32)
        hh = jnp.maximum(acc + bt, 0.0)                         # (N, D)

        # LayerNorm over the whole (N, D) slab, then Linear->ReLU->Linear.
        hh = _layer_norm_joint(hh, lng, lnb)
        z = jnp.dot(hh, wo1, preferred_element_type=jnp.float32) + bo1
        z = jnp.maximum(z, 0.0)
        z = jnp.dot(z, wo2, preferred_element_type=jnp.float32) + bo2  # (N, Q)
        o_ref[0] = z

    return kernel


# --------------------------------------------------------------------------- #
# Wrapper: builds specs / scratch and invokes the single pallas_call
# --------------------------------------------------------------------------- #
def stgcn_forward(x, a_stack, params):
    """x: (B, P, N, C), a_stack: (K, N, N) -> (B, out_len, N)."""
    B, T0, N, C0 = x.shape
    blocks = params["blocks"]
    n_blocks = len(blocks)
    Kt = blocks[0]["w_t1"].shape[0]
    K = a_stack.shape[0]
    D = params["w_tcn"].shape[2]
    Q = params["w2"].shape[1]

    def full_spec(arr):
        nd = arr.ndim
        return pl.BlockSpec(arr.shape, lambda b, _nd=nd: (0,) * _nd)

    inputs = [x, a_stack]
    in_specs = [pl.BlockSpec((1, T0, N, C0), lambda b: (b, 0, 0, 0)),
                full_spec(a_stack)]
    scratch_shapes = []

    T = T0
    for bp in blocks:
        c1 = bp["w_t1"].shape[2]
        c2 = bp["w_g"].shape[2]
        c3 = bp["w_t2"].shape[2]
        blk_in = [bp["w_t1"], bp["b_t1"].reshape(1, c1),
                  bp["w_g"], bp["b_g"].reshape(1, c2),
                  bp["w_t2"], bp["b_t2"].reshape(1, c3),
                  bp["ln_g"], bp["ln_b"]]
        inputs += blk_in
        in_specs += [full_spec(a) for a in blk_in]
        T1 = T - Kt + 1
        scratch_shapes.append(pltpu.VMEM((T1, N, c2), jnp.float32))
        T = T1 - Kt + 1
    # remaining time must equal the tail conv kernel (in_len > receptive_field)
    assert params["w_tcn"].shape[0] == T, (params["w_tcn"].shape, T)
    # TODO(synk): in_len == receptive_field branch of the module not implemented.

    head_in = [params["w_tcn"], params["b_tcn"].reshape(1, D),
               params["ln_g"], params["ln_b"],
               params["w1"], params["b1"].reshape(1, D),
               params["w2"], params["b2"].reshape(1, Q)]
    inputs += head_in
    in_specs += [full_spec(a) for a in head_in]

    out = pl.pallas_call(
        _make_fused_kernel(n_blocks, K),
        out_shape=jax.ShapeDtypeStruct((B, N, Q), jnp.float32),
        grid=(B,),
        in_specs=in_specs,
        out_specs=pl.BlockSpec((1, N, Q), lambda b: (b, 0, 0)),
        scratch_shapes=scratch_shapes,
        compiler_params=pltpu.CompilerParams(dimension_semantics=("parallel",)),
    )(*inputs)
    # torch tail: permute(0,3,2,1).squeeze(-1) => (B, out_len, N).
    # Tiny (B, N, Q) tensor; the final transpose is left to XLA.
    return jnp.transpose(out, (0, 2, 1))


def _init(key, shape, scale=0.1):
    return (scale * jax.random.normal(key, shape)).astype(jnp.float32)


if __name__ == "__main__":
    # Small, consistent shapes (N multiple of 8 keeps in-kernel reshapes clean).
    B, P, N, C = 2, 12, 8, 2            # batch, in_len, n_series, in_dim
    out_len, end_dim = 4, 32
    st_h_dims = [[16, 8, 16], [16, 8, 16]]
    Kt, cheb_k = 3, 2
    receptive_field = len(st_h_dims) * 2 * (Kt - 1)          # = 8 < P
    tcn_k = P - receptive_field                              # = 4

    root = jax.random.PRNGKey(0)

    # input + adjacency supports (cheb_k matrices, stacked)
    kx, ka = jax.random.split(jax.random.fold_in(root, 1000))
    x = jax.random.normal(kx, (B, P, N, C), jnp.float32)
    adj = jax.random.uniform(ka, (N, N), jnp.float32)
    adj = (adj + adj.T) * 0.5 + jnp.eye(N, dtype=jnp.float32)
    adj = adj / jnp.sum(adj, axis=1, keepdims=True)
    a_stack = jnp.stack([jnp.eye(N, dtype=jnp.float32), adj], axis=0)  # (K,N,N)

    # deterministic parameter init
    counter = iter(range(1, 10000))
    def nk():
        return jax.random.fold_in(root, next(counter))

    params = {"blocks": []}
    for l, (c1, c2, c3) in enumerate(st_h_dims):
        cin = C if l == 0 else st_h_dims[l - 1][-1]
        params["blocks"].append({
            "w_t1": _init(nk(), (Kt, cin, c1)), "b_t1": _init(nk(), (c1,)),
            "w_g": _init(nk(), (cheb_k, c1, c2)), "b_g": _init(nk(), (c2,)),
            "w_t2": _init(nk(), (Kt, c2, c3)), "b_t2": _init(nk(), (c3,)),
            "ln_g": jnp.ones((N, c3), jnp.float32),
            "ln_b": jnp.zeros((N, c3), jnp.float32),
        })
    c_last = st_h_dims[-1][-1]
    params["w_tcn"] = _init(nk(), (tcn_k, c_last, end_dim))
    params["b_tcn"] = _init(nk(), (end_dim,))
    params["ln_g"] = jnp.ones((N, end_dim), jnp.float32)
    params["ln_b"] = jnp.zeros((N, end_dim), jnp.float32)
    params["w1"] = _init(nk(), (end_dim, end_dim))
    params["b1"] = _init(nk(), (end_dim,))
    params["w2"] = _init(nk(), (end_dim, out_len))
    params["b2"] = _init(nk(), (out_len,))

    fwd = jax.jit(stgcn_forward)
    out = jax.block_until_ready(fwd(x, a_stack, params))
    assert out.shape == (B, out_len, N), out.shape
    assert bool(jnp.all(jnp.isfinite(out)))
    print("KERNEL_OK")
</pallas_src>

<mosaic_0001>
module attributes {stable_mosaic.version = 11 : i64} {
  func.func @kernel(%arg0: i32, %arg1: memref<1x12x8x2xf32, #tpu.memory_space<vmem>>, %arg2: memref<2x8x8xf32, #tpu.memory_space<vmem>>, %arg3: memref<3x2x16xf32, #tpu.memory_space<vmem>>, %arg4: memref<1x16xf32, #tpu.memory_space<vmem>>, %arg5: memref<2x16x8xf32, #tpu.memory_space<vmem>>, %arg6: memref<1x8xf32, #tpu.memory_space<vmem>>, %arg7: memref<3x8x16xf32, #tpu.memory_space<vmem>>, %arg8: memref<1x16xf32, #tpu.memory_space<vmem>>, %arg9: memref<8x16xf32, #tpu.memory_space<vmem>>, %arg10: memref<8x16xf32, #tpu.memory_space<vmem>>, %arg11: memref<3x16x16xf32, #tpu.memory_space<vmem>>, %arg12: memref<1x16xf32, #tpu.memory_space<vmem>>, %arg13: memref<2x16x8xf32, #tpu.memory_space<vmem>>, %arg14: memref<1x8xf32, #tpu.memory_space<vmem>>, %arg15: memref<3x8x16xf32, #tpu.memory_space<vmem>>, %arg16: memref<1x16xf32, #tpu.memory_space<vmem>>, %arg17: memref<8x16xf32, #tpu.memory_space<vmem>>, %arg18: memref<8x16xf32, #tpu.memory_space<vmem>>, %arg19: memref<4x16x32xf32, #tpu.memory_space<vmem>>, %arg20: memref<1x32xf32, #tpu.memory_space<vmem>>, %arg21: memref<8x32xf32, #tpu.memory_space<vmem>>, %arg22: memref<8x32xf32, #tpu.memory_space<vmem>>, %arg23: memref<32x32xf32, #tpu.memory_space<vmem>>, %arg24: memref<1x32xf32, #tpu.memory_space<vmem>>, %arg25: memref<32x4xf32, #tpu.memory_space<vmem>>, %arg26: memref<1x4xf32, #tpu.memory_space<vmem>>, %arg27: memref<1x8x4xf32, #tpu.memory_space<vmem>>, %arg28: memref<10x8x8xf32, #tpu.memory_space<vmem>>, %arg29: memref<6x8x8xf32, #tpu.memory_space<vmem>>) attributes {dimension_semantics = [#tpu.dimension_semantics<parallel>], iteration_bounds = array<i64: 2>, scalar_prefetch = 0 : i64, scratch_operands = 2 : i64, tpu.core_type = #tpu.core_type<tc>, window_params = [{transform_indices = @transform_0, window_bounds = array<i64: 1, 12, 8, 2>}, {pipeline_mode = #tpu.pipeline_mode<synchronous>, transform_indices = @transform_1, window_bounds = array<i64: 2, 8, 8>}, {pipeline_mode = #tpu.pipeline_mode<synchronous>, transform_indices = @transform_2, window_bounds = array<i64: 3, 2, 16>}, {pipeline_mode = #tpu.pipeline_mode<synchronous>, transform_indices = @transform_3, window_bounds = array<i64: 1, 16>}, {pipeline_mode = #tpu.pipeline_mode<synchronous>, transform_indices = @transform_4, window_bounds = array<i64: 2, 16, 8>}, {pipeline_mode = #tpu.pipeline_mode<synchronous>, transform_indices = @transform_5, window_bounds = array<i64: 1, 8>}, {pipeline_mode = #tpu.pipeline_mode<synchronous>, transform_indices = @transform_6, window_bounds = array<i64: 3, 8, 16>}, {pipeline_mode = #tpu.pipeline_mode<synchronous>, transform_indices = @transform_7, window_bounds = array<i64: 1, 16>}, {pipeline_mode = #tpu.pipeline_mode<synchronous>, transform_indices = @transform_8, window_bounds = array<i64: 8, 16>}, {pipeline_mode = #tpu.pipeline_mode<synchronous>, transform_indices = @transform_9, window_bounds = array<i64: 8, 16>}, {pipeline_mode = #tpu.pipeline_mode<synchronous>, transform_indices = @transform_10, window_bounds = array<i64: 3, 16, 16>}, {pipeline_mode = #tpu.pipeline_mode<synchronous>, transform_indices = @transform_11, window_bounds = array<i64: 1, 16>}, {pipeline_mode = #tpu.pipeline_mode<synchronous>, transform_indices = @transform_12, window_bounds = array<i64: 2, 16, 8>}, {pipeline_mode = #tpu.pipeline_mode<synchronous>, transform_indices = @transform_13, window_bounds = array<i64: 1, 8>}, {pipeline_mode = #tpu.pipeline_mode<synchronous>, transform_indices = @transform_14, window_bounds = array<i64: 3, 8, 16>}, {pipeline_mode = #tpu.pipeline_mode<synchronous>, transform_indices = @transform_15, window_bounds = array<i64: 1, 16>}, {pipeline_mode = #tpu.pipeline_mode<synchronous>, transform_indices = @transform_16, window_bounds = array<i64: 8, 16>}, {pipeline_mode = #tpu.pipeline_mode<synchronous>, transform_indices = @transform_17, window_bounds = array<i64: 8, 16>}, {pipeline_mode = #tpu.pipeline_mode<synchronous>, transform_indices = @transform_18, window_bounds = array<i64: 4, 16, 32>}, {pipeline_mode = #tpu.pipeline_mode<synchronous>, transform_indices = @transform_19, window_bounds = array<i64: 1, 32>}, {pipeline_mode = #tpu.pipeline_mode<synchronous>, transform_indices = @transform_20, window_bounds = array<i64: 8, 32>}, {pipeline_mode = #tpu.pipeline_mode<synchronous>, transform_indices = @transform_21, window_bounds = array<i64: 8, 32>}, {pipeline_mode = #tpu.pipeline_mode<synchronous>, transform_indices = @transform_22, window_bounds = array<i64: 32, 32>}, {pipeline_mode = #tpu.pipeline_mode<synchronous>, transform_indices = @transform_23, window_bounds = array<i64: 1, 32>}, {pipeline_mode = #tpu.pipeline_mode<synchronous>, transform_indices = @transform_24, window_bounds = array<i64: 32, 4>}, {pipeline_mode = #tpu.pipeline_mode<synchronous>, transform_indices = @transform_25, window_bounds = array<i64: 1, 4>}, {transform_indices = @transform_26, window_bounds = array<i64: 1, 8, 4>}]} {
    %c0 = arith.constant 0 : index
    %c0_0 = arith.constant 0 : index
    %c0_1 = arith.constant 0 : index
    %0 = vector.load %arg2[%c0, %c0_0, %c0_1] : memref<2x8x8xf32, #tpu.memory_space<vmem>>, vector<2x8x8xf32>
    %c0_2 = arith.constant 0 : index
    %c0_3 = arith.constant 0 : index
    %c0_4 = arith.constant 0 : index
    %c0_5 = arith.constant 0 : index
    %1 = vector.load %arg1[%c0_2, %c0_3, %c0_4, %c0_5] : memref<1x12x8x2xf32, #tpu.memory_space<vmem>>, vector<1x12x8x2xf32>
    %2 = vector.shape_cast %1 : vector<1x12x8x2xf32> to vector<12x8x2xf32>
    %c0_6 = arith.constant 0 : index
    %c0_7 = arith.constant 0 : index
    %c0_8 = arith.constant 0 : index
    %3 = vector.load %arg3[%c0_6, %c0_7, %c0_8] : memref<3x2x16xf32, #tpu.memory_space<vmem>>, vector<3x2x16xf32>
    %c0_9 = arith.constant 0 : index
    %c0_10 = arith.constant 0 : index
    %4 = vector.load %arg4[%c0_9, %c0_10] : memref<1x16xf32, #tpu.memory_space<vmem>>, vector<1x16xf32>
    %c0_11 = arith.constant 0 : index
    %c0_12 = arith.constant 0 : index
    %c0_13 = arith.constant 0 : index
    %5 = vector.load %arg5[%c0_11, %c0_12, %c0_13] : memref<2x16x8xf32, #tpu.memory_space<vmem>>, vector<2x16x8xf32>
    %c0_14 = arith.constant 0 : index
    %c0_15 = arith.constant 0 : index
    %6 = vector.load %arg6[%c0_14, %c0_15] : memref<1x8xf32, #tpu.memory_space<vmem>>, vector<1x8xf32>
    %c0_16 = arith.constant 0 : index
    %c0_17 = arith.constant 0 : index
    %c0_18 = arith.constant 0 : index
    %7 = vector.load %arg7[%c0_16, %c0_17, %c0_18] : memref<3x8x16xf32, #tpu.memory_space<vmem>>, vector<3x8x16xf32>
    %c0_19 = arith.constant 0 : index
    %c0_20 = arith.constant 0 : index
    %8 = vector.load %arg8[%c0_19, %c0_20] : memref<1x16xf32, #tpu.memory_space<vmem>>, vector<1x16xf32>
    %c0_21 = arith.constant 0 : index
    %c0_22 = arith.constant 0 : index
    %9 = vector.load %arg9[%c0_21, %c0_22] : memref<8x16xf32, #tpu.memory_space<vmem>>, vector<8x16xf32>
    %c0_23 = arith.constant 0 : index
    %c0_24 = arith.constant 0 : index
    %10 = vector.load %arg10[%c0_23, %c0_24] : memref<8x16xf32, #tpu.memory_space<vmem>>, vector<8x16xf32>
    %cst = arith.constant 0.000000e+00 : f32
    %11 = vector.broadcast %cst : f32 to vector<80x16xf32>
    %12 = vector.extract_strided_slice %2 {offsets = [0, 0, 0], sizes = [10, 8, 2], strides = [1, 1, 1]} : vector<12x8x2xf32> to vector<10x8x2xf32>
    %13 = vector.shape_cast %12 : vector<10x8x2xf32> to vector<80x2xf32>
    %14 = vector.extract_strided_slice %3 {offsets = [0, 0, 0], sizes = [1, 2, 16], strides = [1, 1, 1]} : vector<3x2x16xf32> to vector<1x2x16xf32>
    %15 = vector.shape_cast %14 : vector<1x2x16xf32> to vector<2x16xf32>
    %cst_25 = arith.constant dense<0.000000e+00> : vector<80x16xf32>
    %16 = tpu.matmul %13, %15, %cst_25 {dimension_numbers = #tpu.dot_dimension_numbers<[1], [0], [0], [1], [0, 0, 1, 1], [], []>} : vector<80x2xf32>, vector<2x16xf32>, vector<80x16xf32> -> vector<80x16xf32>
    %17 = arith.addf %11, %16 : vector<80x16xf32>
    %18 = vector.extract_strided_slice %2 {offsets = [1, 0, 0], sizes = [10, 8, 2], strides = [1, 1, 1]} : vector<12x8x2xf32> to vector<10x8x2xf32>
    %19 = vector.shape_cast %18 : vector<10x8x2xf32> to vector<80x2xf32>
    %20 = vector.extract_strided_slice %3 {offsets = [1, 0, 0], sizes = [1, 2, 16], strides = [1, 1, 1]} : vector<3x2x16xf32> to vector<1x2x16xf32>
    %21 = vector.shape_cast %20 : vector<1x2x16xf32> to vector<2x16xf32>
    %cst_26 = arith.constant dense<0.000000e+00> : vector<80x16xf32>
    %22 = tpu.matmul %19, %21, %cst_26 {dimension_numbers = #tpu.dot_dimension_numbers<[1], [0], [0], [1], [0, 0, 1, 1], [], []>} : vector<80x2xf32>, vector<2x16xf32>, vector<80x16xf32> -> vector<80x16xf32>
    %23 = arith.addf %17, %22 : vector<80x16xf32>
    %24 = vector.extract_strided_slice %2 {offsets = [2, 0, 0], sizes = [10, 8, 2], strides = [1, 1, 1]} : vector<12x8x2xf32> to vector<10x8x2xf32>
    %25 = vector.shape_cast %24 : vector<10x8x2xf32> to vector<80x2xf32>
    %26 = vector.extract_strided_slice %3 {offsets = [2, 0, 0], sizes = [1, 2, 16], strides = [1, 1, 1]} : vector<3x2x16xf32> to vector<1x2x16xf32>
    %27 = vector.shape_cast %26 : vector<1x2x16xf32> to vector<2x16xf32>
    %cst_27 = arith.constant dense<0.000000e+00> : vector<80x16xf32>
    %28 = tpu.matmul %25, %27, %cst_27 {dimension_numbers = #tpu.dot_dimension_numbers<[1], [0], [0], [1], [0, 0, 1, 1], [], []>} : vector<80x2xf32>, vector<2x16xf32>, vector<80x16xf32> -> vector<80x16xf32>
    %29 = arith.addf %23, %28 : vector<80x16xf32>
    %30 = vector.broadcast %4 : vector<1x16xf32> to vector<80x16xf32>
    %31 = arith.addf %29, %30 : vector<80x16xf32>
    %cst_28 = arith.constant 0.000000e+00 : f32
    %32 = vector.broadcast %cst_28 : f32 to vector<80x16xf32>
    %33 = arith.maximumf %31, %32 : vector<80x16xf32>
    %34 = vector.shape_cast %33 : vector<80x16xf32> to vector<10x8x16xf32>
    %35 = vector.shape_cast %34 : vector<10x8x16xf32> to vector<80x16xf32>
    %36 = vector.extract_strided_slice %5 {offsets = [0, 0, 0], sizes = [1, 16, 8], strides = [1, 1, 1]} : vector<2x16x8xf32> to vector<1x16x8xf32>
    %37 = vector.shape_cast %36 : vector<1x16x8xf32> to vector<16x8xf32>
    %cst_29 = arith.constant dense<0.000000e+00> : vector<80x8xf32>
    %38 = tpu.matmul %35, %37, %cst_29 {dimension_numbers = #tpu.dot_dimension_numbers<[1], [0], [0], [1], [0, 0, 1, 1], [], []>} : vector<80x16xf32>, vector<16x8xf32>, vector<80x8xf32> -> vector<80x8xf32>
    %39 = vector.shape_cast %38 : vector<80x8xf32> to vector<10x8x8xf32>
    %40 = vector.extract_strided_slice %5 {offsets = [1, 0, 0], sizes = [1, 16, 8], strides = [1, 1, 1]} : vector<2x16x8xf32> to vector<1x16x8xf32>
    %41 = vector.shape_cast %40 : vector<1x16x8xf32> to vector<16x8xf32>
    %cst_30 = arith.constant dense<0.000000e+00> : vector<80x8xf32>
    %42 = tpu.matmul %35, %41, %cst_30 {dimension_numbers = #tpu.dot_dimension_numbers<[1], [0], [0], [1], [0, 0, 1, 1], [], []>} : vector<80x16xf32>, vector<16x8xf32>, vector<80x8xf32> -> vector<80x8xf32>
    %43 = vector.shape_cast %42 : vector<80x8xf32> to vector<10x8x8xf32>
    %cst_31 = arith.constant 0.000000e+00 : f32
    %44 = vector.broadcast %cst_31 : f32 to vector<8x8xf32>
    %45 = vector.extract_strided_slice %0 {offsets = [0, 0, 0], sizes = [1, 8, 8], strides = [1, 1, 1]} : vector<2x8x8xf32> to vector<1x8x8xf32>
    %46 = vector.shape_cast %45 : vector<1x8x8xf32> to vector<8x8xf32>
    %47 = vector.extract_strided_slice %39 {offsets = [0, 0, 0], sizes = [1, 8, 8], strides = [1, 1, 1]} : vector<10x8x8xf32> to vector<1x8x8xf32>
    %48 = vector.shape_cast %47 : vector<1x8x8xf32> to vector<8x8xf32>
    %cst_32 = arith.constant dense<0.000000e+00> : vector<8x8xf32>
    %49 = tpu.matmul %46, %48, %cst_32 {dimension_numbers = #tpu.dot_dimension_numbers<[1], [0], [0], [1], [0, 0, 1, 1], [], []>} : vector<8x8xf32>, vector<8x8xf32>, vector<8x8xf32> -> vector<8x8xf32>
    %50 = arith.addf %44, %49 : vector<8x8xf32>
    %51 = vector.extract_strided_slice %0 {offsets = [1, 0, 0], sizes = [1, 8, 8], strides = [1, 1, 1]} : vector<2x8x8xf32> to vector<1x8x8xf32>
    %52 = vector.shape_cast %51 : vector<1x8x8xf32> to vector<8x8xf32>
    %53 = vector.extract_strided_slice %43 {offsets = [0, 0, 0], sizes = [1, 8, 8], strides = [1, 1, 1]} : vector<10x8x8xf32> to vector<1x8x8xf32>
    %54 = vector.shape_cast %53 : vector<1x8x8xf32> to vector<8x8xf32>
    %cst_33 = arith.constant dense<0.000000e+00> : vector<8x8xf32>
    %55 = tpu.matmul %52, %54, %cst_33 {dimension_numbers = #tpu.dot_dimension_numbers<[1], [0], [0], [1], [0, 0, 1, 1], [], []>} : vector<8x8xf32>, vector<8x8xf32>, vector<8x8xf32> -> vector<8x8xf32>
    %56 = arith.addf %50, %55 : vector<8x8xf32>
    %57 = vector.broadcast %6 : vector<1x8xf32> to vector<8x8xf32>
    %58 = arith.addf %56, %57 : vector<8x8xf32>
    %cst_34 = arith.constant 0.000000e+00 : f32
    %59 = vector.broadcast %cst_34 : f32 to vector<8x8xf32>
    %60 = arith.maximumf %58, %59 : vector<8x8xf32>
    %c0_35 = arith.constant 0 : index
    %c0_36 = arith.constant 0 : index
    %c0_37 = arith.constant 0 : index
    %61 = vector.load %arg28[%c0_35, %c0_36, %c0_37] : memref<10x8x8xf32, #tpu.memory_space<vmem>>, vector<1x8x8xf32>
    %62 = vector.shape_cast %61 : vector<1x8x8xf32> to vector<8x8xf32>
    %63 = vector.shape_cast %60 : vector<8x8xf32> to vector<1x8x8xf32>
    tpu.vector_store %arg28[%c0_35, %c0_36, %c0_37], %63 {strides = array<i32>} : memref<10x8x8xf32, #tpu.memory_space<vmem>>, vector<1x8x8xf32>,
    %cst_38 = arith.constant 0.000000e+00 : f32
    %64 = vector.broadcast %cst_38 : f32 to vector<8x8xf32>
    %65 = vector.extract_strided_slice %0 {offsets = [0, 0, 0], sizes = [1, 8, 8], strides = [1, 1, 1]} : vector<2x8x8xf32> to vector<1x8x8xf32>
    %66 = vector.shape_cast %65 : vector<1x8x8xf32> to vector<8x8xf32>
    %67 = vector.extract_strided_slice %39 {offsets = [1, 0, 0], sizes = [1, 8, 8], strides = [1, 1, 1]} : vector<10x8x8xf32> to vector<1x8x8xf32>
    %68 = vector.shape_cast %67 : vector<1x8x8xf32> to vector<8x8xf32>
    %cst_39 = arith.constant dense<0.000000e+00> : vector<8x8xf32>
    %69 = tpu.matmul %66, %68, %cst_39 {dimension_numbers = #tpu.dot_dimension_numbers<[1], [0], [0], [1], [0, 0, 1, 1], [], []>} : vector<8x8xf32>, vector<8x8xf32>, vector<8x8xf32> -> vector<8x8xf32>
    %70 = arith.addf %64, %69 : vector<8x8xf32>
    %71 = vector.extract_strided_slice %0 {offsets = [1, 0, 0], sizes = [1, 8, 8], strides = [1, 1, 1]} : vector<2x8x8xf32> to vector<1x8x8xf32>
    %72 = vector.shape_cast %71 : vector<1x8x8xf32> to vector<8x8xf32>
    %73 = vector.extract_strided_slice %43 {offsets = [1, 0, 0], sizes = [1, 8, 8], strides = [1, 1, 1]} : vector<10x8x8xf32> to vector<1x8x8xf32>
    %74 = vector.shape_cast %73 : vector<1x8x8xf32> to vector<8x8xf32>
    %cst_40 = arith.constant dense<0.000000e+00> : vector<8x8xf32>
    %75 = tpu.matmul %72, %74, %cst_40 {dimension_numbers = #tpu.dot_dimension_numbers<[1], [0], [0], [1], [0, 0, 1, 1], [], []>} : vector<8x8xf32>, vector<8x8xf32>, vector<8x8xf32> -> vector<8x8xf32>
    %76 = arith.addf %70, %75 : vector<8x8xf32>
    %77 = vector.broadcast %6 : vector<1x8xf32> to vector<8x8xf32>
    %78 = arith.addf %76, %77 : vector<8x8xf32>
    %cst_41 = arith.constant 0.000000e+00 : f32
    %79 = vector.broadcast %cst_41 : f32 to vector<8x8xf32>
    %80 = arith.maximumf %78, %79 : vector<8x8xf32>
    %c1 = arith.constant 1 : index
    %c0_42 = arith.constant 0 : index
    %c0_43 = arith.constant 0 : index
    %81 = vector.load %arg28[%c1, %c0_42, %c0_43] : memref<10x8x8xf32, #tpu.memory_space<vmem>>, vector<1x8x8xf32>
    %82 = vector.shape_cast %81 : vector<1x8x8xf32> to vector<8x8xf32>
    %83 = vector.shape_cast %80 : vector<8x8xf32> to vector<1x8x8xf32>
    tpu.vector_store %arg28[%c1, %c0_42, %c0_43], %83 {strides = array<i32>} : memref<10x8x8xf32, #tpu.memory_space<vmem>>, vector<1x8x8xf32>,
    %cst_44 = arith.constant 0.000000e+00 : f32
    %84 = vector.broadcast %cst_44 : f32 to vector<8x8xf32>
    %85 = vector.extract_strided_slice %0 {offsets = [0, 0, 0], sizes = [1, 8, 8], strides = [1, 1, 1]} : vector<2x8x8xf32> to vector<1x8x8xf32>
    %86 = vector.shape_cast %85 : vector<1x8x8xf32> to vector<8x8xf32>
    %87 = vector.extract_strided_slice %39 {offsets = [2, 0, 0], sizes = [1, 8, 8], strides = [1, 1, 1]} : vector<10x8x8xf32> to vector<1x8x8xf32>
    %88 = vector.shape_cast %87 : vector<1x8x8xf32> to vector<8x8xf32>
    %cst_45 = arith.constant dense<0.000000e+00> : vector<8x8xf32>
    %89 = tpu.matmul %86, %88, %cst_45 {dimension_numbers = #tpu.dot_dimension_numbers<[1], [0], [0], [1], [0, 0, 1, 1], [], []>} : vector<8x8xf32>, vector<8x8xf32>, vector<8x8xf32> -> vector<8x8xf32>
    %90 = arith.addf %84, %89 : vector<8x8xf32>
    %91 = vector.extract_strided_slice %0 {offsets = [1, 0, 0], sizes = [1, 8, 8], strides = [1, 1, 1]} : vector<2x8x8xf32> to vector<1x8x8xf32>
    %92 = vector.shape_cast %91 : vector<1x8x8xf32> to vector<8x8xf32>
    %93 = vector.extract_strided_slice %43 {offsets = [2, 0, 0], sizes = [1, 8, 8], strides = [1, 1, 1]} : vector<10x8x8xf32> to vector<1x8x8xf32>
    %94 = vector.shape_cast %93 : vector<1x8x8xf32> to vector<8x8xf32>
    %cst_46 = arith.constant dense<0.000000e+00> : vector<8x8xf32>
    %95 = tpu.matmul %92, %94, %cst_46 {dimension_numbers = #tpu.dot_dimension_numbers<[1], [0], [0], [1], [0, 0, 1, 1], [], []>} : vector<8x8xf32>, vector<8x8xf32>, vector<8x8xf32> -> vector<8x8xf32>
    %96 = arith.addf %90, %95 : vector<8x8xf32>
    %97 = vector.broadcast %6 : vector<1x8xf32> to vector<8x8xf32>
    %98 = arith.addf %96, %97 : vector<8x8xf32>
    %cst_47 = arith.constant 0.000000e+00 : f32
    %99 = vector.broadcast %cst_47 : f32 to vector<8x8xf32>
    %100 = arith.maximumf %98, %99 : vector<8x8xf32>
    %c2 = arith.constant 2 : index
    %c0_48 = arith.constant 0 : index
    %c0_49 = arith.constant 0 : index
    %101 = vector.load %arg28[%c2, %c0_48, %c0_49] : memref<10x8x8xf32, #tpu.memory_space<vmem>>, vector<1x8x8xf32>
    %102 = vector.shape_cast %101 : vector<1x8x8xf32> to vector<8x8xf32>
    %103 = vector.shape_cast %100 : vector<8x8xf32> to vector<1x8x8xf32>
    tpu.vector_store %arg28[%c2, %c0_48, %c0_49], %103 {strides = array<i32>} : memref<10x8x8xf32, #tpu.memory_space<vmem>>, vector<1x8x8xf32>,
    %cst_50 = arith.constant 0.000000e+00 : f32
    %104 = vector.broadcast %cst_50 : f32 to vector<8x8xf32>
    %105 = vector.extract_strided_slice %0 {offsets = [0, 0, 0], sizes = [1, 8, 8], strides = [1, 1, 1]} : vector<2x8x8xf32> to vector<1x8x8xf32>
    %106 = vector.shape_cast %105 : vector<1x8x8xf32> to vector<8x8xf32>
    %107 = vector.extract_strided_slice %39 {offsets = [3, 0, 0], sizes = [1, 8, 8], strides = [1, 1, 1]} : vector<10x8x8xf32> to vector<1x8x8xf32>
    %108 = vector.shape_cast %107 : vector<1x8x8xf32> to vector<8x8xf32>
    %cst_51 = arith.constant dense<0.000000e+00> : vector<8x8xf32>
    %109 = tpu.matmul %106, %108, %cst_51 {dimension_numbers = #tpu.dot_dimension_numbers<[1], [0], [0], [1], [0, 0, 1, 1], [], []>} : vector<8x8xf32>, vector<8x8xf32>, vector<8x8xf32> -> vector<8x8xf32>
    %110 = arith.addf %104, %109 : vector<8x8xf32>
    %111 = vector.extract_strided_slice %0 {offsets = [1, 0, 0], sizes = [1, 8, 8], strides = [1, 1, 1]} : vector<2x8x8xf32> to vector<1x8x8xf32>
    %112 = vector.shape_cast %111 : vector<1x8x8xf32> to vector<8x8xf32>
    %113 = vector.extract_strided_slice %43 {offsets = [3, 0, 0], sizes = [1, 8, 8], strides = [1, 1, 1]} : vector<10x8x8xf32> to vector<1x8x8xf32>
    %114 = vector.shape_cast %113 : vector<1x8x8xf32> to vector<8x8xf32>
    %cst_52 = arith.constant dense<0.000000e+00> : vector<8x8xf32>
    %115 = tpu.matmul %112, %114, %cst_52 {dimension_numbers = #tpu.dot_dimension_numbers<[1], [0], [0], [1], [0, 0, 1, 1], [], []>} : vector<8x8xf32>, vector<8x8xf32>, vector<8x8xf32> -> vector<8x8xf32>
    %116 = arith.addf %110, %115 : vector<8x8xf32>
    %117 = vector.broadcast %6 : vector<1x8xf32> to vector<8x8xf32>
    %118 = arith.addf %116, %117 : vector<8x8xf32>
    %cst_53 = arith.constant 0.000000e+00 : f32
    %119 = vector.broadcast %cst_53 : f32 to vector<8x8xf32>
    %120 = arith.maximumf %118, %119 : vector<8x8xf32>
    %c3 = arith.constant 3 : index
    %c0_54 = arith.constant 0 : index
    %c0_55 = arith.constant 0 : index
    %121 = vector.load %arg28[%c3, %c0_54, %c0_55] : memref<10x8x8xf32, #tpu.memory_space<vmem>>, vector<1x8x8xf32>
    %122 = vector.shape_cast %121 : vector<1x8x8xf32> to vector<8x8xf32>
    %123 = vector.shape_cast %120 : vector<8x8xf32> to vector<1x8x8xf32>
    tpu.vector_store %arg28[%c3, %c0_54, %c0_55], %123 {strides = array<i32>} : memref<10x8x8xf32, #tpu.memory_space<vmem>>, vector<1x8x8xf32>,
    %cst_56 = arith.constant 0.000000e+00 : f32
    %124 = vector.broadcast %cst_56 : f32 to vector<8x8xf32>
    %125 = vector.extract_strided_slice %0 {offsets = [0, 0, 0], sizes = [1, 8, 8], strides = [1, 1, 1]} : vector<2x8x8xf32> to vector<1x8x8xf32>
    %126 = vector.shape_cast %125 : vector<1x8x8xf32> to vector<8x8xf32>
    %127 = vector.extract_strided_slice %39 {offsets = [4, 0, 0], sizes = [1, 8, 8], strides = [1, 1, 1]} : vector<10x8x8xf32> to vector<1x8x8xf32>
    %128 = vector.shape_cast %127 : vector<1x8x8xf32> to vector<8x8xf32>
    %cst_57 = arith.constant dense<0.000000e+00> : vector<8x8xf32>
    %129 = tpu.matmul %126, %128, %cst_57 {dimension_numbers = #tpu.dot_dimension_numbers<[1], [0], [0], [1], [0, 0, 1, 1], [], []>} : vector<8x8xf32>, vector<8x8xf32>, vector<8x8xf32> -> vector<8x8xf32>
    %130 = arith.addf %124, %129 : vector<8x8xf32>
    %131 = vector.extract_strided_slice %0 {offsets = [1, 0, 0], sizes = [1, 8, 8], strides = [1, 1, 1]} : vector<2x8x8xf32> to vector<1x8x8xf32>
    %132 = vector.shape_cast %131 : vector<1x8x8xf32> to vector<8x8xf32>
    %133 = vector.extract_strided_slice %43 {offsets = [4, 0, 0], sizes = [1, 8, 8], strides = [1, 1, 1]} : vector<10x8x8xf32> to vector<1x8x8xf32>
    %134 = vector.shape_cast %133 : vector<1x8x8xf32> to vector<8x8xf32>
    %cst_58 = arith.constant dense<0.000000e+00> : vector<8x8xf32>
    %135 = tpu.matmul %132, %134, %cst_58 {dimension_numbers = #tpu.dot_dimension_numbers<[1], [0], [0], [1], [0, 0, 1, 1], [], []>} : vector<8x8xf32>, vector<8x8xf32>, vector<8x8xf32> -> vector<8x8xf32>
    %136 = arith.addf %130, %135 : vector<8x8xf32>
    %137 = vector.broadcast %6 : vector<1x8xf32> to vector<8x8xf32>
    %138 = arith.addf %136, %137 : vector<8x8xf32>
    %cst_59 = arith.constant 0.000000e+00 : f32
    %139 = vector.broadcast %cst_59 : f32 to vector<8x8xf32>
    %140 = arith.maximumf %138, %139 : vector<8x8xf32>
    %c4 = arith.constant 4 : index
    %c0_60 = arith.constant 0 : index
    %c0_61 = arith.constant 0 : index
    %141 = vector.load %arg28[%c4, %c0_60, %c0_61] : memref<10x8x8xf32, #tpu.memory_space<vmem>>, vector<1x8x8xf32>
    %142 = vector.shape_cast %141 : vector<1x8x8xf32> to vector<8x8xf32>
    %143 = vector.shape_cast %140 : vector<8x8xf32> to vector<1x8x8xf32>
    tpu.vector_store %arg28[%c4, %c0_60, %c0_61], %143 {strides = array<i32>} : memref<10x8x8xf32, #tpu.memory_space<vmem>>, vector<1x8x8xf32>,
    %cst_62 = arith.constant 0.000000e+00 : f32
    %144 = vector.broadcast %cst_62 : f32 to vector<8x8xf32>
    %145 = vector.extract_strided_slice %0 {offsets = [0, 0, 0], sizes = [1, 8, 8], strides = [1, 1, 1]} : vector<2x8x8xf32> to vector<1x8x8xf32>
    %146 = vector.shape_cast %145 : vector<1x8x8xf32> to vector<8x8xf32>
    %147 = vector.extract_strided_slice %39 {offsets = [5, 0, 0], sizes = [1, 8, 8], strides = [1, 1, 1]} : vector<10x8x8xf32> to vector<1x8x8xf32>
    %148 = vector.shape_cast %147 : vector<1x8x8xf32> to vector<8x8xf32>
    %cst_63 = arith.constant dense<0.000000e+00> : vector<8x8xf32>
    %149 = tpu.matmul %146, %148, %cst_63 {dimension_numbers = #tpu.dot_dimension_numbers<[1], [0], [0], [1], [0, 0, 1, 1], [], []>} : vector<8x8xf32>, vector<8x8xf32>, vector<8x8xf32> -> vector<8x8xf32>
    %150 = arith.addf %144, %149 : vector<8x8xf32>
    %151 = vector.extract_strided_slice %0 {offsets = [1, 0, 0], sizes = [1, 8, 8], strides = [1, 1, 1]} : vector<2x8x8xf32> to vector<1x8x8xf32>
    %152 = vector.shape_cast %151 : vector<1x8x8xf32> to vector<8x8xf32>
    %153 = vector.extract_strided_slice %43 {offsets = [5, 0, 0], sizes = [1, 8, 8], strides = [1, 1, 1]} : vector<10x8x8xf32> to vector<1x8x8xf32>
    %154 = vector.shape_cast %153 : vector<1x8x8xf32> to vector<8x8xf32>
    %cst_64 = arith.constant dense<0.000000e+00> : vector<8x8xf32>
    %155 = tpu.matmul %152, %154, %cst_64 {dimension_numbers = #tpu.dot_dimension_numbers<[1], [0], [0], [1], [0, 0, 1, 1], [], []>} : vector<8x8xf32>, vector<8x8xf32>, vector<8x8xf32> -> vector<8x8xf32>
    %156 = arith.addf %150, %155 : vector<8x8xf32>
    %157 = vector.broadcast %6 : vector<1x8xf32> to vector<8x8xf32>
    %158 = arith.addf %156, %157 : vector<8x8xf32>
    %cst_65 = arith.constant 0.000000e+00 : f32
    %159 = vector.broadcast %cst_65 : f32 to vector<8x8xf32>
    %160 = arith.maximumf %158, %159 : vector<8x8xf32>
    %c5 = arith.constant 5 : index
    %c0_66 = arith.constant 0 : index
    %c0_67 = arith.constant 0 : index
    %161 = vector.load %arg28[%c5, %c0_66, %c0_67] : memref<10x8x8xf32, #tpu.memory_space<vmem>>, vector<1x8x8xf32>
    %162 = vector.shape_cast %161 : vector<1x8x8xf32> to vector<8x8xf32>
    %163 = vector.shape_cast %160 : vector<8x8xf32> to vector<1x8x8xf32>
    tpu.vector_store %arg28[%c5, %c0_66, %c0_67], %163 {strides = array<i32>} : memref<10x8x8xf32, #tpu.memory_space<vmem>>, vector<1x8x8xf32>,
    %cst_68 = arith.constant 0.000000e+00 : f32
    %164 = vector.broadcast %cst_68 : f32 to vector<8x8xf32>
    %165 = vector.extract_strided_slice %0 {offsets = [0, 0, 0], sizes = [1, 8, 8], strides = [1, 1, 1]} : vector<2x8x8xf32> to vector<1x8x8xf32>
    %166 = vector.shape_cast %165 : vector<1x8x8xf32> to vector<8x8xf32>
    %167 = vector.extract_strided_slice %39 {offsets = [6, 0, 0], sizes = [1, 8, 8], strides = [1, 1, 1]} : vector<10x8x8xf32> to vector<1x8x8xf32>
    %168 = vector.shape_cast %167 : vector<1x8x8xf32> to vector<8x8xf32>
    %cst_69 = arith.constant dense<0.000000e+00> : vector<8x8xf32>
    %169 = tpu.matmul %166, %168, %cst_69 {dimension_numbers = #tpu.dot_dimension_numbers<[1], [0], [0], [1], [0, 0, 1, 1], [], []>} : vector<8x8xf32>, vector<8x8xf32>, vector<8x8xf32> -> vector<8x8xf32>
    %170 = arith.addf %164, %169 : vector<8x8xf32>
    %171 = vector.extract_strided_slice %0 {offsets = [1, 0, 0], sizes = [1, 8, 8], strides = [1, 1, 1]} : vector<2x8x8xf32> to vector<1x8x8xf32>
    %172 = vector.shape_cast %171 : vector<1x8x8xf32> to vector<8x8xf32>
    %173 = vector.extract_strided_slice %43 {offsets = [6, 0, 0], sizes = [1, 8, 8], strides = [1, 1, 1]} : vector<10x8x8xf32> to vector<1x8x8xf32>
    %174 = vector.shape_cast %173 : vector<1x8x8xf32> to vector<8x8xf32>
    %cst_70 = arith.constant dense<0.000000e+00> : vector<8x8xf32>
    %175 = tpu.matmul %172, %174, %cst_70 {dimension_numbers = #tpu.dot_dimension_numbers<[1], [0], [0], [1], [0, 0, 1, 1], [], []>} : vector<8x8xf32>, vector<8x8xf32>, vector<8x8xf32> -> vector<8x8xf32>
    %176 = arith.addf %170, %175 : vector<8x8xf32>
    %177 = vector.broadcast %6 : vector<1x8xf32> to vector<8x8xf32>
    %178 = arith.addf %176, %177 : vector<8x8xf32>
    %cst_71 = arith.constant 0.000000e+00 : f32
    %179 = vector.broadcast %cst_71 : f32 to vector<8x8xf32>
    %180 = arith.maximumf %178, %179 : vector<8x8xf32>
    %c6 = arith.constant 6 : index
    %c0_72 = arith.constant 0 : index
    %c0_73 = arith.constant 0 : index
    %181 = vector.load %arg28[%c6, %c0_72, %c0_73] : memref<10x8x8xf32, #tpu.memory_space<vmem>>, vector<1x8x8xf32>
    %182 = vector.shape_cast %181 : vector<1x8x8xf32> to vector<8x8xf32>
    %183 = vector.shape_cast %180 : vector<8x8xf32> to vector<1x8x8xf32>
    tpu.vector_store %arg28[%c6, %c0_72, %c0_73], %183 {strides = array<i32>} : memref<10x8x8xf32, #tpu.memory_space<vmem>>, vector<1x8x8xf32>,
    %cst_74 = arith.constant 0.000000e+00 : f32
    %184 = vector.broadcast %cst_74 : f32 to vector<8x8xf32>
    %185 = vector.extract_strided_slice %0 {offsets = [0, 0, 0], sizes = [1, 8, 8], strides = [1, 1, 1]} : vector<2x8x8xf32> to vector<1x8x8xf32>
    %186 = vector.shape_cast %185 : vector<1x8x8xf32> to vector<8x8xf32>
    %187 = vector.extract_strided_slice %39 {offsets = [7, 0, 0], sizes = [1, 8, 8], strides = [1, 1, 1]} : vector<10x8x8xf32> to vector<1x8x8xf32>
    %188 = vector.shape_cast %187 : vector<1x8x8xf32> to vector<8x8xf32>
    %cst_75 = arith.constant dense<0.000000e+00> : vector<8x8xf32>
    %189 = tpu.matmul %186, %188, %cst_75 {dimension_numbers = #tpu.dot_dimension_numbers<[1], [0], [0], [1], [0, 0, 1, 1], [], []>} : vector<8x8xf32>, vector<8x8xf32>, vector<8x8xf32> -> vector<8x8xf32>
    %190 = arith.addf %184, %189 : vector<8x8xf32>
    %191 = vector.extract_strided_slice %0 {offsets = [1, 0, 0], sizes = [1, 8, 8], strides = [1, 1, 1]} : vector<2x8x8xf32> to vector<1x8x8xf32>
    %192 = vector.shape_cast %191 : vector<1x8x8xf32> to vector<8x8xf32>
    %193 = vector.extract_strided_slice %43 {offsets = [7, 0, 0], sizes = [1, 8, 8], strides = [1, 1, 1]} : vector<10x8x8xf32> to vector<1x8x8xf32>
    %194 = vector.shape_cast %193 : vector<1x8x8xf32> to vector<8x8xf32>
    %cst_76 = arith.constant dense<0.000000e+00> : vector<8x8xf32>
    %195 = tpu.matmul %192, %194, %cst_76 {dimension_numbers = #tpu.dot_dimension_numbers<[1], [0], [0], [1], [0, 0, 1, 1], [], []>} : vector<8x8xf32>, vector<8x8xf32>, vector<8x8xf32> -> vector<8x8xf32>
    %196 = arith.addf %190, %195 : vector<8x8xf32>
    %197 = vector.broadcast %6 : vector<1x8xf32> to vector<8x8xf32>
    %198 = arith.addf %196, %197 : vector<8x8xf32>
    %cst_77 = arith.constant 0.000000e+00 : f32
    %199 = vector.broadcast %cst_77 : f32 to vector<8x8xf32>
    %200 = arith.maximumf %198, %199 : vector<8x8xf32>
    %c7 = arith.constant 7 : index
    %c0_78 = arith.constant 0 : index
    %c0_79 = arith.constant 0 : index
    %201 = vector.load %arg28[%c7, %c0_78, %c0_79] : memref<10x8x8xf32, #tpu.memory_space<vmem>>, vector<1x8x8xf32>
    %202 = vector.shape_cast %201 : vector<1x8x8xf32> to vector<8x8xf32>
    %203 = vector.shape_cast %200 : vector<8x8xf32> to vector<1x8x8xf32>
    tpu.vector_store %arg28[%c7, %c0_78, %c0_79], %203 {strides = array<i32>} : memref<10x8x8xf32, #tpu.memory_space<vmem>>, vector<1x8x8xf32>,
    %cst_80 = arith.constant 0.000000e+00 : f32
    %204 = vector.broadcast %cst_80 : f32 to vector<8x8xf32>
    %205 = vector.extract_strided_slice %0 {offsets = [0, 0, 0], sizes = [1, 8, 8], strides = [1, 1, 1]} : vector<2x8x8xf32> to vector<1x8x8xf32>
    %206 = vector.shape_cast %205 : vector<1x8x8xf32> to vector<8x8xf32>
    %207 = vector.extract_strided_slice %39 {offsets = [8, 0, 0], sizes = [1, 8, 8], strides = [1, 1, 1]} : vector<10x8x8xf32> to vector<1x8x8xf32>
    %208 = vector.shape_cast %207 : vector<1x8x8xf32> to vector<8x8xf32>
    %cst_81 = arith.constant dense<0.000000e+00> : vector<8x8xf32>
    %209 = tpu.matmul %206, %208, %cst_81 {dimension_numbers = #tpu.dot_dimension_numbers<[1], [0], [0], [1], [0, 0, 1, 1], [], []>} : vector<8x8xf32>, vector<8x8xf32>, vector<8x8xf32> -> vector<8x8xf32>
    %210 = arith.addf %204, %209 : vector<8x8xf32>
    %211 = vector.extract_strided_slice %0 {offsets = [1, 0, 0], sizes = [1, 8, 8], strides = [1, 1, 1]} : vector<2x8x8xf32> to vector<1x8x8xf32>
    %212 = vector.shape_cast %211 : vector<1x8x8xf32> to vector<8x8xf32>
    %213 = vector.extract_strided_slice %43 {offsets = [8, 0, 0], sizes = [1, 8, 8], strides = [1, 1, 1]} : vector<10x8x8xf32> to vector<1x8x8xf32>
    %214 = vector.shape_cast %213 : vector<1x8x8xf32> to vector<8x8xf32>
    %cst_82 = arith.constant dense<0.000000e+00> : vector<8x8xf32>
    %215 = tpu.matmul %212, %214, %cst_82 {dimension_numbers = #tpu.dot_dimension_numbers<[1], [0], [0], [1], [0, 0, 1, 1], [], []>} : vector<8x8xf32>, vector<8x8xf32>, vector<8x8xf32> -> vector<8x8xf32>
    %216 = arith.addf %210, %215 : vector<8x8xf32>
    %217 = vector.broadcast %6 : vector<1x8xf32> to vector<8x8xf32>
    %218 = arith.addf %216, %217 : vector<8x8xf32>
    %cst_83 = arith.constant 0.000000e+00 : f32
    %219 = vector.broadcast %cst_83 : f32 to vector<8x8xf32>
    %220 = arith.maximumf %218, %219 : vector<8x8xf32>
    %c8 = arith.constant 8 : index
    %c0_84 = arith.constant 0 : index
    %c0_85 = arith.constant 0 : index
    %221 = vector.load %arg28[%c8, %c0_84, %c0_85] : memref<10x8x8xf32, #tpu.memory_space<vmem>>, vector<1x8x8xf32>
    %222 = vector.shape_cast %221 : vector<1x8x8xf32> to vector<8x8xf32>
    %223 = vector.shape_cast %220 : vector<8x8xf32> to vector<1x8x8xf32>
    tpu.vector_store %arg28[%c8, %c0_84, %c0_85], %223 {strides = array<i32>} : memref<10x8x8xf32, #tpu.memory_space<vmem>>, vector<1x8x8xf32>,
    %cst_86 = arith.constant 0.000000e+00 : f32
    %224 = vector.broadcast %cst_86 : f32 to vector<8x8xf32>
    %225 = vector.extract_strided_slice %0 {offsets = [0, 0, 0], sizes = [1, 8, 8], strides = [1, 1, 1]} : vector<2x8x8xf32> to vector<1x8x8xf32>
    %226 = vector.shape_cast %225 : vector<1x8x8xf32> to vector<8x8xf32>
    %227 = vector.extract_strided_slice %39 {offsets = [9, 0, 0], sizes = [1, 8, 8], strides = [1, 1, 1]} : vector<10x8x8xf32> to vector<1x8x8xf32>
    %228 = vector.shape_cast %227 : vector<1x8x8xf32> to vector<8x8xf32>
    %cst_87 = arith.constant dense<0.000000e+00> : vector<8x8xf32>
    %229 = tpu.matmul %226, %228, %cst_87 {dimension_numbers = #tpu.dot_dimension_numbers<[1], [0], [0], [1], [0, 0, 1, 1], [], []>} : vector<8x8xf32>, vector<8x8xf32>, vector<8x8xf32> -> vector<8x8xf32>
    %230 = arith.addf %224, %229 : vector<8x8xf32>
    %231 = vector.extract_strided_slice %0 {offsets = [1, 0, 0], sizes = [1, 8, 8], strides = [1, 1, 1]} : vector<2x8x8xf32> to vector<1x8x8xf32>
    %232 = vector.shape_cast %231 : vector<1x8x8xf32> to vector<8x8xf32>
    %233 = vector.extract_strided_slice %43 {offsets = [9, 0, 0], sizes = [1, 8, 8], strides = [1, 1, 1]} : vector<10x8x8xf32> to vector<1x8x8xf32>
    %234 = vector.shape_cast %233 : vector<1x8x8xf32> to vector<8x8xf32>
    %cst_88 = arith.constant dense<0.000000e+00> : vector<8x8xf32>
    %235 = tpu.matmul %232, %234, %cst_88 {dimension_numbers = #tpu.dot_dimension_numbers<[1], [0], [0], [1], [0, 0, 1, 1], [], []>} : vector<8x8xf32>, vector<8x8xf32>, vector<8x8xf32> -> vector<8x8xf32>
    %236 = arith.addf %230, %235 : vector<8x8xf32>
    %237 = vector.broadcast %6 : vector<1x8xf32> to vector<8x8xf32>
    %238 = arith.addf %236, %237 : vector<8x8xf32>
    %cst_89 = arith.constant 0.000000e+00 : f32
    %239 = vector.broadcast %cst_89 : f32 to vector<8x8xf32>
    %240 = arith.maximumf %238, %239 : vector<8x8xf32>
    %c9 = arith.constant 9 : index
    %c0_90 = arith.constant 0 : index
    %c0_91 = arith.constant 0 : index
    %241 = vector.load %arg28[%c9, %c0_90, %c0_91] : memref<10x8x8xf32, #tpu.memory_space<vmem>>, vector<1x8x8xf32>
    %242 = vector.shape_cast %241 : vector<1x8x8xf32> to vector<8x8xf32>
    %243 = vector.shape_cast %240 : vector<8x8xf32> to vector<1x8x8xf32>
    tpu.vector_store %arg28[%c9, %c0_90, %c0_91], %243 {strides = array<i32>} : memref<10x8x8xf32, #tpu.memory_space<vmem>>, vector<1x8x8xf32>,
    %c0_92 = arith.constant 0 : index
    %c0_93 = arith.constant 0 : index
    %c0_94 = arith.constant 0 : index
    %244 = vector.load %arg28[%c0_92, %c0_93, %c0_94] : memref<10x8x8xf32, #tpu.memory_space<vmem>>, vector<10x8x8xf32>
    %cst_95 = arith.constant 0.000000e+00 : f32
    %245 = vector.broadcast %cst_95 : f32 to vector<64x16xf32>
    %246 = vector.extract_strided_slice %244 {offsets = [0, 0, 0], sizes = [8, 8, 8], strides = [1, 1, 1]} : vector<10x8x8xf32> to vector<8x8x8xf32>
    %247 = vector.shape_cast %246 : vector<8x8x8xf32> to vector<64x8xf32>
    %248 = vector.extract_strided_slice %7 {offsets = [0, 0, 0], sizes = [1, 8, 16], strides = [1, 1, 1]} : vector<3x8x16xf32> to vector<1x8x16xf32>
    %249 = vector.shape_cast %248 : vector<1x8x16xf32> to vector<8x16xf32>
    %cst_96 = arith.constant dense<0.000000e+00> : vector<64x16xf32>
    %250 = tpu.matmul %247, %249, %cst_96 {dimension_numbers = #tpu.dot_dimension_numbers<[1], [0], [0], [1], [0, 0, 1, 1], [], []>} : vector<64x8xf32>, vector<8x16xf32>, vector<64x16xf32> -> vector<64x16xf32>
    %251 = arith.addf %245, %250 : vector<64x16xf32>
    %252 = vector.extract_strided_slice %244 {offsets = [1, 0, 0], sizes = [8, 8, 8], strides = [1, 1, 1]} : vector<10x8x8xf32> to vector<8x8x8xf32>
    %253 = vector.shape_cast %252 : vector<8x8x8xf32> to vector<64x8xf32>
    %254 = vector.extract_strided_slice %7 {offsets = [1, 0, 0], sizes = [1, 8, 16], strides = [1, 1, 1]} : vector<3x8x16xf32> to vector<1x8x16xf32>
    %255 = vector.shape_cast %254 : vector<1x8x16xf32> to vector<8x16xf32>
    %cst_97 = arith.constant dense<0.000000e+00> : vector<64x16xf32>
    %256 = tpu.matmul %253, %255, %cst_97 {dimension_numbers = #tpu.dot_dimension_numbers<[1], [0], [0], [1], [0, 0, 1, 1], [], []>} : vector<64x8xf32>, vector<8x16xf32>, vector<64x16xf32> -> vector<64x16xf32>
    %257 = arith.addf %251, %256 : vector<64x16xf32>
    %258 = vector.extract_strided_slice %244 {offsets = [2, 0, 0], sizes = [8, 8, 8], strides = [1, 1, 1]} : vector<10x8x8xf32> to vector<8x8x8xf32>
    %259 = vector.shape_cast %258 : vector<8x8x8xf32> to vector<64x8xf32>
    %260 = vector.extract_strided_slice %7 {offsets = [2, 0, 0], sizes = [1, 8, 16], strides = [1, 1, 1]} : vector<3x8x16xf32> to vector<1x8x16xf32>
    %261 = vector.shape_cast %260 : vector<1x8x16xf32> to vector<8x16xf32>
    %cst_98 = arith.constant dense<0.000000e+00> : vector<64x16xf32>
    %262 = tpu.matmul %259, %261, %cst_98 {dimension_numbers = #tpu.dot_dimension_numbers<[1], [0], [0], [1], [0, 0, 1, 1], [], []>} : vector<64x8xf32>, vector<8x16xf32>, vector<64x16xf32> -> vector<64x16xf32>
    %263 = arith.addf %257, %262 : vector<64x16xf32>
    %264 = vector.broadcast %8 : vector<1x16xf32> to vector<64x16xf32>
    %265 = arith.addf %263, %264 : vector<64x16xf32>
    %cst_99 = arith.constant 0.000000e+00 : f32
    %266 = vector.broadcast %cst_99 : f32 to vector<64x16xf32>
    %267 = arith.maximumf %265, %266 : vector<64x16xf32>
    %268 = vector.shape_cast %267 : vector<64x16xf32> to vector<8x8x16xf32>
    %cst_100 = arith.constant dense<0.000000e+00> : vector<8x8xf32>
    %269 = vector.multi_reduction <add>, %268, %cst_100 [2] : vector<8x8x16xf32> to vector<8x8xf32>
    %270 = vector.shape_cast %269 : vector<8x8xf32> to vector<8x8x1xf32>
    %cst_101 = arith.constant dense<0.000000e+00> : vector<8x1xf32>
    %271 = vector.multi_reduction <add>, %270, %cst_101 [1] : vector<8x8x1xf32> to vector<8x1xf32>
    %272 = vector.shape_cast %271 : vector<8x1xf32> to vector<8x1x1xf32>
    %cst_102 = arith.constant 1.280000e+02 : f32
    %273 = vector.broadcast %cst_102 : f32 to vector<8x1x1xf32>
    %274 = arith.divf %272, %273 : vector<8x1x1xf32>
    %275 = vector.broadcast %274 : vector<8x1x1xf32> to vector<8x8x16xf32>
    %276 = arith.subf %268, %275 : vector<8x8x16xf32>
    %277 = arith.mulf %276, %276 : vector<8x8x16xf32>
    %cst_103 = arith.constant dense<0.000000e+00> : vector<8x8xf32>
    %278 = vector.multi_reduction <add>, %277, %cst_103 [2] : vector<8x8x16xf32> to vector<8x8xf32>
    %279 = vector.shape_cast %278 : vector<8x8xf32> to vector<8x8x1xf32>
    %cst_104 = arith.constant dense<0.000000e+00> : vector<8x1xf32>
    %280 = vector.multi_reduction <add>, %279, %cst_104 [1] : vector<8x8x1xf32> to vector<8x1xf32>
    %281 = vector.shape_cast %280 : vector<8x1xf32> to vector<8x1x1xf32>
    %cst_105 = arith.constant 1.280000e+02 : f32
    %282 = vector.broadcast %cst_105 : f32 to vector<8x1x1xf32>
    %283 = arith.divf %281, %282 : vector<8x1x1xf32>
    %cst_106 = arith.constant 9.99999974E-6 : f32
    %284 = vector.broadcast %cst_106 : f32 to vector<8x1x1xf32>
    %285 = arith.addf %283, %284 : vector<8x1x1xf32>
    %286 = math.rsqrt %285 : vector<8x1x1xf32>
    %287 = vector.broadcast %286 : vector<8x1x1xf32> to vector<8x8x16xf32>
    %288 = arith.mulf %276, %287 : vector<8x8x16xf32>
    %289 = vector.shape_cast %9 : vector<8x16xf32> to vector<1x8x16xf32>
    %290 = vector.broadcast %289 : vector<1x8x16xf32> to vector<8x8x16xf32>
    %291 = arith.mulf %288, %290 : vector<8x8x16xf32>
    %292 = vector.shape_cast %10 : vector<8x16xf32> to vector<1x8x16xf32>
    %293 = vector.broadcast %292 : vector<1x8x16xf32> to vector<8x8x16xf32>
    %294 = arith.addf %291, %293 : vector<8x8x16xf32>
    %c0_107 = arith.constant 0 : index
    %c0_108 = arith.constant 0 : index
    %c0_109 = arith.constant 0 : index
    %295 = vector.load %arg11[%c0_107, %c0_108, %c0_109] : memref<3x16x16xf32, #tpu.memory_space<vmem>>, vector<3x16x16xf32>
    %c0_110 = arith.constant 0 : index
    %c0_111 = arith.constant 0 : index
    %296 = vector.load %arg12[%c0_110, %c0_111] : memref<1x16xf32, #tpu.memory_space<vmem>>, vector<1x16xf32>
    %c0_112 = arith.constant 0 : index
    %c0_113 = arith.constant 0 : index
    %c0_114 = arith.constant 0 : index
    %297 = vector.load %arg13[%c0_112, %c0_113, %c0_114] : memref<2x16x8xf32, #tpu.memory_space<vmem>>, vector<2x16x8xf32>
    %c0_115 = arith.constant 0 : index
    %c0_116 = arith.constant 0 : index
    %298 = vector.load %arg14[%c0_115, %c0_116] : memref<1x8xf32, #tpu.memory_space<vmem>>, vector<1x8xf32>
    %c0_117 = arith.constant 0 : index
    %c0_118 = arith.constant 0 : index
    %c0_119 = arith.constant 0 : index
    %299 = vector.load %arg15[%c0_117, %c0_118, %c0_119] : memref<3x8x16xf32, #tpu.memory_space<vmem>>, vector<3x8x16xf32>
    %c0_120 = arith.constant 0 : index
    %c0_121 = arith.constant 0 : index
    %300 = vector.load %arg16[%c0_120, %c0_121] : memref<1x16xf32, #tpu.memory_space<vmem>>, vector<1x16xf32>
    %c0_122 = arith.constant 0 : index
    %c0_123 = arith.constant 0 : index
    %301 = vector.load %arg17[%c0_122, %c0_123] : memref<8x16xf32, #tpu.memory_space<vmem>>, vector<8x16xf32>
    %c0_124 = arith.constant 0 : index
    %c0_125 = arith.constant 0 : index
    %302 = vector.load %arg18[%c0_124, %c0_125] : memref<8x16xf32, #tpu.memory_space<vmem>>, vector<8x16xf32>
    %cst_126 = arith.constant 0.000000e+00 : f32
    %303 = vector.broadcast %cst_126 : f32 to vector<48x16xf32>
    %304 = vector.extract_strided_slice %294 {offsets = [0, 0, 0], sizes = [6, 8, 16], strides = [1, 1, 1]} : vector<8x8x16xf32> to vector<6x8x16xf32>
    %305 = vector.shape_cast %304 : vector<6x8x16xf32> to vector<48x16xf32>
    %306 = vector.extract_strided_slice %295 {offsets = [0, 0, 0], sizes = [1, 16, 16], strides = [1, 1, 1]} : vector<3x16x16xf32> to vector<1x16x16xf32>
    %307 = vector.shape_cast %306 : vector<1x16x16xf32> to vector<16x16xf32>
    %cst_127 = arith.constant dense<0.000000e+00> : vector<48x16xf32>
    %308 = tpu.matmul %305, %307, %cst_127 {dimension_numbers = #tpu.dot_dimension_numbers<[1], [0], [0], [1], [0, 0, 1, 1], [], []>} : vector<48x16xf32>, vector<16x16xf32>, vector<48x16xf32> -> vector<48x16xf32>
    %309 = arith.addf %303, %308 : vector<48x16xf32>
    %310 = vector.extract_strided_slice %294 {offsets = [1, 0, 0], sizes = [6, 8, 16], strides = [1, 1, 1]} : vector<8x8x16xf32> to vector<6x8x16xf32>
    %311 = vector.shape_cast %310 : vector<6x8x16xf32> to vector<48x16xf32>
    %312 = vector.extract_strided_slice %295 {offsets = [1, 0, 0], sizes = [1, 16, 16], strides = [1, 1, 1]} : vector<3x16x16xf32> to vector<1x16x16xf32>
    %313 = vector.shape_cast %312 : vector<1x16x16xf32> to vector<16x16xf32>
    %cst_128 = arith.constant dense<0.000000e+00> : vector<48x16xf32>
    %314 = tpu.matmul %311, %313, %cst_128 {dimension_numbers = #tpu.dot_dimension_numbers<[1], [0], [0], [1], [0, 0, 1, 1], [], []>} : vector<48x16xf32>, vector<16x16xf32>, vector<48x16xf32> -> vector<48x16xf32>
    %315 = arith.addf %309, %314 : vector<48x16xf32>
    %316 = vector.extract_strided_slice %294 {offsets = [2, 0, 0], sizes = [6, 8, 16], strides = [1, 1, 1]} : vector<8x8x16xf32> to vector<6x8x16xf32>
    %317 = vector.shape_cast %316 : vector<6x8x16xf32> to vector<48x16xf32>
    %318 = vector.extract_strided_slice %295 {offsets = [2, 0, 0], sizes = [1, 16, 16], strides = [1, 1, 1]} : vector<3x16x16xf32> to vector<1x16x16xf32>
    %319 = vector.shape_cast %318 : vector<1x16x16xf32> to vector<16x16xf32>
    %cst_129 = arith.constant dense<0.000000e+00> : vector<48x16xf32>
    %320 = tpu.matmul %317, %319, %cst_129 {dimension_numbers = #tpu.dot_dimension_numbers<[1], [0], [0], [1], [0, 0, 1, 1], [], []>} : vector<48x16xf32>, vector<16x16xf32>, vector<48x16xf32> -> vector<48x16xf32>
    %321 = arith.addf %315, %320 : vector<48x16xf32>
    %322 = vector.broadcast %296 : vector<1x16xf32> to vector<48x16xf32>
    %323 = arith.addf %321, %322 : vector<48x16xf32>
    %cst_130 = arith.constant 0.000000e+00 : f32
    %324 = vector.broadcast %cst_130 : f32 to vector<48x16xf32>
    %325 = arith.maximumf %323, %324 : vector<48x16xf32>
    %326 = vector.shape_cast %325 : vector<48x16xf32> to vector<6x8x16xf32>
    %327 = vector.shape_cast %326 : vector<6x8x16xf32> to vector<48x16xf32>
    %328 = vector.extract_strided_slice %297 {offsets = [0, 0, 0], sizes = [1, 16, 8], strides = [1, 1, 1]} : vector<2x16x8xf32> to vector<1x16x8xf32>
    %329 = vector.shape_cast %328 : vector<1x16x8xf32> to vector<16x8xf32>
    %cst_131 = arith.constant dense<0.000000e+00> : vector<48x8xf32>
    %330 = tpu.matmul %327, %329, %cst_131 {dimension_numbers = #tpu.dot_dimension_numbers<[1], [0], [0], [1], [0, 0, 1, 1], [], []>} : vector<48x16xf32>, vector<16x8xf32>, vector<48x8xf32> -> vector<48x8xf32>
    %331 = vector.shape_cast %330 : vector<48x8xf32> to vector<6x8x8xf32>
    %332 = vector.extract_strided_slice %297 {offsets = [1, 0, 0], sizes = [1, 16, 8], strides = [1, 1, 1]} : vector<2x16x8xf32> to vector<1x16x8xf32>
    %333 = vector.shape_cast %332 : vector<1x16x8xf32> to vector<16x8xf32>
    %cst_132 = arith.constant dense<0.000000e+00> : vector<48x8xf32>
    %334 = tpu.matmul %327, %333, %cst_132 {dimension_numbers = #tpu.dot_dimension_numbers<[1], [0], [0], [1], [0, 0, 1, 1], [], []>} : vector<48x16xf32>, vector<16x8xf32>, vector<48x8xf32> -> vector<48x8xf32>
    %335 = vector.shape_cast %334 : vector<48x8xf32> to vector<6x8x8xf32>
    %cst_133 = arith.constant 0.000000e+00 : f32
    %336 = vector.broadcast %cst_133 : f32 to vector<8x8xf32>
    %337 = vector.extract_strided_slice %0 {offsets = [0, 0, 0], sizes = [1, 8, 8], strides = [1, 1, 1]} : vector<2x8x8xf32> to vector<1x8x8xf32>
    %338 = vector.shape_cast %337 : vector<1x8x8xf32> to vector<8x8xf32>
    %339 = vector.extract_strided_slice %331 {offsets = [0, 0, 0], sizes = [1, 8, 8], strides = [1, 1, 1]} : vector<6x8x8xf32> to vector<1x8x8xf32>
    %340 = vector.shape_cast %339 : vector<1x8x8xf32> to vector<8x8xf32>
    %cst_134 = arith.constant dense<0.000000e+00> : vector<8x8xf32>
    %341 = tpu.matmul %338, %340, %cst_134 {dimension_numbers = #tpu.dot_dimension_numbers<[1], [0], [0], [1], [0, 0, 1, 1], [], []>} : vector<8x8xf32>, vector<8x8xf32>, vector<8x8xf32> -> vector<8x8xf32>
    %342 = arith.addf %336, %341 : vector<8x8xf32>
    %343 = vector.extract_strided_slice %0 {offsets = [1, 0, 0], sizes = [1, 8, 8], strides = [1, 1, 1]} : vector<2x8x8xf32> to vector<1x8x8xf32>
    %344 = vector.shape_cast %343 : vector<1x8x8xf32> to vector<8x8xf32>
    %345 = vector.extract_strided_slice %335 {offsets = [0, 0, 0], sizes = [1, 8, 8], strides = [1, 1, 1]} : vector<6x8x8xf32> to vector<1x8x8xf32>
    %346 = vector.shape_cast %345 : vector<1x8x8xf32> to vector<8x8xf32>
    %cst_135 = arith.constant dense<0.000000e+00> : vector<8x8xf32>
    %347 = tpu.matmul %344, %346, %cst_135 {dimension_numbers = #tpu.dot_dimension_numbers<[1], [0], [0], [1], [0, 0, 1, 1], [], []>} : vector<8x8xf32>, vector<8x8xf32>, vector<8x8xf32> -> vector<8x8xf32>
    %348 = arith.addf %342, %347 : vector<8x8xf32>
    %349 = vector.broadcast %298 : vector<1x8xf32> to vector<8x8xf32>
    %350 = arith.addf %348, %349 : vector<8x8xf32>
    %cst_136 = arith.constant 0.000000e+00 : f32
    %351 = vector.broadcast %cst_136 : f32 to vector<8x8xf32>
    %352 = arith.maximumf %350, %351 : vector<8x8xf32>
    %c0_137 = arith.constant 0 : index
    %c0_138 = arith.constant 0 : index
    %c0_139 = arith.constant 0 : index
    %353 = vector.load %arg29[%c0_137, %c0_138, %c0_139] : memref<6x8x8xf32, #tpu.memory_space<vmem>>, vector<1x8x8xf32>
    %354 = vector.shape_cast %353 : vector<1x8x8xf32> to vector<8x8xf32>
    %355 = vector.shape_cast %352 : vector<8x8xf32> to vector<1x8x8xf32>
    tpu.vector_store %arg29[%c0_137, %c0_138, %c0_139], %355 {strides = array<i32>} : memref<6x8x8xf32, #tpu.memory_space<vmem>>, vector<1x8x8xf32>,
    %cst_140 = arith.constant 0.000000e+00 : f32
    %356 = vector.broadcast %cst_140 : f32 to vector<8x8xf32>
    %357 = vector.extract_strided_slice %0 {offsets = [0, 0, 0], sizes = [1, 8, 8], strides = [1, 1, 1]} : vector<2x8x8xf32> to vector<1x8x8xf32>
    %358 = vector.shape_cast %357 : vector<1x8x8xf32> to vector<8x8xf32>
    %359 = vector.extract_strided_slice %331 {offsets = [1, 0, 0], sizes = [1, 8, 8], strides = [1, 1, 1]} : vector<6x8x8xf32> to vector<1x8x8xf32>
    %360 = vector.shape_cast %359 : vector<1x8x8xf32> to vector<8x8xf32>
    %cst_141 = arith.constant dense<0.000000e+00> : vector<8x8xf32>
    %361 = tpu.matmul %358, %360, %cst_141 {dimension_numbers = #tpu.dot_dimension_numbers<[1], [0], [0], [1], [0, 0, 1, 1], [], []>} : vector<8x8xf32>, vector<8x8xf32>, vector<8x8xf32> -> vector<8x8xf32>
    %362 = arith.addf %356, %361 : vector<8x8xf32>
    %363 = vector.extract_strided_slice %0 {offsets = [1, 0, 0], sizes = [1, 8, 8], strides = [1, 1, 1]} : vector<2x8x8xf32> to vector<1x8x8xf32>
    %364 = vector.shape_cast %363 : vector<1x8x8xf32> to vector<8x8xf32>
    %365 = vector.extract_strided_slice %335 {offsets = [1, 0, 0], sizes = [1, 8, 8], strides = [1, 1, 1]} : vector<6x8x8xf32> to vector<1x8x8xf32>
    %366 = vector.shape_cast %365 : vector<1x8x8xf32> to vector<8x8xf32>
    %cst_142 = arith.constant dense<0.000000e+00> : vector<8x8xf32>
    %367 = tpu.matmul %364, %366, %cst_142 {dimension_numbers = #tpu.dot_dimension_numbers<[1], [0], [0], [1], [0, 0, 1, 1], [], []>} : vector<8x8xf32>, vector<8x8xf32>, vector<8x8xf32> -> vector<8x8xf32>
    %368 = arith.addf %362, %367 : vector<8x8xf32>
    %369 = vector.broadcast %298 : vector<1x8xf32> to vector<8x8xf32>
    %370 = arith.addf %368, %369 : vector<8x8xf32>
    %cst_143 = arith.constant 0.000000e+00 : f32
    %371 = vector.broadcast %cst_143 : f32 to vector<8x8xf32>
    %372 = arith.maximumf %370, %371 : vector<8x8xf32>
    %c1_144 = arith.constant 1 : index
    %c0_145 = arith.constant 0 : index
    %c0_146 = arith.constant 0 : index
    %373 = vector.load %arg29[%c1_144, %c0_145, %c0_146] : memref<6x8x8xf32, #tpu.memory_space<vmem>>, vector<1x8x8xf32>
    %374 = vector.shape_cast %373 : vector<1x8x8xf32> to vector<8x8xf32>
    %375 = vector.shape_cast %372 : vector<8x8xf32> to vector<1x8x8xf32>
    tpu.vector_store %arg29[%c1_144, %c0_145, %c0_146], %375 {strides = array<i32>} : memref<6x8x8xf32, #tpu.memory_space<vmem>>, vector<1x8x8xf32>,
    %cst_147 = arith.constant 0.000000e+00 : f32
    %376 = vector.broadcast %cst_147 : f32 to vector<8x8xf32>
    %377 = vector.extract_strided_slice %0 {offsets = [0, 0, 0], sizes = [1, 8, 8], strides = [1, 1, 1]} : vector<2x8x8xf32> to vector<1x8x8xf32>
    %378 = vector.shape_cast %377 : vector<1x8x8xf32> to vector<8x8xf32>
    %379 = vector.extract_strided_slice %331 {offsets = [2, 0, 0], sizes = [1, 8, 8], strides = [1, 1, 1]} : vector<6x8x8xf32> to vector<1x8x8xf32>
    %380 = vector.shape_cast %379 : vector<1x8x8xf32> to vector<8x8xf32>
    %cst_148 = arith.constant dense<0.000000e+00> : vector<8x8xf32>
    %381 = tpu.matmul %378, %380, %cst_148 {dimension_numbers = #tpu.dot_dimension_numbers<[1], [0], [0], [1], [0, 0, 1, 1], [], []>} : vector<8x8xf32>, vector<8x8xf32>, vector<8x8xf32> -> vector<8x8xf32>
    %382 = arith.addf %376, %381 : vector<8x8xf32>
    %383 = vector.extract_strided_slice %0 {offsets = [1, 0, 0], sizes = [1, 8, 8], strides = [1, 1, 1]} : vector<2x8x8xf32> to vector<1x8x8xf32>
    %384 = vector.shape_cast %383 : vector<1x8x8xf32> to vector<8x8xf32>
    %385 = vector.extract_strided_slice %335 {offsets = [2, 0, 0], sizes = [1, 8, 8], strides = [1, 1, 1]} : vector<6x8x8xf32> to vector<1x8x8xf32>
    %386 = vector.shape_cast %385 : vector<1x8x8xf32> to vector<8x8xf32>
    %cst_149 = arith.constant dense<0.000000e+00> : vector<8x8xf32>
    %387 = tpu.matmul %384, %386, %cst_149 {dimension_numbers = #tpu.dot_dimension_numbers<[1], [0], [0], [1], [0, 0, 1, 1], [], []>} : vector<8x8xf32>, vector<8x8xf32>, vector<8x8xf32> -> vector<8x8xf32>
    %388 = arith.addf %382, %387 : vector<8x8xf32>
    %389 = vector.broadcast %298 : vector<1x8xf32> to vector<8x8xf32>
    %390 = arith.addf %388, %389 : vector<8x8xf32>
    %cst_150 = arith.constant 0.000000e+00 : f32
    %391 = vector.broadcast %cst_150 : f32 to vector<8x8xf32>
    %392 = arith.maximumf %390, %391 : vector<8x8xf32>
    %c2_151 = arith.constant 2 : index
    %c0_152 = arith.constant 0 : index
    %c0_153 = arith.constant 0 : index
    %393 = vector.load %arg29[%c2_151, %c0_152, %c0_153] : memref<6x8x8xf32, #tpu.memory_space<vmem>>, vector<1x8x8xf32>
    %394 = vector.shape_cast %393 : vector<1x8x8xf32> to vector<8x8xf32>
    %395 = vector.shape_cast %392 : vector<8x8xf32> to vector<1x8x8xf32>
    tpu.vector_store %arg29[%c2_151, %c0_152, %c0_153], %395 {strides = array<i32>} : memref<6x8x8xf32, #tpu.memory_space<vmem>>, vector<1x8x8xf32>,
    %cst_154 = arith.constant 0.000000e+00 : f32
    %396 = vector.broadcast %cst_154 : f32 to vector<8x8xf32>
    %397 = vector.extract_strided_slice %0 {offsets = [0, 0, 0], sizes = [1, 8, 8], strides = [1, 1, 1]} : vector<2x8x8xf32> to vector<1x8x8xf32>
    %398 = vector.shape_cast %397 : vector<1x8x8xf32> to vector<8x8xf32>
    %399 = vector.extract_strided_slice %331 {offsets = [3, 0, 0], sizes = [1, 8, 8], strides = [1, 1, 1]} : vector<6x8x8xf32> to vector<1x8x8xf32>
    %400 = vector.shape_cast %399 : vector<1x8x8xf32> to vector<8x8xf32>
    %cst_155 = arith.constant dense<0.000000e+00> : vector<8x8xf32>
    %401 = tpu.matmul %398, %400, %cst_155 {dimension_numbers = #tpu.dot_dimension_numbers<[1], [0], [0], [1], [0, 0, 1, 1], [], []>} : vector<8x8xf32>, vector<8x8xf32>, vector<8x8xf32> -> vector<8x8xf32>
    %402 = arith.addf %396, %401 : vector<8x8xf32>
    %403 = vector.extract_strided_slice %0 {offsets = [1, 0, 0], sizes = [1, 8, 8], strides = [1, 1, 1]} : vector<2x8x8xf32> to vector<1x8x8xf32>
    %404 = vector.shape_cast %403 : vector<1x8x8xf32> to vector<8x8xf32>
    %405 = vector.extract_strided_slice %335 {offsets = [3, 0, 0], sizes = [1, 8, 8], strides = [1, 1, 1]} : vector<6x8x8xf32> to vector<1x8x8xf32>
    %406 = vector.shape_cast %405 : vector<1x8x8xf32> to vector<8x8xf32>
    %cst_156 = arith.constant dense<0.000000e+00> : vector<8x8xf32>
    %407 = tpu.matmul %404, %406, %cst_156 {dimension_numbers = #tpu.dot_dimension_numbers<[1], [0], [0], [1], [0, 0, 1, 1], [], []>} : vector<8x8xf32>, vector<8x8xf32>, vector<8x8xf32> -> vector<8x8xf32>
    %408 = arith.addf %402, %407 : vector<8x8xf32>
    %409 = vector.broadcast %298 : vector<1x8xf32> to vector<8x8xf32>
    %410 = arith.addf %408, %409 : vector<8x8xf32>
    %cst_157 = arith.constant 0.000000e+00 : f32
    %411 = vector.broadcast %cst_157 : f32 to vector<8x8xf32>
    %412 = arith.maximumf %410, %411 : vector<8x8xf32>
    %c3_158 = arith.constant 3 : index
    %c0_159 = arith.constant 0 : index
    %c0_160 = arith.constant 0 : index
    %413 = vector.load %arg29[%c3_158, %c0_159, %c0_160] : memref<6x8x8xf32, #tpu.memory_space<vmem>>, vector<1x8x8xf32>
    %414 = vector.shape_cast %413 : vector<1x8x8xf32> to vector<8x8xf32>
    %415 = vector.shape_cast %412 : vector<8x8xf32> to vector<1x8x8xf32>
    tpu.vector_store %arg29[%c3_158, %c0_159, %c0_160], %415 {strides = array<i32>} : memref<6x8x8xf32, #tpu.memory_space<vmem>>, vector<1x8x8xf32>,
    %cst_161 = arith.constant 0.000000e+00 : f32
    %416 = vector.broadcast %cst_161 : f32 to vector<8x8xf32>
    %417 = vector.extract_strided_slice %0 {offsets = [0, 0, 0], sizes = [1, 8, 8], strides = [1, 1, 1]} : vector<2x8x8xf32> to vector<1x8x8xf32>
    %418 = vector.shape_cast %417 : vector<1x8x8xf32> to vector<8x8xf32>
    %419 = vector.extract_strided_slice %331 {offsets = [4, 0, 0], sizes = [1, 8, 8], strides = [1, 1, 1]} : vector<6x8x8xf32> to vector<1x8x8xf32>
    %420 = vector.shape_cast %419 : vector<1x8x8xf32> to vector<8x8xf32>
    %cst_162 = arith.constant dense<0.000000e+00> : vector<8x8xf32>
    %421 = tpu.matmul %418, %420, %cst_162 {dimension_numbers = #tpu.dot_dimension_numbers<[1], [0], [0], [1], [0, 0, 1, 1], [], []>} : vector<8x8xf32>, vector<8x8xf32>, vector<8x8xf32> -> vector<8x8xf32>
    %422 = arith.addf %416, %421 : vector<8x8xf32>
    %423 = vector.extract_strided_slice %0 {offsets = [1, 0, 0], sizes = [1, 8, 8], strides = [1, 1, 1]} : vector<2x8x8xf32> to vector<1x8x8xf32>
    %424 = vector.shape_cast %423 : vector<1x8x8xf32> to vector<8x8xf32>
    %425 = vector.extract_strided_slice %335 {offsets = [4, 0, 0], sizes = [1, 8, 8], strides = [1, 1, 1]} : vector<6x8x8xf32> to vector<1x8x8xf32>
    %426 = vector.shape_cast %425 : vector<1x8x8xf32> to vector<8x8xf32>
    %cst_163 = arith.constant dense<0.000000e+00> : vector<8x8xf32>
    %427 = tpu.matmul %424, %426, %cst_163 {dimension_numbers = #tpu.dot_dimension_numbers<[1], [0], [0], [1], [0, 0, 1, 1], [], []>} : vector<8x8xf32>, vector<8x8xf32>, vector<8x8xf32> -> vector<8x8xf32>
    %428 = arith.addf %422, %427 : vector<8x8xf32>
    %429 = vector.broadcast %298 : vector<1x8xf32> to vector<8x8xf32>
    %430 = arith.addf %428, %429 : vector<8x8xf32>
    %cst_164 = arith.constant 0.000000e+00 : f32
    %431 = vector.broadcast %cst_164 : f32 to vector<8x8xf32>
    %432 = arith.maximumf %430, %431 : vector<8x8xf32>
    %c4_165 = arith.constant 4 : index
    %c0_166 = arith.constant 0 : index
    %c0_167 = arith.constant 0 : index
    %433 = vector.load %arg29[%c4_165, %c0_166, %c0_167] : memref<6x8x8xf32, #tpu.memory_space<vmem>>, vector<1x8x8xf32>
    %434 = vector.shape_cast %433 : vector<1x8x8xf32> to vector<8x8xf32>
    %435 = vector.shape_cast %432 : vector<8x8xf32> to vector<1x8x8xf32>
    tpu.vector_store %arg29[%c4_165, %c0_166, %c0_167], %435 {strides = array<i32>} : memref<6x8x8xf32, #tpu.memory_space<vmem>>, vector<1x8x8xf32>,
    %cst_168 = arith.constant 0.000000e+00 : f32
    %436 = vector.broadcast %cst_168 : f32 to vector<8x8xf32>
    %437 = vector.extract_strided_slice %0 {offsets = [0, 0, 0], sizes = [1, 8, 8], strides = [1, 1, 1]} : vector<2x8x8xf32> to vector<1x8x8xf32>
    %438 = vector.shape_cast %437 : vector<1x8x8xf32> to vector<8x8xf32>
    %439 = vector.extract_strided_slice %331 {offsets = [5, 0, 0], sizes = [1, 8, 8], strides = [1, 1, 1]} : vector<6x8x8xf32> to vector<1x8x8xf32>
    %440 = vector.shape_cast %439 : vector<1x8x8xf32> to vector<8x8xf32>
    %cst_169 = arith.constant dense<0.000000e+00> : vector<8x8xf32>
    %441 = tpu.matmul %438, %440, %cst_169 {dimension_numbers = #tpu.dot_dimension_numbers<[1], [0], [0], [1], [0, 0, 1, 1], [], []>} : vector<8x8xf32>, vector<8x8xf32>, vector<8x8xf32> -> vector<8x8xf32>
    %442 = arith.addf %436, %441 : vector<8x8xf32>
    %443 = vector.extract_strided_slice %0 {offsets = [1, 0, 0], sizes = [1, 8, 8], strides = [1, 1, 1]} : vector<2x8x8xf32> to vector<1x8x8xf32>
    %444 = vector.shape_cast %443 : vector<1x8x8xf32> to vector<8x8xf32>
    %445 = vector.extract_strided_slice %335 {offsets = [5, 0, 0], sizes = [1, 8, 8], strides = [1, 1, 1]} : vector<6x8x8xf32> to vector<1x8x8xf32>
    %446 = vector.shape_cast %445 : vector<1x8x8xf32> to vector<8x8xf32>
    %cst_170 = arith.constant dense<0.000000e+00> : vector<8x8xf32>
    %447 = tpu.matmul %444, %446, %cst_170 {dimension_numbers = #tpu.dot_dimension_numbers<[1], [0], [0], [1], [0, 0, 1, 1], [], []>} : vector<8x8xf32>, vector<8x8xf32>, vector<8x8xf32> -> vector<8x8xf32>
    %448 = arith.addf %442, %447 : vector<8x8xf32>
    %449 = vector.broadcast %298 : vector<1x8xf32> to vector<8x8xf32>
    %450 = arith.addf %448, %449 : vector<8x8xf32>
    %cst_171 = arith.constant 0.000000e+00 : f32
    %451 = vector.broadcast %cst_171 : f32 to vector<8x8xf32>
    %452 = arith.maximumf %450, %451 : vector<8x8xf32>
    %c5_172 = arith.constant 5 : index
    %c0_173 = arith.constant 0 : index
    %c0_174 = arith.constant 0 : index
    %453 = vector.load %arg29[%c5_172, %c0_173, %c0_174] : memref<6x8x8xf32, #tpu.memory_space<vmem>>, vector<1x8x8xf32>
    %454 = vector.shape_cast %453 : vector<1x8x8xf32> to vector<8x8xf32>
    %455 = vector.shape_cast %452 : vector<8x8xf32> to vector<1x8x8xf32>
    tpu.vector_store %arg29[%c5_172, %c0_173, %c0_174], %455 {strides = array<i32>} : memref<6x8x8xf32, #tpu.memory_space<vmem>>, vector<1x8x8xf32>,
    %c0_175 = arith.constant 0 : index
    %c0_176 = arith.constant 0 : index
    %c0_177 = arith.constant 0 : index
    %456 = vector.load %arg29[%c0_175, %c0_176, %c0_177] : memref<6x8x8xf32, #tpu.memory_space<vmem>>, vector<6x8x8xf32>
    %cst_178 = arith.constant 0.000000e+00 : f32
    %457 = vector.broadcast %cst_178 : f32 to vector<32x16xf32>
    %458 = vector.extract_strided_slice %456 {offsets = [0, 0, 0], sizes = [4, 8, 8], strides = [1, 1, 1]} : vector<6x8x8xf32> to vector<4x8x8xf32>
    %459 = vector.shape_cast %458 : vector<4x8x8xf32> to vector<32x8xf32>
    %460 = vector.extract_strided_slice %299 {offsets = [0, 0, 0], sizes = [1, 8, 16], strides = [1, 1, 1]} : vector<3x8x16xf32> to vector<1x8x16xf32>
    %461 = vector.shape_cast %460 : vector<1x8x16xf32> to vector<8x16xf32>
    %cst_179 = arith.constant dense<0.000000e+00> : vector<32x16xf32>
    %462 = tpu.matmul %459, %461, %cst_179 {dimension_numbers = #tpu.dot_dimension_numbers<[1], [0], [0], [1], [0, 0, 1, 1], [], []>} : vector<32x8xf32>, vector<8x16xf32>, vector<32x16xf32> -> vector<32x16xf32>
    %463 = arith.addf %457, %462 : vector<32x16xf32>
    %464 = vector.extract_strided_slice %456 {offsets = [1, 0, 0], sizes = [4, 8, 8], strides = [1, 1, 1]} : vector<6x8x8xf32> to vector<4x8x8xf32>
    %465 = vector.shape_cast %464 : vector<4x8x8xf32> to vector<32x8xf32>
    %466 = vector.extract_strided_slice %299 {offsets = [1, 0, 0], sizes = [1, 8, 16], strides = [1, 1, 1]} : vector<3x8x16xf32> to vector<1x8x16xf32>
    %467 = vector.shape_cast %466 : vector<1x8x16xf32> to vector<8x16xf32>
    %cst_180 = arith.constant dense<0.000000e+00> : vector<32x16xf32>
    %468 = tpu.matmul %465, %467, %cst_180 {dimension_numbers = #tpu.dot_dimension_numbers<[1], [0], [0], [1], [0, 0, 1, 1], [], []>} : vector<32x8xf32>, vector<8x16xf32>, vector<32x16xf32> -> vector<32x16xf32>
    %469 = arith.addf %463, %468 : vector<32x16xf32>
    %470 = vector.extract_strided_slice %456 {offsets = [2, 0, 0], sizes = [4, 8, 8], strides = [1, 1, 1]} : vector<6x8x8xf32> to vector<4x8x8xf32>
    %471 = vector.shape_cast %470 : vector<4x8x8xf32> to vector<32x8xf32>
    %472 = vector.extract_strided_slice %299 {offsets = [2, 0, 0], sizes = [1, 8, 16], strides = [1, 1, 1]} : vector<3x8x16xf32> to vector<1x8x16xf32>
    %473 = vector.shape_cast %472 : vector<1x8x16xf32> to vector<8x16xf32>
    %cst_181 = arith.constant dense<0.000000e+00> : vector<32x16xf32>
    %474 = tpu.matmul %471, %473, %cst_181 {dimension_numbers = #tpu.dot_dimension_numbers<[1], [0], [0], [1], [0, 0, 1, 1], [], []>} : vector<32x8xf32>, vector<8x16xf32>, vector<32x16xf32> -> vector<32x16xf32>
    %475 = arith.addf %469, %474 : vector<32x16xf32>
    %476 = vector.broadcast %300 : vector<1x16xf32> to vector<32x16xf32>
    %477 = arith.addf %475, %476 : vector<32x16xf32>
    %cst_182 = arith.constant 0.000000e+00 : f32
    %478 = vector.broadcast %cst_182 : f32 to vector<32x16xf32>
    %479 = arith.maximumf %477, %478 : vector<32x16xf32>
    %480 = vector.shape_cast %479 : vector<32x16xf32> to vector<4x8x16xf32>
    %cst_183 = arith.constant dense<0.000000e+00> : vector<4x8xf32>
    %481 = vector.multi_reduction <add>, %480, %cst_183 [2] : vector<4x8x16xf32> to vector<4x8xf32>
    %482 = vector.shape_cast %481 : vector<4x8xf32> to vector<4x8x1xf32>
    %cst_184 = arith.constant dense<0.000000e+00> : vector<4x1xf32>
    %483 = vector.multi_reduction <add>, %482, %cst_184 [1] : vector<4x8x1xf32> to vector<4x1xf32>
    %484 = vector.shape_cast %483 : vector<4x1xf32> to vector<4x1x1xf32>
    %cst_185 = arith.constant 1.280000e+02 : f32
    %485 = vector.broadcast %cst_185 : f32 to vector<4x1x1xf32>
    %486 = arith.divf %484, %485 : vector<4x1x1xf32>
    %487 = vector.broadcast %486 : vector<4x1x1xf32> to vector<4x8x16xf32>
    %488 = arith.subf %480, %487 : vector<4x8x16xf32>
    %489 = arith.mulf %488, %488 : vector<4x8x16xf32>
    %cst_186 = arith.constant dense<0.000000e+00> : vector<4x8xf32>
    %490 = vector.multi_reduction <add>, %489, %cst_186 [2] : vector<4x8x16xf32> to vector<4x8xf32>
    %491 = vector.shape_cast %490 : vector<4x8xf32> to vector<4x8x1xf32>
    %cst_187 = arith.constant dense<0.000000e+00> : vector<4x1xf32>
    %492 = vector.multi_reduction <add>, %491, %cst_187 [1] : vector<4x8x1xf32> to vector<4x1xf32>
    %493 = vector.shape_cast %492 : vector<4x1xf32> to vector<4x1x1xf32>
    %cst_188 = arith.constant 1.280000e+02 : f32
    %494 = vector.broadcast %cst_188 : f32 to vector<4x1x1xf32>
    %495 = arith.divf %493, %494 : vector<4x1x1xf32>
    %cst_189 = arith.constant 9.99999974E-6 : f32
    %496 = vector.broadcast %cst_189 : f32 to vector<4x1x1xf32>
    %497 = arith.addf %495, %496 : vector<4x1x1xf32>
    %498 = math.rsqrt %497 : vector<4x1x1xf32>
    %499 = vector.broadcast %498 : vector<4x1x1xf32> to vector<4x8x16xf32>
    %500 = arith.mulf %488, %499 : vector<4x8x16xf32>
    %501 = vector.shape_cast %301 : vector<8x16xf32> to vector<1x8x16xf32>
    %502 = vector.broadcast %501 : vector<1x8x16xf32> to vector<4x8x16xf32>
    %503 = arith.mulf %500, %502 : vector<4x8x16xf32>
    %504 = vector.shape_cast %302 : vector<8x16xf32> to vector<1x8x16xf32>
    %505 = vector.broadcast %504 : vector<1x8x16xf32> to vector<4x8x16xf32>
    %506 = arith.addf %503, %505 : vector<4x8x16xf32>
    %c0_190 = arith.constant 0 : index
    %c0_191 = arith.constant 0 : index
    %c0_192 = arith.constant 0 : index
    %507 = vector.load %arg19[%c0_190, %c0_191, %c0_192] : memref<4x16x32xf32, #tpu.memory_space<vmem>>, vector<4x16x32xf32>
    %c0_193 = arith.constant 0 : index
    %c0_194 = arith.constant 0 : index
    %508 = vector.load %arg20[%c0_193, %c0_194] : memref<1x32xf32, #tpu.memory_space<vmem>>, vector<1x32xf32>
    %c0_195 = arith.constant 0 : index
    %c0_196 = arith.constant 0 : index
    %509 = vector.load %arg21[%c0_195, %c0_196] : memref<8x32xf32, #tpu.memory_space<vmem>>, vector<8x32xf32>
    %c0_197 = arith.constant 0 : index
    %c0_198 = arith.constant 0 : index
    %510 = vector.load %arg22[%c0_197, %c0_198] : memref<8x32xf32, #tpu.memory_space<vmem>>, vector<8x32xf32>
    %c0_199 = arith.constant 0 : index
    %c0_200 = arith.constant 0 : index
    %511 = vector.load %arg23[%c0_199, %c0_200] : memref<32x32xf32, #tpu.memory_space<vmem>>, vector<32x32xf32>
    %c0_201 = arith.constant 0 : index
    %c0_202 = arith.constant 0 : index
    %512 = vector.load %arg24[%c0_201, %c0_202] : memref<1x32xf32, #tpu.memory_space<vmem>>, vector<1x32xf32>
    %c0_203 = arith.constant 0 : index
    %c0_204 = arith.constant 0 : index
    %513 = vector.load %arg25[%c0_203, %c0_204] : memref<32x4xf32, #tpu.memory_space<vmem>>, vector<32x4xf32>
    %c0_205 = arith.constant 0 : index
    %c0_206 = arith.constant 0 : index
    %514 = vector.load %arg26[%c0_205, %c0_206] : memref<1x4xf32, #tpu.memory_space<vmem>>, vector<1x4xf32>
    %cst_207 = arith.constant 0.000000e+00 : f32
    %515 = vector.broadcast %cst_207 : f32 to vector<8x32xf32>
    %516 = vector.extract_strided_slice %506 {offsets = [0, 0, 0], sizes = [1, 8, 16], strides = [1, 1, 1]} : vector<4x8x16xf32> to vector<1x8x16xf32>
    %517 = vector.shape_cast %516 : vector<1x8x16xf32> to vector<8x16xf32>
    %518 = vector.extract_strided_slice %507 {offsets = [0, 0, 0], sizes = [1, 16, 32], strides = [1, 1, 1]} : vector<4x16x32xf32> to vector<1x16x32xf32>
    %519 = vector.shape_cast %518 : vector<1x16x32xf32> to vector<16x32xf32>
    %cst_208 = arith.constant dense<0.000000e+00> : vector<8x32xf32>
    %520 = tpu.matmul %517, %519, %cst_208 {dimension_numbers = #tpu.dot_dimension_numbers<[1], [0], [0], [1], [0, 0, 1, 1], [], []>} : vector<8x16xf32>, vector<16x32xf32>, vector<8x32xf32> -> vector<8x32xf32>
    %521 = arith.addf %515, %520 : vector<8x32xf32>
    %522 = vector.extract_strided_slice %506 {offsets = [1, 0, 0], sizes = [1, 8, 16], strides = [1, 1, 1]} : vector<4x8x16xf32> to vector<1x8x16xf32>
    %523 = vector.shape_cast %522 : vector<1x8x16xf32> to vector<8x16xf32>
    %524 = vector.extract_strided_slice %507 {offsets = [1, 0, 0], sizes = [1, 16, 32], strides = [1, 1, 1]} : vector<4x16x32xf32> to vector<1x16x32xf32>
    %525 = vector.shape_cast %524 : vector<1x16x32xf32> to vector<16x32xf32>
    %cst_209 = arith.constant dense<0.000000e+00> : vector<8x32xf32>
    %526 = tpu.matmul %523, %525, %cst_209 {dimension_numbers = #tpu.dot_dimension_numbers<[1], [0], [0], [1], [0, 0, 1, 1], [], []>} : vector<8x16xf32>, vector<16x32xf32>, vector<8x32xf32> -> vector<8x32xf32>
    %527 = arith.addf %521, %526 : vector<8x32xf32>
    %528 = vector.extract_strided_slice %506 {offsets = [2, 0, 0], sizes = [1, 8, 16], strides = [1, 1, 1]} : vector<4x8x16xf32> to vector<1x8x16xf32>
    %529 = vector.shape_cast %528 : vector<1x8x16xf32> to vector<8x16xf32>
    %530 = vector.extract_strided_slice %507 {offsets = [2, 0, 0], sizes = [1, 16, 32], strides = [1, 1, 1]} : vector<4x16x32xf32> to vector<1x16x32xf32>
    %531 = vector.shape_cast %530 : vector<1x16x32xf32> to vector<16x32xf32>
    %cst_210 = arith.constant dense<0.000000e+00> : vector<8x32xf32>
    %532 = tpu.matmul %529, %531, %cst_210 {dimension_numbers = #tpu.dot_dimension_numbers<[1], [0], [0], [1], [0, 0, 1, 1], [], []>} : vector<8x16xf32>, vector<16x32xf32>, vector<8x32xf32> -> vector<8x32xf32>
    %533 = arith.addf %527, %532 : vector<8x32xf32>
    %534 = vector.extract_strided_slice %506 {offsets = [3, 0, 0], sizes = [1, 8, 16], strides = [1, 1, 1]} : vector<4x8x16xf32> to vector<1x8x16xf32>
    %535 = vector.shape_cast %534 : vector<1x8x16xf32> to vector<8x16xf32>
    %536 = vector.extract_strided_slice %507 {offsets = [3, 0, 0], sizes = [1, 16, 32], strides = [1, 1, 1]} : vector<4x16x32xf32> to vector<1x16x32xf32>
    %537 = vector.shape_cast %536 : vector<1x16x32xf32> to vector<16x32xf32>
    %cst_211 = arith.constant dense<0.000000e+00> : vector<8x32xf32>
    %538 = tpu.matmul %535, %537, %cst_211 {dimension_numbers = #tpu.dot_dimension_numbers<[1], [0], [0], [1], [0, 0, 1, 1], [], []>} : vector<8x16xf32>, vector<16x32xf32>, vector<8x32xf32> -> vector<8x32xf32>
    %539 = arith.addf %533, %538 : vector<8x32xf32>
    %540 = vector.broadcast %508 : vector<1x32xf32> to vector<8x32xf32>
    %541 = arith.addf %539, %540 : vector<8x32xf32>
    %cst_212 = arith.constant 0.000000e+00 : f32
    %542 = vector.broadcast %cst_212 : f32 to vector<8x32xf32>
    %543 = arith.maximumf %541, %542 : vector<8x32xf32>
    %544 = vector.shape_cast %543 : vector<8x32xf32> to vector<1x8x32xf32>
    %cst_213 = arith.constant dense<0.000000e+00> : vector<1xf32>
    %545 = vector.multi_reduction <add>, %544, %cst_213 [1, 2] : vector<1x8x32xf32> to vector<1xf32>
    %546 = vector.shape_cast %545 : vector<1xf32> to vector<1x1x1xf32>
    %547 = vector.extract %546[0, 0, 0] : f32 from vector<1x1x1xf32>
    %cst_214 = arith.constant 2.560000e+02 : f32
    %548 = arith.divf %547, %cst_214 : f32
    %549 = vector.broadcast %548 : f32 to vector<8x32xf32>
    %550 = arith.subf %543, %549 : vector<8x32xf32>
    %551 = arith.mulf %550, %550 : vector<8x32xf32>
    %552 = vector.shape_cast %551 : vector<8x32xf32> to vector<1x8x32xf32>
    %cst_215 = arith.constant dense<0.000000e+00> : vector<1xf32>
    %553 = vector.multi_reduction <add>, %552, %cst_215 [1, 2] : vector<1x8x32xf32> to vector<1xf32>
    %554 = vector.shape_cast %553 : vector<1xf32> to vector<1x1x1xf32>
    %555 = vector.extract %554[0, 0, 0] : f32 from vector<1x1x1xf32>
    %cst_216 = arith.constant 2.560000e+02 : f32
    %556 = arith.divf %555, %cst_216 : f32
    %cst_217 = arith.constant 9.99999974E-6 : f32
    %557 = arith.addf %556, %cst_217 : f32
    %558 = math.rsqrt %557 : f32
    %559 = vector.broadcast %558 : f32 to vector<8x32xf32>
    %560 = arith.mulf %550, %559 : vector<8x32xf32>
    %561 = arith.mulf %560, %509 : vector<8x32xf32>
    %562 = arith.addf %561, %510 : vector<8x32xf32>
    %cst_218 = arith.constant dense<0.000000e+00> : vector<8x32xf32>
    %563 = tpu.matmul %562, %511, %cst_218 {dimension_numbers = #tpu.dot_dimension_numbers<[1], [0], [0], [1], [0, 0, 1, 1], [], []>} : vector<8x32xf32>, vector<32x32xf32>, vector<8x32xf32> -> vector<8x32xf32>
    %564 = vector.broadcast %512 : vector<1x32xf32> to vector<8x32xf32>
    %565 = arith.addf %563, %564 : vector<8x32xf32>
    %cst_219 = arith.constant 0.000000e+00 : f32
    %566 = vector.broadcast %cst_219 : f32 to vector<8x32xf32>
    %567 = arith.maximumf %565, %566 : vector<8x32xf32>
    %cst_220 = arith.constant dense<0.000000e+00> : vector<8x4xf32>
    %568 = tpu.matmul %567, %513, %cst_220 {dimension_numbers = #tpu.dot_dimension_numbers<[1], [0], [0], [1], [0, 0, 1, 1], [], []>} : vector<8x32xf32>, vector<32x4xf32>, vector<8x4xf32> -> vector<8x4xf32>
    %569 = vector.broadcast %514 : vector<1x4xf32> to vector<8x4xf32>
    %570 = arith.addf %568, %569 : vector<8x4xf32>
    %c0_221 = arith.constant 0 : index
    %c0_222 = arith.constant 0 : index
    %c0_223 = arith.constant 0 : index
    %571 = vector.load %arg27[%c0_221, %c0_222, %c0_223] : memref<1x8x4xf32, #tpu.memory_space<vmem>>, vector<1x8x4xf32>
    %572 = vector.shape_cast %571 : vector<1x8x4xf32> to vector<8x4xf32>
    %573 = vector.shape_cast %570 : vector<8x4xf32> to vector<1x8x4xf32>
    tpu.vector_store %arg27[%c0_221, %c0_222, %c0_223], %573 {strides = array<i32>} : memref<1x8x4xf32, #tpu.memory_space<vmem>>, vector<1x8x4xf32>,
    return
  }
  func.func @transform_0(%arg0: i32) -> (i32, i32, i32, i32) {
    %c0_i32 = arith.constant 0 : i32
    %c0_i32_0 = arith.constant 0 : i32
    %c0_i32_1 = arith.constant 0 : i32
    %c0_i32_2 = arith.constant 0 : i32
    return %arg0, %c0_i32, %c0_i32_0, %c0_i32_1 : i32, i32, i32, i32
  }
  func.func @transform_1(%arg0: i32) -> (i32, i32, i32) {
    %c0_i32 = arith.constant 0 : i32
    %c0_i32_0 = arith.constant 0 : i32
    %c0_i32_1 = arith.constant 0 : i32
    %c0_i32_2 = arith.constant 0 : i32
    return %c0_i32, %c0_i32_0, %c0_i32_1 : i32, i32, i32
  }
  func.func @transform_2(%arg0: i32) -> (i32, i32, i32) {
    %c0_i32 = arith.constant 0 : i32
    %c0_i32_0 = arith.constant 0 : i32
    %c0_i32_1 = arith.constant 0 : i32
    %c0_i32_2 = arith.constant 0 : i32
    return %c0_i32, %c0_i32_0, %c0_i32_1 : i32, i32, i32
  }
  func.func @transform_3(%arg0: i32) -> (i32, i32) {
    %c0_i32 = arith.constant 0 : i32
    %c0_i32_0 = arith.constant 0 : i32
    %c0_i32_1 = arith.constant 0 : i32
    return %c0_i32, %c0_i32_0 : i32, i32
  }
  func.func @transform_4(%arg0: i32) -> (i32, i32, i32) {
    %c0_i32 = arith.constant 0 : i32
    %c0_i32_0 = arith.constant 0 : i32
    %c0_i32_1 = arith.constant 0 : i32
    %c0_i32_2 = arith.constant 0 : i32
    return %c0_i32, %c0_i32_0, %c0_i32_1 : i32, i32, i32
  }
  func.func @transform_5(%arg0: i32) -> (i32, i32) {
    %c0_i32 = arith.constant 0 : i32
    %c0_i32_0 = arith.constant 0 : i32
    %c0_i32_1 = arith.constant 0 : i32
    return %c0_i32, %c0_i32_0 : i32, i32
  }
  func.func @transform_6(%arg0: i32) -> (i32, i32, i32) {
    %c0_i32 = arith.constant 0 : i32
    %c0_i32_0 = arith.constant 0 : i32
    %c0_i32_1 = arith.constant 0 : i32
    %c0_i32_2 = arith.constant 0 : i32
    return %c0_i32, %c0_i32_0, %c0_i32_1 : i32, i32, i32
  }
  func.func @transform_7(%arg0: i32) -> (i32, i32) {
    %c0_i32 = arith.constant 0 : i32
    %c0_i32_0 = arith.constant 0 : i32
    %c0_i32_1 = arith.constant 0 : i32
    return %c0_i32, %c0_i32_0 : i32, i32
  }
  func.func @transform_8(%arg0: i32) -> (i32, i32) {
    %c0_i32 = arith.constant 0 : i32
    %c0_i32_0 = arith.constant 0 : i32
    %c0_i32_1 = arith.constant 0 : i32
    return %c0_i32, %c0_i32_0 : i32, i32
  }
  func.func @transform_9(%arg0: i32) -> (i32, i32) {
    %c0_i32 = arith.constant 0 : i32
    %c0_i32_0 = arith.constant 0 : i32
    %c0_i32_1 = arith.constant 0 : i32
    return %c0_i32, %c0_i32_0 : i32, i32
  }
  func.func @transform_10(%arg0: i32) -> (i32, i32, i32) {
    %c0_i32 = arith.constant 0 : i32
    %c0_i32_0 = arith.constant 0 : i32
    %c0_i32_1 = arith.constant 0 : i32
    %c0_i32_2 = arith.constant 0 : i32
    return %c0_i32, %c0_i32_0, %c0_i32_1 : i32, i32, i32
  }
  func.func @transform_11(%arg0: i32) -> (i32, i32) {
    %c0_i32 = arith.constant 0 : i32
    %c0_i32_0 = arith.constant 0 : i32
    %c0_i32_1 = arith.constant 0 : i32
    return %c0_i32, %c0_i32_0 : i32, i32
  }
  func.func @transform_12(%arg0: i32) -> (i32, i32, i32) {
    %c0_i32 = arith.constant 0 : i32
    %c0_i32_0 = arith.constant 0 : i32
    %c0_i32_1 = arith.constant 0 : i32
    %c0_i32_2 = arith.constant 0 : i32
    return %c0_i32, %c0_i32_0, %c0_i32_1 : i32, i32, i32
  }
  func.func @transform_13(%arg0: i32) -> (i32, i32) {
    %c0_i32 = arith.constant 0 : i32
    %c0_i32_0 = arith.constant 0 : i32
    %c0_i32_1 = arith.constant 0 : i32
    return %c0_i32, %c0_i32_0 : i32, i32
  }
  func.func @transform_14(%arg0: i32) -> (i32, i32, i32) {
    %c0_i32 = arith.constant 0 : i32
    %c0_i32_0 = arith.constant 0 : i32
    %c0_i32_1 = arith.constant 0 : i32
    %c0_i32_2 = arith.constant 0 : i32
    return %c0_i32, %c0_i32_0, %c0_i32_1 : i32, i32, i32
  }
  func.func @transform_15(%arg0: i32) -> (i32, i32) {
    %c0_i32 = arith.constant 0 : i32
    %c0_i32_0 = arith.constant 0 : i32
    %c0_i32_1 = arith.constant 0 : i32
    return %c0_i32, %c0_i32_0 : i32, i32
  }
  func.func @transform_16(%arg0: i32) -> (i32, i32) {
    %c0_i32 = arith.constant 0 : i32
    %c0_i32_0 = arith.constant 0 : i32
    %c0_i32_1 = arith.constant 0 : i32
    return %c0_i32, %c0_i32_0 : i32, i32
  }
  func.func @transform_17(%arg0: i32) -> (i32, i32) {
    %c0_i32 = arith.constant 0 : i32
    %c0_i32_0 = arith.constant 0 : i32
    %c0_i32_1 = arith.constant 0 : i32
    return %c0_i32, %c0_i32_0 : i32, i32
  }
  func.func @transform_18(%arg0: i32) -> (i32, i32, i32) {
    %c0_i32 = arith.constant 0 : i32
    %c0_i32_0 = arith.constant 0 : i32
    %c0_i32_1 = arith.constant 0 : i32
    %c0_i32_2 = arith.constant 0 : i32
    return %c0_i32, %c0_i32_0, %c0_i32_1 : i32, i32, i32
  }
  func.func @transform_19(%arg0: i32) -> (i32, i32) {
    %c0_i32 = arith.constant 0 : i32
    %c0_i32_0 = arith.constant 0 : i32
    %c0_i32_1 = arith.constant 0 : i32
    return %c0_i32, %c0_i32_0 : i32, i32
  }
  func.func @transform_20(%arg0: i32) -> (i32, i32) {
    %c0_i32 = arith.constant 0 : i32
    %c0_i32_0 = arith.constant 0 : i32
    %c0_i32_1 = arith.constant 0 : i32
    return %c0_i32, %c0_i32_0 : i32, i32
  }
  func.func @transform_21(%arg0: i32) -> (i32, i32) {
    %c0_i32 = arith.constant 0 : i32
    %c0_i32_0 = arith.constant 0 : i32
    %c0_i32_1 = arith.constant 0 : i32
    return %c0_i32, %c0_i32_0 : i32, i32
  }
  func.func @transform_22(%arg0: i32) -> (i32, i32) {
    %c0_i32 = arith.constant 0 : i32
    %c0_i32_0 = arith.constant 0 : i32
    %c0_i32_1 = arith.constant 0 : i32
    return %c0_i32, %c0_i32_0 : i32, i32
  }
  func.func @transform_23(%arg0: i32) -> (i32, i32) {
    %c0_i32 = arith.constant 0 : i32
    %c0_i32_0 = arith.constant 0 : i32
    %c0_i32_1 = arith.constant 0 : i32
    return %c0_i32, %c0_i32_0 : i32, i32
  }
  func.func @transform_24(%arg0: i32) -> (i32, i32) {
    %c0_i32 = arith.constant 0 : i32
    %c0_i32_0 = arith.constant 0 : i32
    %c0_i32_1 = arith.constant 0 : i32
    return %c0_i32, %c0_i32_0 : i32, i32
  }
  func.func @transform_25(%arg0: i32) -> (i32, i32) {
    %c0_i32 = arith.constant 0 : i32
    %c0_i32_0 = arith.constant 0 : i32
    %c0_i32_1 = arith.constant 0 : i32
    return %c0_i32, %c0_i32_0 : i32, i32
  }
  func.func @transform_26(%arg0: i32) -> (i32, i32, i32) {
    %c0_i32 = arith.constant 0 : i32
    %c0_i32_0 = arith.constant 0 : i32
    %c0_i32_1 = arith.constant 0 : i32
    return %arg0, %c0_i32, %c0_i32_0 : i32, i32, i32
  }
}

</mosaic_0001>

<bundles_post_ra>
// kernel: stgcn_forward.1
= control target key start
LH: loop header
LB: loop body
LE: loop exit
PB: predicated region body
PF: predicated region fallthrough
CT: control target
= control target key end

     0   :  { %s7100_s27 = smov 0   ;;  %s7783_s0 = inlined_call_operand.vmem [shape: f32[2,12,8,2], index: 0, kind: input, shape index: {}]   ;;  %s7784_s1 = inlined_call_operand.vmem [shape: f32[2,8,8], index: 1, kind: input, shape index: {}]   ;;  %s7785_s2 = inlined_call_operand.vmem [shape: f32[3,2,16], index: 2, kind: input, shape index: {}]   ;;  %s7786_s3 = inlined_call_operand.vmem [shape: f32[1,16], index: 3, kind: input, shape index: {}]   ;;  %s7787_s4 = inlined_call_operand.vmem [shape: f32[2,16,8], index: 4, kind: input, shape index: {}]   ;;  %s7788_s5 = inlined_call_operand.vmem [shape: f32[1,8], index: 5, kind: input, shape index: {}]   ;;  %s7789_s6 = inlined_call_operand.vmem [shape: f32[3,8,16], index: 6, kind: input, shape index: {}]   ;;  %s7790_s7 = inlined_call_operand.vmem [shape: f32[1,16], index: 7, kind: input, shape index: {}]   ;;  %s7791_s8 = inlined_call_operand.vmem [shape: f32[8,16], index: 8, kind: input, shape index: {}]   ;;  %s7792_s9 = inlined_call_operand.vmem [shape: f32[8,16], index: 9, kind: input, shape index: {}]   ;;  %s7793_s10 = inlined_call_operand.vmem [shape: f32[3,16,16], index: 10, kind: input, shape index: {}]   ;;  %s7794_s11 = inlined_call_operand.vmem [shape: f32[1,16], index: 11, kind: input, shape index: {}]   ;;  %s7795_s12 = inlined_call_operand.vmem [shape: f32[2,16,8], index: 12, kind: input, shape index: {}]   ;;  %s7796_s13 = inlined_call_operand.vmem [shape: f32[1,8], index: 13, kind: input, shape index: {}]   ;;  %s7797_s14 = inlined_call_operand.vmem [shape: f32[3,8,16], index: 14, kind: input, shape index: {}]   ;;  %s7798_s15 = inlined_call_operand.vmem [shape: f32[1,16], index: 15, kind: input, shape index: {}]   ;;  %s7799_s16 = inlined_call_operand.vmem [shape: f32[8,16], index: 16, kind: input, shape index: {}]   ;;  %s7800_s17 = inlined_call_operand.vmem [shape: f32[8,16], index: 17, kind: input, shape index: {}]   ;;  %s7801_s18 = inlined_call_operand.vmem [shape: f32[4,16,32], index: 18, kind: input, shape index: {}]   ;;  %s7802_s19 = inlined_call_operand.vmem [shape: f32[1,32], index: 19, kind: input, shape index: {}]   ;;  %s7803_s20 = inlined_call_operand.vmem [shape: f32[8,32], index: 20, kind: input, shape index: {}]   ;;  %s7804_s21 = inlined_call_operand.vmem [shape: f32[8,32], index: 21, kind: input, shape index: {}]   ;;  %s7805_s22 = inlined_call_operand.vmem [shape: f32[32,32], index: 22, kind: input, shape index: {}]   ;;  %s7806_s23 = inlined_call_operand.vmem [shape: f32[1,32], index: 23, kind: input, shape index: {}]   ;;  %s7807_s24 = inlined_call_operand.vmem [shape: f32[32,4], index: 24, kind: input, shape index: {}]   ;;  %s7808_s25 = inlined_call_operand.vmem [shape: f32[1,4], index: 25, kind: input, shape index: {}]   ;;  %s7809_s26 = inlined_call_operand.vmem [shape: f32[2,8,4], index: 26, kind: output, shape index: {}]  }
   0x1   :  { %7816 = sst [smem:[#allocation4_spill]] %s7783_s0 }
   0x2   :  { %7817 = sst [smem:[#allocation5_spill]] %s7784_s1 }
   0x3   :  { %7818 = sst [smem:[#allocation6_spill]] %s7785_s2 }
   0x4   :  { %7819 = sst [smem:[#allocation7_spill]] %s7786_s3 }
   0x5   :  { %7820 = sst [smem:[#allocation8_spill]] %s7787_s4 }
   0x6   :  { %7821 = sst [smem:[#allocation9_spill]] %s7788_s5 }
   0x7   :  { %7822 = sst [smem:[#allocation10_spill]] %s7789_s6 }
   0x8   :  { %7823 = sst [smem:[#allocation11_spill]] %s7790_s7 }
   0x9   :  { %7824 = sst [smem:[#allocation12_spill]] %s7791_s8 }
   0xa   :  { %7825 = sst [smem:[#allocation13_spill]] %s7792_s9 }
   0xb   :  { %7826 = sst [smem:[#allocation14_spill]] %s7793_s10 }
   0xc LB: > { %s5970_s3 = sadd.s32 4294967295, %s6960_s27   ;;  %p5974_p0 = scmp.ge.s32.totalorder %s6960_s27, 1  ;;  %s6960_s27 = sphi %s7100_s27, %s36_s27  }
   0xd   : > { %p712_p1 = scmp.lt.s32.totalorder %s6960_s27, 3 }
   0xf   : > { %p713_p2 = pnand %p5974_p0, %p712_p1 }
  0x10   : > { %s7827_s8 = sld [smem:[#allocation6_spill]] (!%p713_p2)  ;;  %vm850_vm0 = vcmask (!%p713_p2), 1041408   ;;  %p781_p3 = scmp.lt.s32.totalorder (!%p713_p2), %s5970_s3, 1  ;;  %vm819_vm1 = vcmask (!%p713_p2), 15360   ;;  %vm1247_vm2 = vcmask (!%p713_p2), 130048   ;;  %v6962_v52 = vmov (!%p713_p2), 0.0  }
  0x11   : > { %716 = sbr.rel (%p713_p2) target bundleno = 3785 (0xec9), region = 124  ;;  %s7828_s2 = sld [smem:[#allocation4_spill]] (!%p713_p2)  ;;  %vm6963_vm3 = vmmov (!%p713_p2), 0   ;;  %vm1508_vm4 = vcmask (!%p713_p2), 64512   ;;  %vm5718_vm5 = vcmask (!%p713_p2), 261120   ;;  %vm5915_vm6 = vcmask (!%p713_p2), 31744  }
  0x12   : > { %s7829_s28 = sld [smem:[#allocation8_spill]] (!%p713_p2)  ;;  %s7830_s6 = sld [smem:[#allocation7_spill]] (!%p713_p2) }
  0x13   : > { %s7831_s4 = sld [smem:[#allocation5_spill]] (!%p713_p2)  ;;  %s7833_s7 = sld [smem:[#allocation9_spill]] (!%p713_p2) }
  0x14   : > { %s7835_s1 = sld [smem:[#allocation14_spill]] (!%p713_p2)  ;;  %s7837_s9 = sld [smem:[#allocation13_spill]] (!%p713_p2) }
  0x16   : > { %v805_v0 = vld [vmem:[%s7827_s8 + $0x2] sm:$0x3] (!%p713_p2)  ;;  %v804_v1 = vld [vmem:[%s7827_s8] sm:$0x3] (!%p713_p2)  ;;  %v806_v5 = vld [vmem:[%s7827_s8 + $0x4] sm:$0x3] (!%p713_p2) }
  0x17   : > { %6370 = vmatprep.subr.msk.mxu0 (!%p713_p2), %vm850_vm0, %v805_v0 }
  0x18   : > { %6371 = vmatpush3.msk.msra.mxu0 %vm850_vm0, %v805_v0  ;;  %s7839_s3 = smov (!%p781_p3, %s5970_s3), 1  ;;  %v808_v15 = vld [vmem:[%s7829_s28] sm:$0xff]  ;;  %v809_v16 = vld [vmem:[%s7829_s28 + $0x8] sm:$0xff]  ;;  %v810_v18 = vld [vmem:[%s7829_s28 + $0x10] sm:$0xff] }
  0x19   : > { %6387 = vmatprep.subr.msk.mxu0 %vm850_vm0, %v804_v1  ;;  %s6908_s0 = smul.u32 96, %s7839_s3  ;;  %v6800_v17 = vpack.c.bf16 %v809_v16, %v808_v15  ;;  %v811_v19 = vld [vmem:[%s7829_s28 + $0x18] sm:$0xff]  ;;  %v6010_v21 = vld [vmem:[%s7830_s6] ss:$0 sm:$0xff]  ;;  %s5976_s29 = sshll.u32 %s7839_s3, 3 }
  0x1a   : > { %v6804_v20 = vpack.c.bf16 %v811_v19, %v810_v18  ;;  %v7217_v56 = vld [vmem:[%s7831_s4] sm:$0xff] }
  0x1b   : > { %s7123_s5 = scalar_lea.vmem %s7828_s2, %s6908_s0  ;;  %6801 = vmatprep.subr.bf16.mxu1 %v6800_v17  ;;  %s7832_s2 = sld [smem:[#allocation10_spill]] }
  0x1c   : > { %v793_v2 = vld [vmem:[%s7123_s5 + $0x8] sm:$0xff]  ;;  %v794_v3 = vld [vmem:[%s7123_s5 + $0x10] sm:$0xff]  ;;  %v795_v4 = vld [vmem:[%s7123_s5 + $0x18] sm:$0xff]  ;;  %6803 = vmatpush3.bf16.msra.mxu1 %v6800_v17 }
  0x1d   : > { %6372 = vmatprep.mubr.msk.f32.mxu0 %vm819_vm1, %v793_v2  ;;  %v796_v6 = vld [vmem:[%s7123_s5 + $0x20] sm:$0xff]  ;;  %v797_v7 = vld [vmem:[%s7123_s5 + $0x28] sm:$0xff]  ;;  %v798_v8 = vld [vmem:[%s7123_s5 + $0x30] sm:$0xff]  ;;  %6805 = vmatprep.subr.bf16.mxu1 %v6804_v20 }
  0x1e   : > { %6373 = vmatmul.mubr.msk.f32.vlgmr.msra.gmra.mrb[0].mxu0 %vm819_vm1, %v794_v3  ;;  %v799_v9 = vld [vmem:[%s7123_s5 + $0x38] sm:$0xff]  ;;  %v800_v10 = vld [vmem:[%s7123_s5 + $0x40] sm:$0xff]  ;;  %v801_v11 = vld [vmem:[%s7123_s5 + $0x48] sm:$0xff] }
  0x1f   : > { %6375 = vmatprep.mubr.msk.f32.mxu0 %vm819_vm1, %v795_v4  ;;  %6388 = vmatpush3.msk.msra.mxu0 %vm850_vm0, %v804_v1  ;;  %v802_v12 = vld [vmem:[%s7123_s5 + $0x50] sm:$0xff]  ;;  %v792_v13 = vld [vmem:[%s7123_s5] sm:$0xff]  ;;  %v803_v14 = vld [vmem:[%s7123_s5 + $0x58] sm:$0xff]  ;;  %s7834_s5 = sld [smem:[#allocation11_spill]] }
  0x20   : > { %6404 = vmatprep.subr.msk.mxu0 %vm850_vm0, %v806_v5  ;;  %v7242_v1 = vld [vmem:[%s7831_s4 + $0x8] sm:$0xff] }
  0x22   : > { %6376 = vmatmul.mubr.msk.f32.gmra.mrb[2].mxu0 %vm819_vm1, %v796_v6 }
  0x23   : > { %6378 = vmatprep.mubr.msk.f32.mxu0 %vm819_vm1, %v797_v7 }
  0x26   : > { %6379 = vmatmul.mubr.msk.f32.gmra.mrb[4].mxu0 %vm819_vm1, %v798_v8 }
  0x27   : > { %6381 = vmatprep.mubr.msk.f32.mxu0 %vm819_vm1, %v799_v9 }
  0x2a   : > { %6382 = vmatmul.mubr.msk.f32.gmra.mrb[6].mxu0 %vm819_vm1, %v800_v10 }
  0x2b   : > { %6384 = vmatprep.mubr.msk.f32.mxu0 %vm819_vm1, %v801_v11 }
  0x2e   : > { %6385 = vmatmul.mubr.msk.f32.gmra.mrb[8].mxu0 %vm819_vm1, %v802_v12 }
  0x2f   : > { %6389 = vmatprep.mubr.msk.f32.mxu0 %vm819_vm1, %v792_v13 }
  0x32   : > { %6390 = vmatmul.mubr.msk.f32.vlgmr.msra.gmra.mrb[0].mxu0 %vm819_vm1, %v793_v2 }
  0x33   : > { %6392 = vmatprep.mubr.msk.f32.mxu0 %vm819_vm1, %v794_v3  ;;  %6405 = vmatpush3.msk.msra.mxu0 %vm850_vm0, %v806_v5 }
  0x34   : > { %6484 = vmatprep.subr.mxu0 %v6962_v52 }
  0x36   : > { %6393 = vmatmul.mubr.msk.f32.gmra.mrb[2].mxu0 %vm819_vm1, %v795_v4 }
  0x37   : > { %6395 = vmatprep.mubr.msk.f32.mxu0 %vm819_vm1, %v796_v6 }
  0x3a   : > { %6396 = vmatmul.mubr.msk.f32.gmra.mrb[4].mxu0 %vm819_vm1, %v797_v7 }
  0x3b   : > { %6398 = vmatprep.mubr.msk.f32.mxu0 %vm819_vm1, %v798_v8 }
  0x3e   : > { %6399 = vmatmul.mubr.msk.f32.gmra.mrb[6].mxu0 %vm819_vm1, %v799_v9 }
  0x3f   : > { %6401 = vmatprep.mubr.msk.f32.mxu0 %vm819_vm1, %v800_v10 }
  0x42   : > { %6402 = vmatmul.mubr.msk.f32.gmra.mrb[8].mxu0 %vm819_vm1, %v801_v11 }
  0x43   : > { %6406 = vmatprep.mubr.msk.f32.mxu0 %vm819_vm1, %v794_v3 }
  0x46   : > { %6407 = vmatmul.mubr.msk.f32.vlgmr.msra.gmra.mrb[0].mxu0 %vm819_vm1, %v795_v4 }
  0x47   : > { %6409 = vmatprep.mubr.msk.f32.mxu0 %vm819_vm1, %v796_v6 }
  0x4a   : > { %6410 = vmatmul.mubr.msk.f32.gmra.mrb[2].mxu0 %vm819_vm1, %v797_v7 }
  0x4b   : > { %6412 = vmatprep.mubr.msk.f32.mxu0 %vm819_vm1, %v798_v8 }
  0x4e   : > { %6413 = vmatmul.mubr.msk.f32.gmra.mrb[4].mxu0 %vm819_vm1, %v799_v9 }
  0x4f   : > { %6415 = vmatprep.mubr.msk.f32.mxu0 %vm819_vm1, %v800_v10 }
  0x52   : > { %6416 = vmatmul.mubr.msk.f32.gmra.mrb[6].mxu0 %vm819_vm1, %v801_v11  ;;  %v814_v11 = vld [vmem:[%s7832_s2 + $0x8] sm:$0xff] }
  0x53   : > { %6418 = vmatprep.mubr.msk.f32.mxu0 %vm819_vm1, %v802_v12  ;;  %v813_v12 = vld [vmem:[%s7832_s2] sm:$0xff] }
  0x56   : > { %6419 = vmatmul.mubr.msk.f32.gmra.mrb[8].mxu0 %vm819_vm1, %v803_v14 }
  0x57   : > { %6486 = vmatprep.mubr.msk.f32.mxu0 %vm6963_vm3, %v6962_v52 }
 0x119   : > { %v6408_v22 = vpop.f32.mrb[0].mxu0 }
 0x11a   : > { %v1228_v23 = vadd.f32 %v6408_v22, %v6010_v21  ;;  %v1162_v24 = vpop.f32.mrb[1].mxu0 }
 0x11b   : > { %v1227_v25 = vadd.f32 %v6010_v21, %v1162_v24 }
 0x11c   : > { %v1238_v28 = vmax.f32 %v1228_v23, 0.0 }
 0x11d   : > { %v1237_v26 = vmax.f32 %v1227_v25, 0.0  ;;  %v6411_v27 = vpop.f32.mrb[2].mxu0  ;;  %v7327_v25 = vld [vmem:[%s7833_s7] ss:$0 sm:$0xff]  ;;  %s7836_s7 = sld [smem:[#allocation12_spill]] }
 0x11e   : > { %v1230_v29 = vadd.f32 %v6411_v27, %v6010_v21  ;;  %v1172_v30 = vpop.f32.mrb[3].mxu0 }
 0x11f   : > { %v1229_v31 = vadd.f32 %v6010_v21, %v1172_v30  ;;  %6425 = vmatprep.mubr.msk.f32.mxu1 %vm1247_vm2, %v1237_v26 }
 0x120   : > { %6426 = vmatmul.mubr.msk.f32.vlgmr.msra.gmra.mrb[0].mxu1 %vm1247_vm2, %v1238_v28  ;;  %v1240_v34 = vmax.f32 %v1230_v29, 0.0 }
 0x121   : > { %v1239_v32 = vmax.f32 %v1229_v31, 0.0  ;;  %v6414_v33 = vpop.f32.mrb[4].mxu0  ;;  %6807 = vmatpush3.bf16.msra.mxu1 %v6804_v20 }
 0x122   : > { %v1232_v35 = vadd.f32 %v6414_v33, %v6010_v21  ;;  %v1182_v36 = vpop.f32.mrb[5].mxu0  ;;  %6459 = vmatprep.subr.mxu1 %v6962_v52 }
 0x123   : > { %v1231_v37 = vadd.f32 %v6010_v21, %v1182_v36  ;;  %6428 = vmatprep.mubr.msk.f32.mxu1 %vm1247_vm2, %v1239_v32 }
 0x124   : > { %6429 = vmatmul.mubr.msk.f32.gmra.mrb[2].mxu1 %vm1247_vm2, %v1240_v34  ;;  %v1242_v40 = vmax.f32 %v1232_v35, 0.0 }
 0x125   : > { %v1241_v38 = vmax.f32 %v1231_v37, 0.0  ;;  %v6417_v39 = vpop.f32.mrb[6].mxu0 }
 0x126   : > { %v1234_v41 = vadd.f32 %v6417_v39, %v6010_v21  ;;  %v1192_v42 = vpop.f32.mrb[7].mxu0 }
 0x127   : > { %v1233_v43 = vadd.f32 %v6010_v21, %v1192_v42  ;;  %6431 = vmatprep.mubr.msk.f32.mxu1 %vm1247_vm2, %v1241_v38 }
 0x128   : > { %6432 = vmatmul.mubr.msk.f32.gmra.mrb[4].mxu1 %vm1247_vm2, %v1242_v40  ;;  %v1244_v46 = vmax.f32 %v1234_v41, 0.0 }
 0x129   : > { %v1243_v44 = vmax.f32 %v1233_v43, 0.0  ;;  %v6420_v45 = vpop.f32.mrb[8].mxu0 }
 0x12a   : > { %v1236_v47 = vadd.f32 %v6420_v45, %v6010_v21  ;;  %v1202_v48 = vpop.f32.mrb[9].mxu0 }
 0x12b   : > { %v1235_v49 = vadd.f32 %v6010_v21, %v1202_v48  ;;  %6434 = vmatprep.mubr.msk.f32.mxu1 %vm1247_vm2, %v1243_v44 }
 0x12c   : > { %6435 = vmatmul.mubr.msk.f32.gmra.mrb[6].mxu1 %vm1247_vm2, %v1244_v46  ;;  %v1246_v51 = vmax.f32 %v1236_v47, 0.0 }
 0x12d   : > { %v1245_v50 = vmax.f32 %v1235_v49, 0.0 }
 0x12f   : > { %6437 = vmatprep.mubr.msk.f32.mxu1 %vm1247_vm2, %v1245_v50 }
 0x130   : > { %6438 = vmatmul.mubr.msk.f32.gmra.mrb[8].mxu1 %vm1247_vm2, %v1246_v51 }
 0x131   : > { %6444 = vmatprep.mubr.msk.f32.mxu1 %vm1247_vm2, %v1237_v26 }
 0x134   : > { %6445 = vmatmul.mubr.msk.f32.vlgmr.msra.gmra.mrb[10].mxu1 %vm1247_vm2, %v1238_v28 }
 0x135   : > { %6447 = vmatprep.mubr.msk.f32.mxu1 %vm1247_vm2, %v1239_v32 }
 0x138   : > { %6448 = vmatmul.mubr.msk.f32.gmra.mrb[12].mxu1 %vm1247_vm2, %v1240_v34 }
 0x139   : > { %6450 = vmatprep.mubr.msk.f32.mxu1 %vm1247_vm2, %v1241_v38 }
 0x13c   : > { %6451 = vmatmul.mubr.msk.f32.gmra.mrb[14].mxu1 %vm1247_vm2, %v1242_v40 }
 0x13d   : > { %6453 = vmatprep.mubr.msk.f32.mxu1 %vm1247_vm2, %v1243_v44 }
 0x140   : > { %6454 = vmatmul.mubr.msk.f32.gmra.mrb[16].mxu1 %vm1247_vm2, %v1244_v46 }
 0x141   : > { %6456 = vmatprep.mubr.msk.f32.mxu1 %vm1247_vm2, %v1245_v50 }
 0x144   : > { %6457 = vmatmul.mubr.msk.f32.gmra.mrb[18].mxu1 %vm1247_vm2, %v1246_v51 }
 0x145   : > { %6461 = vmatprep.mubr.msk.f32.mxu1 %vm6963_vm3, %v6962_v52 }
 0x1f3   : > { %v6427_v53 = vpop.f32.mrb[0].mxu1 }
 0x1f4   : > { %v1344_v54 = vpop.f32.mrb[1].mxu1 }
 0x1f7   : > { %v6430_v55 = vpop.f32.mrb[2].mxu1 }
 0x1f8   : > { %v1354_v57 = vpop.f32.mrb[3].mxu1 }
 0x1f9   : > { %6485 = vmatpush3.msra.mxu0 %v1354_v57 }
 0x1fa   : > { %6487 = vmatmul.mubr.msk.f32.vlgmr.msra.gmra.mrb[10].mxu0 %vm1508_vm4, %v7217_v56  ;;  %6494 = vmatprep.subr.mxu0 %v6962_v52 }
 0x1fb   : > { %v6433_v58 = vpop.f32.mrb[4].mxu1  ;;  %6495 = vmatpush3.msra.mxu0 %v6430_v55  ;;  %6496 = vmatprep.mubr.msk.f32.mxu0 %vm6963_vm3, %v6962_v52 }
 0x1fc   : > { %v1364_v59 = vpop.f32.mrb[5].mxu1  ;;  %6504 = vmatprep.subr.mxu0 %v6962_v52 }
 0x1fe   : > { %6497 = vmatmul.mubr.msk.f32.vlgmr.msra.gmra.mrb[12].mxu0 %vm1508_vm4, %v7217_v56 }
 0x1ff   : > { %6505 = vmatpush3.msra.mxu0 %v1364_v59  ;;  %v6436_v60 = vpop.f32.mrb[6].mxu1  ;;  %6506 = vmatprep.mubr.msk.f32.mxu0 %vm6963_vm3, %v6962_v52 }
 0x200   : > { %v1374_v61 = vpop.f32.mrb[7].mxu1  ;;  %6514 = vmatprep.subr.mxu0 %v6962_v52 }
 0x202   : > { %6507 = vmatmul.mubr.msk.f32.vlgmr.msra.gmra.mrb[14].mxu0 %vm1508_vm4, %v7217_v56 }
 0x203   : > { %6515 = vmatpush3.msra.mxu0 %v6433_v58  ;;  %v6439_v62 = vpop.f32.mrb[8].mxu1  ;;  %6516 = vmatprep.mubr.msk.f32.mxu0 %vm6963_vm3, %v6962_v52 }
 0x204   : > { %v1384_v63 = vpop.f32.mrb[9].mxu1  ;;  %6524 = vmatprep.subr.mxu0 %v6962_v52 }
 0x206   : > { %6517 = vmatmul.mubr.msk.f32.vlgmr.msra.gmra.mrb[16].mxu0 %vm1508_vm4, %v7217_v56 }
 0x207   : > { %6525 = vmatpush3.msra.mxu0 %v1374_v61  ;;  %v6446_v0 = vpop.f32.mrb[10].mxu1  ;;  %6526 = vmatprep.mubr.msk.f32.mxu0 %vm6963_vm3, %v6962_v52 }
 0x208   : > { %v1459_v2 = vpop.f32.mrb[11].mxu1  ;;  %6534 = vmatprep.subr.mxu0 %v6962_v52 }
 0x209   : > { %6460 = vmatpush3.msra.mxu1 %v1459_v2 }
 0x20a   : > { %6462 = vmatmul.mubr.msk.f32.vlgmr.msra.gmra.mrb[20].mxu1 %vm1508_vm4, %v7242_v1  ;;  %6464 = vmatprep.subr.mxu1 %v6962_v52 }
 0x20b   : > { %6527 = vmatmul.mubr.msk.f32.vlgmr.msra.gmra.mrb[18].mxu0 %vm1508_vm4, %v7217_v56  ;;  %v6449_v3 = vpop.f32.mrb[12].mxu1  ;;  %6465 = vmatpush3.msra.mxu1 %v1344_v54 }
 0x20c   : > { %6535 = vmatpush3.msra.mxu0 %v6436_v60  ;;  %v1469_v4 = vpop.f32.mrb[13].mxu1  ;;  %6466 = vmatprep.mubr.msk.f32.mxu1 %vm6963_vm3, %v6962_v52 }
 0x20d   : > { %6469 = vmatprep.subr.mxu1 %v6962_v52  ;;  %6536 = vmatprep.mubr.msk.f32.mxu0 %vm6963_vm3, %v6962_v52 }
 0x20e   : > { %6544 = vmatprep.subr.mxu0 %v6962_v52  ;;  %6467 = vmatmul.mubr.msk.f32.vlgmr.msra.gmra.mrb[22].mxu1 %vm1508_vm4, %v7217_v56 }
 0x20f   : > { %6470 = vmatpush3.msra.mxu1 %v6446_v0  ;;  %6537 = vmatmul.mubr.msk.f32.vlgmr.msra.gmra.mrb[20].mxu0 %vm1508_vm4, %v7217_v56  ;;  %v6452_v5 = vpop.f32.mrb[14].mxu1 }
 0x210   : > { %6545 = vmatpush3.msra.mxu0 %v1384_v63  ;;  %v1479_v6 = vpop.f32.mrb[15].mxu1  ;;  %6471 = vmatprep.mubr.msk.f32.mxu1 %vm6963_vm3, %v6962_v52 }
 0x211   : > { %6474 = vmatprep.subr.mxu1 %v6962_v52  ;;  %6546 = vmatprep.mubr.msk.f32.mxu0 %vm6963_vm3, %v6962_v52 }
 0x212   : > { %6554 = vmatprep.subr.mxu0 %v6962_v52  ;;  %6472 = vmatmul.mubr.msk.f32.vlgmr.msra.gmra.mrb[24].mxu1 %vm1508_vm4, %v7242_v1 }
 0x213   : > { %6475 = vmatpush3.msra.mxu1 %v6427_v53  ;;  %6547 = vmatmul.mubr.msk.f32.vlgmr.msra.gmra.mrb[22].mxu0 %vm1508_vm4, %v7217_v56  ;;  %v6455_v7 = vpop.f32.mrb[16].mxu1 }
 0x214   : > { %6555 = vmatpush3.msra.mxu0 %v6439_v62  ;;  %v1489_v8 = vpop.f32.mrb[17].mxu1  ;;  %6476 = vmatprep.mubr.msk.f32.mxu1 %vm6963_vm3, %v6962_v52 }
 0x215   : > { %6479 = vmatprep.subr.mxu1 %v6962_v52  ;;  %6556 = vmatprep.mubr.msk.f32.mxu0 %vm6963_vm3, %v6962_v52 }
 0x216   : > { %6477 = vmatmul.mubr.msk.f32.vlgmr.msra.gmra.mrb[26].mxu1 %vm1508_vm4, %v7217_v56 }
 0x217   : > { %6480 = vmatpush3.msra.mxu1 %v1469_v4  ;;  %v6458_v9 = vpop.f32.mrb[18].mxu1  ;;  %6481 = vmatprep.mubr.msk.f32.mxu1 %vm6963_vm3, %v6962_v52 }
 0x218   : > { %v1499_v10 = vpop.f32.mrb[19].mxu1  ;;  %6489 = vmatprep.subr.mxu1 %v6962_v52  ;;  %6557 = vmatmul.mubr.msk.f32.vlgmr.msra.gmra.mrb[24].mxu0 %vm1508_vm4, %v7217_v56 }
 0x21a   : > { %6482 = vmatmul.mubr.msk.f32.vlgmr.msra.gmra.mrb[28].mxu1 %vm1508_vm4, %v7242_v1 }
 0x21b   : > { %6490 = vmatpush3.msra.mxu1 %v6449_v3  ;;  %6491 = vmatprep.mubr.msk.f32.mxu1 %vm6963_vm3, %v6962_v52 }
 0x21c   : > { %6499 = vmatprep.subr.mxu1 %v6962_v52 }
 0x21e   : > { %6492 = vmatmul.mubr.msk.f32.vlgmr.msra.gmra.mrb[30].mxu1 %vm1508_vm4, %v7242_v1 }
 0x21f   : > { %6500 = vmatpush3.msra.mxu1 %v1479_v6  ;;  %6501 = vmatprep.mubr.msk.f32.mxu1 %vm6963_vm3, %v6962_v52 }
 0x220   : > { %6509 = vmatprep.subr.mxu1 %v6962_v52 }
 0x222   : > { %6502 = vmatmul.mubr.msk.f32.vlgmr.msra.gmra.mrb[32].mxu1 %vm1508_vm4, %v7242_v1 }
 0x223   : > { %6510 = vmatpush3.msra.mxu1 %v6452_v5  ;;  %6511 = vmatprep.mubr.msk.f32.mxu1 %vm6963_vm3, %v6962_v52 }
 0x224   : > { %6519 = vmatprep.subr.mxu1 %v6962_v52 }
 0x226   : > { %6512 = vmatmul.mubr.msk.f32.vlgmr.msra.gmra.mrb[34].mxu1 %vm1508_vm4, %v7242_v1 }
 0x227   : > { %6520 = vmatpush3.msra.mxu1 %v1489_v8  ;;  %6521 = vmatprep.mubr.msk.f32.mxu1 %vm6963_vm3, %v6962_v52 }
 0x228   : > { %6529 = vmatprep.subr.mxu1 %v6962_v52 }
 0x22a   : > { %6522 = vmatmul.mubr.msk.f32.vlgmr.msra.gmra.mrb[36].mxu1 %vm1508_vm4, %v7242_v1 }
 0x22b   : > { %6530 = vmatpush3.msra.mxu1 %v6455_v7  ;;  %6531 = vmatprep.mubr.msk.f32.mxu1 %vm6963_vm3, %v6962_v52 }
 0x22c   : > { %6539 = vmatprep.subr.mxu1 %v6962_v52 }
 0x22e   : > { %6532 = vmatmul.mubr.msk.f32.vlgmr.msra.gmra.mrb[38].mxu1 %vm1508_vm4, %v7242_v1 }
 0x22f   : > { %6540 = vmatpush3.msra.mxu1 %v1499_v10  ;;  %6541 = vmatprep.mubr.msk.f32.mxu1 %vm6963_vm3, %v6962_v52 }
 0x230   : > { %6549 = vmatprep.subr.mxu1 %v6962_v52 }
 0x232   : > { %6542 = vmatmul.mubr.msk.f32.vlgmr.msra.gmra.mrb[40].mxu1 %vm1508_vm4, %v7242_v1 }
 0x233   : > { %6550 = vmatpush3.msra.mxu1 %v6458_v9  ;;  %6551 = vmatprep.mubr.msk.f32.mxu1 %vm6963_vm3, %v6962_v52 }
 0x234   : > { %6559 = vmatprep.subr.mxu1 %v814_v11 }
 0x236   : > { %6552 = vmatmul.mubr.msk.f32.vlgmr.msra.gmra.mrb[42].mxu1 %vm1508_vm4, %v7242_v1  ;;  %v815_v1 = vld [vmem:[%s7832_s2 + $0x10] sm:$0xff] }
 0x237   : > { %6560 = vmatpush3.msra.mxu1 %v814_v11 }
 0x238   : > { %6573 = vmatprep.subr.mxu1 %v813_v12 }
 0x2cd   : > { %v1944_v13 = vpop.f32.mrb[10].mxu0 }
 0x2ce   : > { %v6488_v14 = vpop.f32.mrb[11].mxu0 }
 0x2d1   : > { %v2088_v15 = vpop.f32.mrb[12].mxu0 }
 0x2d2   : > { %v6498_v16 = vpop.f32.mrb[13].mxu0 }
 0x2d5   : > { %v2232_v17 = vpop.f32.mrb[14].mxu0 }
 0x2d6   : > { %v6508_v18 = vpop.f32.mrb[15].mxu0 }
 0x2d9   : > { %v2376_v19 = vpop.f32.mrb[16].mxu0 }
 0x2da   : > { %v6518_v20 = vpop.f32.mrb[17].mxu0 }
 0x2dd   : > { %v1578_v21 = vpop.f32.mrb[20].mxu1 }
 0x2de   : > { %v6463_v22 = vpop.f32.mrb[21].mxu1  ;;  %v2520_v23 = vpop.f32.mrb[18].mxu0 }
 0x2df   : > { %v6528_v24 = vpop.f32.mrb[19].mxu0 }
 0x2e1   : > { %v1651_v26 = vpop.f32.mrb[22].mxu1 }
 0x2e2   : > { %v1652_v27 = vadd.f32 %v1651_v26, %v1578_v21  ;;  %v6468_v28 = vpop.f32.mrb[23].mxu1  ;;  %v2664_v29 = vpop.f32.mrb[20].mxu0 }
 0x2e3   : > { %v6538_v30 = vpop.f32.mrb[21].mxu0 }
 0x2e4   : > { %v1661_v31 = vadd.f32 %v7327_v25, %v1652_v27 }
 0x2e5   : > { %v1730_v32 = vpop.f32.mrb[24].mxu1 }
 0x2e6   : > { %v1662_v33 = vmax.f32 %v1661_v31, 0.0  ;;  %v6473_v34 = vpop.f32.mrb[25].mxu1  ;;  %v2808_v35 = vpop.f32.mrb[22].mxu0 }
 0x2e7   : > { %v6548_v36 = vpop.f32.mrb[23].mxu0 }
 0x2e8   : > { %1663 = vst.msk [vmem:[#allocation2] sm:$0xff] %vm1508_vm4, %v1662_v33 }
 0x2e9   : > { %v1800_v37 = vpop.f32.mrb[26].mxu1 }
 0x2ea   : > { %v1801_v38 = vadd.f32 %v1800_v37, %v1730_v32  ;;  %v6478_v39 = vpop.f32.mrb[27].mxu1  ;;  %v6076_v32 = vld [vmem:[%s7834_s5] ss:$0 sm:$0xff] }
 0x2eb   : > { %v2952_v40 = vpop.f32.mrb[24].mxu0 }
 0x2ec   : > { %v1804_v41 = vadd.f32 %v7327_v25, %v1801_v38  ;;  %v6558_v42 = vpop.f32.mrb[25].mxu0 }
 0x2ed   : > { %v1874_v43 = vpop.f32.mrb[28].mxu1 }
 0x2ee   : > { %v1805_v44 = vmax.f32 %v1804_v41, 0.0  ;;  %v1945_v45 = vadd.f32 %v1944_v13, %v1874_v43  ;;  %v6483_v46 = vpop.f32.mrb[29].mxu1 }
 0x2ef   : > { %v2960_v31 = vld [vmem:[#allocation2] sm:$0xff] }
 0x2f0   : > { %1807 = vst.msk [vmem:[#allocation2 + $0x8] sm:$0xff] %vm1508_vm4, %v1805_v44  ;;  %v1948_v47 = vadd.f32 %v7327_v25, %v1945_v45 }
 0x2f1   : > { %v2018_v48 = vpop.f32.mrb[30].mxu1 }
 0x2f2   : > { %v1949_v49 = vmax.f32 %v1948_v47, 0.0  ;;  %v2089_v50 = vadd.f32 %v2088_v15, %v2018_v48  ;;  %v6493_v51 = vpop.f32.mrb[31].mxu1 }
 0x2f4   : > { %1951 = vst.msk [vmem:[#allocation2 + $0x10] sm:$0xff] %vm1508_vm4, %v1949_v49  ;;  %v2092_v53 = vadd.f32 %v7327_v25, %v2089_v50 }
 0x2f5   : > { %v2162_v54 = vpop.f32.mrb[32].mxu1 }
 0x2f6   : > { %v2093_v55 = vmax.f32 %v2092_v53, 0.0  ;;  %v2233_v56 = vadd.f32 %v2232_v17, %v2162_v54  ;;  %v6503_v57 = vpop.f32.mrb[33].mxu1 }
 0x2f7   : > { %v2961_v58 = vld [vmem:[#allocation2 + $0x8] sm:$0xff] }
 0x2f8   : > { %2095 = vst.msk [vmem:[#allocation2 + $0x18] sm:$0xff] %vm1508_vm4, %v2093_v55  ;;  %v2236_v59 = vadd.f32 %v7327_v25, %v2233_v56  ;;  %6561 = vmatprep.mubr.msk.f32.mxu1 %vm1508_vm4, %v2961_v58 }
 0x2f9   : > { %v2306_v60 = vpop.f32.mrb[34].mxu1 }
 0x2fa   : > { %v2237_v61 = vmax.f32 %v2236_v59, 0.0  ;;  %v2377_v62 = vadd.f32 %v2376_v19, %v2306_v60  ;;  %v6513_v63 = vpop.f32.mrb[35].mxu1 }
 0x2fb   : > { %v2962_v0 = vld [vmem:[#allocation2 + $0x10] sm:$0xff] }
 0x2fc   : > { %2239 = vst.msk [vmem:[#allocation2 + $0x20] sm:$0xff] %vm1508_vm4, %v2237_v61  ;;  %v2380_v2 = vadd.f32 %v7327_v25, %v2377_v62  ;;  %6562 = vmatmul.mubr.msk.f32.vlgmr.msra.gmra.mrb[44].mxu1 %vm1508_vm4, %v2962_v0 }
 0x2fd   : > { %v2450_v3 = vpop.f32.mrb[36].mxu1  ;;  %6574 = vmatpush3.msra.mxu1 %v813_v12 }
 0x2fe   : > { %v2381_v4 = vmax.f32 %v2380_v2, 0.0  ;;  %v2521_v5 = vadd.f32 %v2520_v23, %v2450_v3  ;;  %v6523_v6 = vpop.f32.mrb[37].mxu1  ;;  %6587 = vmatprep.subr.mxu1 %v815_v1 }
 0x2ff   : > { %v2963_v7 = vld [vmem:[#allocation2 + $0x18] sm:$0xff] }
 0x300   : > { %2383 = vst.msk [vmem:[#allocation2 + $0x28] sm:$0xff] %vm1508_vm4, %v2381_v4  ;;  %v2524_v8 = vadd.f32 %v7327_v25, %v2521_v5  ;;  %6564 = vmatprep.mubr.msk.f32.mxu1 %vm1508_vm4, %v2963_v7 }
 0x301   : > { %v2594_v9 = vpop.f32.mrb[38].mxu1 }
 0x302   : > { %v2525_v10 = vmax.f32 %v2524_v8, 0.0  ;;  %v2665_v11 = vadd.f32 %v2664_v29, %v2594_v9  ;;  %v6533_v13 = vpop.f32.mrb[39].mxu1 }
 0x303   : > { %v2964_v14 = vld [vmem:[#allocation2 + $0x20] sm:$0xff] }
 0x304   : > { %2527 = vst.msk [vmem:[#allocation2 + $0x30] sm:$0xff] %vm1508_vm4, %v2525_v10  ;;  %v2668_v12 = vadd.f32 %v7327_v25, %v2665_v11  ;;  %6565 = vmatmul.mubr.msk.f32.gmra.mrb[46].mxu1 %vm1508_vm4, %v2964_v14 }
 0x305   : > { %v2738_v15 = vpop.f32.mrb[40].mxu1 }
 0x306   : > { %v2669_v16 = vmax.f32 %v2668_v12, 0.0  ;;  %v2809_v17 = vadd.f32 %v2808_v35, %v2738_v15  ;;  %v6543_v18 = vpop.f32.mrb[41].mxu1 }
 0x307   : > { %v2965_v19 = vld [vmem:[#allocation2 + $0x28] sm:$0xff] }
 0x308   : > { %2671 = vst.msk [vmem:[#allocation2 + $0x38] sm:$0xff] %vm1508_vm4, %v2669_v16  ;;  %v2812_v20 = vadd.f32 %v7327_v25, %v2809_v17  ;;  %6567 = vmatprep.mubr.msk.f32.mxu1 %vm1508_vm4, %v2965_v19 }
 0x309   : > { %v2882_v21 = vpop.f32.mrb[42].mxu1 }
 0x30a   : > { %v2813_v22 = vmax.f32 %v2812_v20, 0.0  ;;  %v2953_v23 = vadd.f32 %v2952_v40, %v2882_v21  ;;  %v6553_v24 = vpop.f32.mrb[43].mxu1 }
 0x30b   : > { %v2966_v26 = vld [vmem:[#allocation2 + $0x30] sm:$0xff] }
 0x30c   : > { %2815 = vst.msk [vmem:[#allocation2 + $0x40] sm:$0xff] %vm1508_vm4, %v2813_v22  ;;  %6568 = vmatmul.mubr.msk.f32.gmra.mrb[48].mxu1 %vm1508_vm4, %v2966_v26  ;;  %v2956_v27 = vadd.f32 %v7327_v25, %v2953_v23 }
 0x30e   : > { %v2957_v28 = vmax.f32 %v2956_v27, 0.0 }
 0x30f   : > { %v2967_v29 = vld [vmem:[#allocation2 + $0x38] sm:$0xff] }
 0x310   : > { %6570 = vmatprep.mubr.msk.f32.mxu1 %vm1508_vm4, %v2967_v29  ;;  %2959 = vst.msk [vmem:[#allocation2 + $0x48] sm:$0xff] %vm1508_vm4, %v2957_v28 }
 0x313   : > { %v2968_v30 = vld [vmem:[#allocation2 + $0x40] sm:$0xff] }
 0x314   : > { %6571 = vmatmul.mubr.msk.f32.gmra.mrb[50].mxu1 %vm1508_vm4, %v2968_v30 }
 0x315   : > { %6575 = vmatprep.mubr.msk.f32.mxu1 %vm1508_vm4, %v2960_v31 }
 0x317   : > { %v2969_v25 = vld [vmem:[#allocation2 + $0x48] sm:$0xff] }
 0x318   : > { %6576 = vmatmul.mubr.msk.f32.vlgmr.msra.gmra.mrb[44].mxu1 %vm1508_vm4, %v2961_v58 }
 0x319   : > { %6578 = vmatprep.mubr.msk.f32.mxu1 %vm1508_vm4, %v2962_v0  ;;  %6588 = vmatpush3.msra.mxu1 %v815_v1 }
 0x31c   : > { %6579 = vmatmul.mubr.msk.f32.gmra.mrb[46].mxu1 %vm1508_vm4, %v2963_v7 }
 0x31d   : > { %6581 = vmatprep.mubr.msk.f32.mxu1 %vm1508_vm4, %v2964_v14 }
 0x320   : > { %6582 = vmatmul.mubr.msk.f32.gmra.mrb[48].mxu1 %vm1508_vm4, %v2965_v19 }
 0x321   : > { %6584 = vmatprep.mubr.msk.f32.mxu1 %vm1508_vm4, %v2966_v26 }
 0x324   : > { %6585 = vmatmul.mubr.msk.f32.gmra.mrb[50].mxu1 %vm1508_vm4, %v2967_v29 }
 0x325   : > { %6589 = vmatprep.mubr.msk.f32.mxu1 %vm1508_vm4, %v2962_v0 }
 0x328   : > { %6590 = vmatmul.mubr.msk.f32.vlgmr.msra.gmra.mrb[44].mxu1 %vm1508_vm4, %v2963_v7 }
 0x329   : > { %6592 = vmatprep.mubr.msk.f32.mxu1 %vm1508_vm4, %v2964_v14 }
 0x32c   : > { %6593 = vmatmul.mubr.msk.f32.gmra.mrb[46].mxu1 %vm1508_vm4, %v2965_v19 }
 0x32d   : > { %6595 = vmatprep.mubr.msk.f32.mxu1 %vm1508_vm4, %v2966_v26 }
 0x330   : > { %6596 = vmatmul.mubr.msk.f32.gmra.mrb[48].mxu1 %vm1508_vm4, %v2967_v29 }
 0x331   : > { %6598 = vmatprep.mubr.msk.f32.mxu1 %vm1508_vm4, %v2968_v30 }
 0x334   : > { %6599 = vmatmul.mubr.msk.f32.gmra.mrb[50].mxu1 %vm1508_vm4, %v2969_v25 }
 0x3fb   : > { %v6591_v33 = vpop.f32.mrb[44].mxu1 }
 0x3fc   : > { %v7379_v34 = vadd.f32 %v6591_v33, %v6076_v32  ;;  %v3276_v35 = vpop.f32.mrb[45].mxu1 }
 0x3fd   : > { %v7396_v48 = vadd.f32 %v6076_v32, %v3276_v35 }
 0x3fe   : > { %v3338_v36 = vmax.f32 %v7379_v34, 0.0 }
 0x3ff   : > { %v6594_v37 = vpop.f32.mrb[46].mxu1  ;;  %v3337_v57 = vmax.f32 %v7396_v48, 0.0 }
 0x400   : > { %v7382_v38 = vadd.f32 %v6594_v37, %v6076_v32  ;;  %v3286_v39 = vpop.f32.mrb[47].mxu1  ;;  %v3348_v40 = vsel %vm1247_vm2, %v3338_v36, 0.0 }
 0x401   : > { %v7387_v41 = vadd.f32 %v6076_v32, %v3286_v39  ;;  %3349 = vadd.xlane.f32.xlu0 %v3348_v40  ;;  %v3345_v63 = vsel %vm1247_vm2, %v3337_v57, 0.0 }
 0x402   : > { %v3340_v42 = vmax.f32 %v7382_v38, 0.0 }
 0x403   : > { %v3339_v43 = vmax.f32 %v7387_v41, 0.0  ;;  %v6597_v44 = vpop.f32.mrb[48].mxu1 }
 0x404   : > { %v7391_v45 = vadd.f32 %v6597_v44, %v6076_v32  ;;  %v3296_v46 = vpop.f32.mrb[49].mxu1  ;;  %v3354_v47 = vsel %vm1247_vm2, %v3340_v42, 0.0 }
 0x405   : > { %v7398_v49 = vadd.f32 %v6076_v32, %v3296_v46  ;;  %3355 = vadd.xlane.f32.xlu1 %v3354_v47  ;;  %v3351_v50 = vsel %vm1247_vm2, %v3339_v43, 0.0 }
 0x406   : > { %v3342_v51 = vmax.f32 %v7391_v45, 0.0  ;;  %3352 = vadd.xlane.f32.xlu0 %v3351_v50 }
 0x407   : > { %v3341_v53 = vmax.f32 %v7398_v49, 0.0  ;;  %v6600_v54 = vpop.f32.mrb[50].mxu1 }
 0x408   : > { %v3306_v55 = vpop.f32.mrb[51].mxu1  ;;  %v3360_v56 = vsel %vm1247_vm2, %v3342_v51, 0.0  ;;  %v7409_v58 = vadd.f32 %v6600_v54, %v6076_v32 }
 0x409   : > { %v7411_v59 = vadd.f32 %v6076_v32, %v3306_v55  ;;  %v3357_v60 = vsel %vm1247_vm2, %v3341_v53, 0.0 }
 0x40a   : > { %3361 = vadd.xlane.f32.xlu0 %v3360_v56  ;;  %3358 = vadd.xlane.f32.xlu1 %v3357_v60  ;;  %v3344_v62 = vmax.f32 %v7409_v58, 0.0  ;;  %v3562_v58 = vld [vmem:[%s7835_s1] sm:$0xff] }
 0x40b   : > { %v3343_v61 = vmax.f32 %v7411_v59, 0.0 }
 0x40c   : > { %v3366_v1 = vsel %vm1247_vm2, %v3344_v62, 0.0 }
 0x40d   : > { %v3363_v0 = vsel %vm1247_vm2, %v3343_v61, 0.0 }
 0x40e   : > { %3346 = vadd.xlane.f32.xlu0 %v3345_v63  ;;  %3364 = vadd.xlane.f32.xlu1 %v3363_v0 }
 0x412   : > { %3367 = vadd.xlane.f32.xlu1 %v3366_v1 }
 0x48e   : > { %v3350_v2 = vpop.xlane.xlu0 %3349 }
 0x48f   : > { %v3375_v3 = vrot.slane %v3350_v2, 4 }
 0x491   : > { %v3376_v4 = vadd.f32 %v3375_v3, %v3350_v2 }
 0x492   : > { %v3356_v5 = vpop.xlane.xlu1 %3355 }
 0x493   : > { %v3377_v6 = vrot.slane %v3376_v4, 2  ;;  %v3387_v7 = vrot.slane %v3356_v5, 4  ;;  %v3353_v8 = vpop.xlane.xlu0 %3352 }
 0x494   : > { %v3381_v9 = vrot.slane %v3353_v8, 4 }
 0x495   : > { %v3378_v10 = vadd.f32 %v3377_v6, %v3376_v4  ;;  %v3388_v11 = vadd.f32 %v3387_v7, %v3356_v5 }
 0x496   : > { %v3382_v13 = vadd.f32 %v3381_v9, %v3353_v8 }
 0x497   : > { %v3379_v14 = vrot.slane %v3378_v10, 1  ;;  %v3389_v12 = vrot.slane %v3388_v11, 2  ;;  %v3362_v15 = vpop.xlane.xlu0 %3361  ;;  %v3359_v16 = vpop.xlane.xlu1 %3358 }
 0x498   : > { %v3383_v17 = vrot.slane %v3382_v13, 2  ;;  %v3399_v18 = vrot.slane %v3362_v15, 4  ;;  %v3393_v19 = vrot.slane %v3359_v16, 4 }
 0x499   : > { %v3380_v20 = vadd.f32 %v3379_v14, %v3378_v10  ;;  %v3390_v21 = vadd.f32 %v3389_v12, %v3388_v11 }
 0x49a   : > { %v3384_v22 = vadd.f32 %v3383_v17, %v3382_v13  ;;  %v3400_v23 = vadd.f32 %v3399_v18, %v3362_v15  ;;  %v3394_v24 = vadd.f32 %v3393_v19, %v3359_v16 }
 0x49b   : > { %v3419_v26 = vmul.f32 0.0078125, %v3380_v20  ;;  %v3391_v27 = vrot.slane %v3390_v21, 1  ;;  %v3347_v28 = vpop.xlane.xlu0 %3346  ;;  %v3365_v29 = vpop.xlane.xlu1 %3364 }
 0x49c   : > { %v3385_v30 = vrot.slane %v3384_v22, 1  ;;  %v3401_v31 = vrot.slane %v3400_v23, 2  ;;  %v3395_v25 = vrot.slane %v3394_v24, 2  ;;  %v3369_v32 = vrot.slane %v3347_v28, 4 }
 0x49d   : > { %v3392_v33 = vadd.f32 %v3391_v27, %v3390_v21  ;;  %v3405_v35 = vrot.slane %v3365_v29, 4  ;;  %v7429_v37 = vsub.f32 %v3338_v36, %v3419_v26 }
 0x49e   : > { %v3386_v39 = vadd.f32 %v3385_v30, %v3384_v22  ;;  %v3402_v40 = vadd.f32 %v3401_v31, %v3400_v23  ;;  %v3396_v44 = vadd.f32 %v3395_v25, %v3394_v24  ;;  %v3370_v46 = vadd.f32 %v3369_v32, %v3347_v28  ;;  %v3564_v30 = vld [vmem:[%s7835_s1 + $0x10] sm:$0xff]  ;;  %v3565_v31 = vld [vmem:[%s7835_s1 + $0x18] sm:$0xff] }
 0x49f   : > { %v3421_v47 = vmul.f32 0.0078125, %v3392_v33  ;;  %v3406_v50 = vadd.f32 %v3405_v35, %v3365_v29  ;;  %v3368_v54 = vpop.xlane.xlu1 %3367  ;;  %v3435_v55 = vmul.f32 %v7429_v37, %v7429_v37  ;;  %v6808_v25 = vpack.c.bf16 %v3565_v31, %v3564_v30 }
 0x4a0   : > { %v3420_v56 = vmul.f32 0.0078125, %v3386_v39  ;;  %v3403_v60 = vrot.slane %v3402_v40, 1  ;;  %v3397_v63 = vrot.slane %v3396_v44, 1  ;;  %v3371_v0 = vrot.slane %v3370_v46, 2 }
 0x4a1   : > { %v3407_v1 = vrot.slane %v3406_v50, 2  ;;  %v3411_v2 = vrot.slane %v3368_v54, 4  ;;  %v3445_v34 = vsel %vm1247_vm2, %v3435_v55, 0.0  ;;  %v7436_v36 = vsub.f32 %v3340_v42, %v3421_v47  ;;  %6809 = vmatprep.subr.bf16.mxu0 %v6808_v25 }
 0x4a2   : > { %v3404_v3 = vadd.f32 %v3403_v60, %v3402_v40  ;;  %v3398_v4 = vadd.f32 %v3397_v63, %v3396_v44  ;;  %v3372_v5 = vadd.f32 %v3371_v0, %v3370_v46  ;;  %3446 = vadd.xlane.f32.xlu0 %v3445_v34  ;;  %v7440_v6 = vsub.f32 %v3339_v43, %v3420_v56 }
 0x4a3   : > { %v3408_v7 = vadd.f32 %v3407_v1, %v3406_v50  ;;  %v3412_v8 = vadd.f32 %v3411_v2, %v3368_v54  ;;  %v3437_v9 = vmul.f32 %v7436_v36, %v7436_v36  ;;  %6811 = vmatpush3.bf16.msra.mxu0 %v6808_v25 }
 0x4a4   : > { %v3423_v10 = vmul.f32 0.0078125, %v3404_v3  ;;  %v3422_v11 = vmul.f32 0.0078125, %v3398_v4  ;;  %v3373_v13 = vrot.slane %v3372_v5, 1  ;;  %v3436_v38 = vmul.f32 %v7440_v6, %v7440_v6 }
 0x4a5   : > { %v3409_v42 = vrot.slane %v3408_v7, 1  ;;  %v3413_v14 = vrot.slane %v3412_v8, 2  ;;  %v3451_v12 = vsel %vm1247_vm2, %v3437_v9, 0.0 }
 0x4a6   : > { %v3374_v15 = vadd.f32 %v3373_v13, %v3372_v5  ;;  %3452 = vadd.xlane.f32.xlu0 %v3451_v12  ;;  %v3448_v41 = vsel %vm1247_vm2, %v3436_v38, 0.0  ;;  %v7450_v43 = vsub.f32 %v3342_v51, %v3423_v10  ;;  %v7454_v16 = vsub.f32 %v3341_v53, %v3422_v11 }
 0x4a7   : > { %v3410_v17 = vadd.f32 %v3409_v42, %v3408_v7  ;;  %v3414_v18 = vadd.f32 %v3413_v14, %v3412_v8  ;;  %3449 = vadd.xlane.f32.xlu1 %v3448_v41 }
 0x4a8   : > { %v3418_v19 = vmul.f32 0.0078125, %v3374_v15  ;;  %v3439_v20 = vmul.f32 %v7450_v43, %v7450_v43  ;;  %v3438_v21 = vmul.f32 %v7454_v16, %v7454_v16 }
 0x4a9   : > { %v3424_v22 = vmul.f32 0.0078125, %v3410_v17  ;;  %v3415_v23 = vrot.slane %v3414_v18, 1 }
 0x4aa   : > { %v3457_v45 = vsel %vm1247_vm2, %v3439_v20, 0.0  ;;  %v3454_v51 = vsel %vm1247_vm2, %v3438_v21, 0.0  ;;  %v7464_v49 = vsub.f32 %v3337_v57, %v3418_v19 }
 0x4ab   : > { %v3416_v53 = vadd.f32 %v3415_v23, %v3414_v18  ;;  %3458 = vadd.xlane.f32.xlu0 %v3457_v45  ;;  %3455 = vadd.xlane.f32.xlu1 %v3454_v51  ;;  %v7468_v24 = vsub.f32 %v3343_v61, %v3424_v22 }
 0x4ac   : > { %v3434_v26 = vmul.f32 %v7464_v49, %v7464_v49 }
 0x4ad   : > { %v3425_v27 = vmul.f32 0.0078125, %v3416_v53  ;;  %v3440_v28 = vmul.f32 %v7468_v24, %v7468_v24 }
 0x4ae   : > { %v3442_v29 = vsel %vm1247_vm2, %v3434_v26, 0.0 }
 0x4af   : > { %3443 = vadd.xlane.f32.xlu0 %v3442_v29  ;;  %v3460_v48 = vsel %vm1247_vm2, %v3440_v28, 0.0  ;;  %v7478_v57 = vsub.f32 %v3344_v62, %v3425_v27  ;;  %v3563_v62 = vld [vmem:[%s7835_s1 + $0x8] sm:$0xff] }
 0x4b0   : > { %3461 = vadd.xlane.f32.xlu1 %v3460_v48  ;;  %v7495_v32 = vpack.c.bf16 %v3563_v62, %v3562_v58 }
 0x4b1   : > { %v3441_v59 = vmul.f32 %v7478_v57, %v7478_v57 }
 0x4b2   : > { %6813 = vmatprep.subr.bf16.mxu0 %v7495_v32 }
 0x4b3   : > { %v3463_v61 = vsel %vm1247_vm2, %v3441_v59, 0.0 }
 0x4b4   : > { %3464 = vadd.xlane.f32.xlu1 %v3463_v61 }
 0x52f   : > { %v3447_v33 = vpop.xlane.xlu0 %3446 }
 0x530   : > { %v3472_v35 = vrot.slane %v3447_v33, 4 }
 0x532   : > { %v3473_v39 = vadd.f32 %v3472_v35, %v3447_v33 }
 0x533   : > { %v3453_v40 = vpop.xlane.xlu0 %3452 }
 0x534   : > { %v3474_v44 = vrot.slane %v3473_v39, 2  ;;  %v3484_v46 = vrot.slane %v3453_v40, 4  ;;  %v3450_v47 = vpop.xlane.xlu1 %3449 }
 0x535   : > { %v3478_v50 = vrot.slane %v3450_v47, 4 }
 0x536   : > { %v3475_v54 = vadd.f32 %v3474_v44, %v3473_v39  ;;  %v3485_v55 = vadd.f32 %v3484_v46, %v3453_v40 }
 0x537   : > { %v3479_v56 = vadd.f32 %v3478_v50, %v3450_v47 }
 0x538   : > { %v3476_v60 = vrot.slane %v3475_v54, 1  ;;  %v3486_v63 = vrot.slane %v3485_v55, 2  ;;  %v3459_v0 = vpop.xlane.xlu0 %3458  ;;  %v3456_v1 = vpop.xlane.xlu1 %3455 }
 0x539   : > { %v3480_v2 = vrot.slane %v3479_v56, 2  ;;  %v3496_v34 = vrot.slane %v3459_v0, 4  ;;  %v3490_v3 = vrot.slane %v3456_v1, 4 }
 0x53a   : > { %v3477_v4 = vadd.f32 %v3476_v60, %v3475_v54  ;;  %v3487_v5 = vadd.f32 %v3486_v63, %v3485_v55  ;;  %v817_v63 = vld [vmem:[%s7836_s7] sm:$0xff] }
 0x53b   : > { %v3481_v7 = vadd.f32 %v3480_v2, %v3479_v56  ;;  %v3497_v8 = vadd.f32 %v3496_v34, %v3459_v0  ;;  %v3491_v9 = vadd.f32 %v3490_v3, %v3456_v1  ;;  %v818_v3 = vld [vmem:[%s7837_s9] sm:$0xff] }
 0x53c   : > { %v3515_v10 = vmul.f32 0.0078125, %v3477_v4  ;;  %v3488_v11 = vrot.slane %v3487_v5, 1  ;;  %v3444_v13 = vpop.xlane.xlu0 %3443 }
 0x53d   : > { %v3482_v38 = vrot.slane %v3481_v7, 1  ;;  %v3498_v42 = vrot.slane %v3497_v8, 2  ;;  %v3492_v14 = vrot.slane %v3491_v9, 2  ;;  %v3466_v12 = vrot.slane %v3444_v13, 4  ;;  %v3462_v15 = vpop.xlane.xlu1 %3461 }
 0x53e   : > { %v3523_v41 = vadd.f32 1e-05, %v3515_v10  ;;  %v3489_v17 = vadd.f32 %v3488_v11, %v3487_v5  ;;  %v3502_v18 = vrot.slane %v3462_v15, 4 }
 0x53f   : > { %v3483_v19 = vadd.f32 %v3482_v38, %v3481_v7  ;;  %v3499_v20 = vadd.f32 %v3498_v42, %v3497_v8  ;;  %v3493_v21 = vadd.f32 %v3492_v14, %v3491_v9  ;;  %v3467_v22 = vadd.f32 %v3466_v12, %v3444_v13  ;;  %v3566_v13 = vld [vmem:[%s7835_s1 + $0x20] sm:$0xff]  ;;  %v3567_v38 = vld [vmem:[%s7835_s1 + $0x28] sm:$0xff] }
 0x540   : > { %6926 = vrsqrt.f32 %v3523_v41  ;;  %v3517_v23 = vmul.f32 0.0078125, %v3489_v17  ;;  %v3503_v45 = vadd.f32 %v3502_v18, %v3462_v15  ;;  %v6816_v17 = vpack.c.bf16 %v3567_v38, %v3566_v13 }
 0x541   : > { %v3516_v51 = vmul.f32 0.0078125, %v3483_v19  ;;  %v3500_v53 = vrot.slane %v3499_v20, 1  ;;  %v3494_v26 = vrot.slane %v3493_v21, 1  ;;  %v3468_v27 = vrot.slane %v3467_v22, 2  ;;  %v3465_v28 = vpop.xlane.xlu1 %3464 }
 0x542   : > { %v3525_v29 = vadd.f32 1e-05, %v3517_v23  ;;  %v3504_v48 = vrot.slane %v3503_v45, 2  ;;  %v3508_v59 = vrot.slane %v3465_v28, 4 }
 0x543   : > { %v3524_v61 = vadd.f32 1e-05, %v3516_v51  ;;  %v3501_v30 = vadd.f32 %v3500_v53, %v3499_v20  ;;  %v3495_v31 = vadd.f32 %v3494_v26, %v3493_v21  ;;  %v3469_v25 = vadd.f32 %v3468_v27, %v3467_v22 }
 0x544   : > { %6928 = vrsqrt.f32 %v3525_v29  ;;  %v3505_v58 = vadd.f32 %v3504_v48, %v3503_v45  ;;  %v3509_v62 = vadd.f32 %v3508_v59, %v3465_v28  ;;  %v3569_v59 = vld [vmem:[%s7795_s12] sm:$0xff] }
 0x545   : > { %6930 = vrsqrt.f32 %v3524_v61  ;;  %v3519_v33 = vmul.f32 0.0078125, %v3501_v30  ;;  %v3518_v35 = vmul.f32 0.0078125, %v3495_v31  ;;  %v3470_v39 = vrot.slane %v3469_v25, 1  ;;  %v3571_v61 = vld [vmem:[%s7795_s12 + $0x10] sm:$0xff]  ;;  %v3572_v31 = vld [vmem:[%s7795_s12 + $0x18] sm:$0xff] }
 0x546   : > { %v3506_v40 = vrot.slane %v3505_v58, 1  ;;  %v3510_v54 = vrot.slane %v3509_v62, 2 }
 0x547   : > { %v3527_v44 = vadd.f32 1e-05, %v3519_v33  ;;  %v3526_v46 = vadd.f32 1e-05, %v3518_v35  ;;  %v3471_v47 = vadd.f32 %v3470_v39, %v3469_v25  ;;  %v6824_v25 = vpack.c.bf16 %v3572_v31, %v3571_v61 }
 0x548   : > { %v3507_v50 = vadd.f32 %v3506_v40, %v3505_v58  ;;  %v3511_v34 = vadd.f32 %v3510_v54, %v3509_v62  ;;  %v6095_v58 = vld [vmem:[%s7794_s11] ss:$0 sm:$0xff] }
 0x549   : > { %6932 = vrsqrt.f32 %v3527_v44  ;;  %v3514_v55 = vmul.f32 0.0078125, %v3471_v47  ;;  %6825 = vmatprep.subr.bf16.mxu1 %v6824_v25 }
 0x54a   : > { %v6927_v56 = vpop.eup %6926  ;;  %6934 = vrsqrt.f32 %v3526_v46  ;;  %v3520_v60 = vmul.f32 0.0078125, %v3507_v50  ;;  %v3512_v10 = vrot.slane %v3511_v34, 1  ;;  %6827 = vmatpush3.bf16.msra.mxu1 %v6824_v25 }
 0x54b   : > { %v3522_v0 = vadd.f32 1e-05, %v3514_v55  ;;  %v3539_v1 = vmul.f32 %v6927_v56, %v7429_v37  ;;  %6681 = vmatprep.subr.mxu1 %v6962_v52 }
 0x54c   : > { %v3528_v2 = vadd.f32 1e-05, %v3520_v60  ;;  %v3513_v15 = vadd.f32 %v3512_v10, %v3511_v34 }
 0x54d   : > { %6936 = vrsqrt.f32 %v3522_v0  ;;  %v3547_v4 = vmul.f32 %v3539_v1, %v817_v63 }
 0x54e   : > { %v6929_v5 = vpop.eup %6928  ;;  %6938 = vrsqrt.f32 %v3528_v2  ;;  %v3521_v23 = vmul.f32 0.0078125, %v3513_v15  ;;  %v3575_v15 = vld [vmem:[%s7797_s14 + $0x8] sm:$0xff] }
 0x54f   : > { %v6931_v7 = vpop.eup %6930  ;;  %v3555_v8 = vadd.f32 %v3547_v4, %v818_v3  ;;  %v3541_v9 = vmul.f32 %v6929_v5, %v7436_v36 }
 0x550   : > { %v3540_v11 = vmul.f32 %v6931_v7, %v7440_v6  ;;  %v3529_v27 = vadd.f32 1e-05, %v3521_v23 }
 0x551   : > { %6605 = vmatprep.mubr.msk.f32.mxu0 %vm1247_vm2, %v3555_v8  ;;  %v3549_v37 = vmul.f32 %v3541_v9, %v817_v63  ;;  %v6953_v9 = vld [vmem:[%s7831_s4 + $0x8] sm:$0xff] }
 0x552   : > { %v3548_v42 = vmul.f32 %v3540_v11, %v817_v63  ;;  %6940 = vrsqrt.f32 %v3529_v27 }
 0x553   : > { %v6933_v14 = vpop.eup %6932  ;;  %v3557_v6 = vadd.f32 %v3549_v37, %v818_v3 }
 0x554   : > { %v6935_v12 = vpop.eup %6934  ;;  %v3556_v41 = vadd.f32 %v3548_v42, %v818_v3  ;;  %v3543_v36 = vmul.f32 %v6933_v14, %v7450_v43 }
 0x555   : > { %v3542_v18 = vmul.f32 %v6935_v12, %v7454_v16 }
 0x556   : > { %6606 = vmatmul.mubr.msk.f32.vlgmr.msra.gmra.mrb[26].mxu0 %vm1247_vm2, %v3556_v41  ;;  %v3551_v19 = vmul.f32 %v3543_v36, %v817_v63 }
 0x557   : > { %v6937_v20 = vpop.eup %6936  ;;  %6608 = vmatprep.mubr.msk.f32.mxu0 %vm1247_vm2, %v3557_v6  ;;  %v3550_v21 = vmul.f32 %v3542_v18, %v817_v63  ;;  %6815 = vmatpush3.bf16.msra.mxu0 %v7495_v32 }
 0x558   : > { %v6939_v22 = vpop.eup %6938  ;;  %v3559_v45 = vadd.f32 %v3551_v19, %v818_v3  ;;  %v3538_v51 = vmul.f32 %v6937_v20, %v7464_v49  ;;  %6817 = vmatprep.subr.bf16.mxu0 %v6816_v17  ;;  %v6110_v19 = vld [vmem:[%s7796_s13] ss:$0 sm:$0xff] }
 0x559   : > { %v3558_v43 = vadd.f32 %v3550_v21, %v818_v3  ;;  %v3544_v53 = vmul.f32 %v6939_v22, %v7468_v24 }
 0x55a   : > { %v3546_v26 = vmul.f32 %v3538_v51, %v817_v63 }
 0x55b   : > { %6609 = vmatmul.mubr.msk.f32.gmra.mrb[28].mxu0 %vm1247_vm2, %v3558_v43  ;;  %v3552_v16 = vmul.f32 %v3544_v53, %v817_v63 }
 0x55c   : > { %6611 = vmatprep.mubr.msk.f32.mxu0 %vm1247_vm2, %v3559_v45  ;;  %v3554_v28 = vadd.f32 %v3546_v26, %v818_v3  ;;  %v6941_v49 = vpop.eup %6940 }
 0x55d   : > { %v3560_v29 = vadd.f32 %v3552_v16, %v818_v3  ;;  %v3545_v24 = vmul.f32 %v6941_v49, %v7478_v57  ;;  %v3570_v57 = vld [vmem:[%s7795_s12 + $0x8] sm:$0xff] }
 0x55e   : > { %v6820_v30 = vpack.c.bf16 %v3570_v57, %v3569_v59 }
 0x55f   : > { %6612 = vmatmul.mubr.msk.f32.gmra.mrb[30].mxu0 %vm1247_vm2, %v3560_v29  ;;  %v3553_v32 = vmul.f32 %v3545_v24, %v817_v63 }
 0x560   : > { %6618 = vmatprep.mubr.msk.f32.mxu0 %vm1247_vm2, %v3554_v28 }
 0x561   : > { %v3561_v48 = vadd.f32 %v3553_v32, %v818_v3 }
 0x563   : > { %6619 = vmatmul.mubr.msk.f32.vlgmr.msra.gmra.mrb[26].mxu0 %vm1247_vm2, %v3555_v8  ;;  %v6952_v8 = vld [vmem:[%s7831_s4] sm:$0xff] }
 0x564   : > { %6621 = vmatprep.mubr.msk.f32.mxu0 %vm1247_vm2, %v3556_v41  ;;  %6819 = vmatpush3.bf16.msra.mxu0 %v6816_v17 }
 0x565   : > { %6821 = vmatprep.subr.bf16.mxu0 %v6820_v30 }
 0x567   : > { %6622 = vmatmul.mubr.msk.f32.gmra.mrb[28].mxu0 %vm1247_vm2, %v3557_v6 }
 0x568   : > { %6624 = vmatprep.mubr.msk.f32.mxu0 %vm1247_vm2, %v3558_v43 }
 0x56b   : > { %6625 = vmatmul.mubr.msk.f32.gmra.mrb[30].mxu0 %vm1247_vm2, %v3559_v45 }
 0x56c   : > { %6631 = vmatprep.mubr.msk.f32.mxu0 %vm1247_vm2, %v3556_v41  ;;  %v3574_v41 = vld [vmem:[%s7797_s14] sm:$0xff] }
 0x56f   : > { %6632 = vmatmul.mubr.msk.f32.vlgmr.msra.gmra.mrb[26].mxu0 %vm1247_vm2, %v3557_v6 }
 0x570   : > { %6634 = vmatprep.mubr.msk.f32.mxu0 %vm1247_vm2, %v3558_v43  ;;  %6823 = vmatpush3.bf16.msra.mxu0 %v6820_v30 }
 0x571   : > { %6666 = vmatprep.subr.mxu0 %v6962_v52 }
 0x573   : > { %6635 = vmatmul.mubr.msk.f32.gmra.mrb[28].mxu0 %vm1247_vm2, %v3559_v45 }
 0x574   : > { %6637 = vmatprep.mubr.msk.f32.mxu0 %vm1247_vm2, %v3560_v29 }
 0x577   : > { %6638 = vmatmul.mubr.msk.f32.gmra.mrb[30].mxu0 %vm1247_vm2, %v3561_v48 }
 0x642   : > { %v6633_v62 = vpop.f32.mrb[26].mxu0 }
 0x643   : > { %v3902_v33 = vadd.f32 %v6633_v62, %v6095_v58  ;;  %v3860_v35 = vpop.f32.mrb[27].mxu0 }
 0x644   : > { %v3901_v39 = vadd.f32 %v6095_v58, %v3860_v35 }
 0x645   : > { %v3908_v46 = vmax.f32 %v3902_v33, 0.0 }
 0x646   : > { %v3907_v40 = vmax.f32 %v3901_v39, 0.0  ;;  %v6636_v44 = vpop.f32.mrb[28].mxu0 }
 0x647   : > { %v3904_v47 = vadd.f32 %v6636_v44, %v6095_v58  ;;  %v3870_v50 = vpop.f32.mrb[29].mxu0 }
 0x648   : > { %v3903_v54 = vadd.f32 %v6095_v58, %v3870_v50  ;;  %6644 = vmatprep.mubr.msk.f32.mxu0 %vm1247_vm2, %v3907_v40  ;;  %6657 = vmatprep.mubr.msk.f32.mxu1 %vm1247_vm2, %v3907_v40 }
 0x649   : > { %6645 = vmatmul.mubr.msk.f32.vlgmr.msra.gmra.mrb[32].mxu0 %vm1247_vm2, %v3908_v46  ;;  %6658 = vmatmul.mubr.msk.f32.vlgmr.msra.gmra.mrb[52].mxu1 %vm1247_vm2, %v3908_v46  ;;  %v3910_v60 = vmax.f32 %v3904_v47, 0.0 }
 0x64a   : > { %v3909_v55 = vmax.f32 %v3903_v54, 0.0  ;;  %v6639_v56 = vpop.f32.mrb[30].mxu0 }
 0x64b   : > { %v3906_v63 = vadd.f32 %v6639_v56, %v6095_v58  ;;  %v3880_v0 = vpop.f32.mrb[31].mxu0 }
 0x64c   : > { %v3905_v1 = vadd.f32 %v6095_v58, %v3880_v0  ;;  %6647 = vmatprep.mubr.msk.f32.mxu0 %vm1247_vm2, %v3909_v55  ;;  %6660 = vmatprep.mubr.msk.f32.mxu1 %vm1247_vm2, %v3909_v55  ;;  %v3576_v0 = vld [vmem:[%s7797_s14 + $0x10] sm:$0xff] }
 0x64d   : > { %6648 = vmatmul.mubr.msk.f32.gmra.mrb[34].mxu0 %vm1247_vm2, %v3910_v60  ;;  %6661 = vmatmul.mubr.msk.f32.gmra.mrb[54].mxu1 %vm1247_vm2, %v3910_v60  ;;  %v3912_v34 = vmax.f32 %v3906_v63, 0.0 }
 0x64e   : > { %v3911_v2 = vmax.f32 %v3905_v1, 0.0 }
 0x650   : > { %6650 = vmatprep.mubr.msk.f32.mxu0 %vm1247_vm2, %v3911_v2  ;;  %6663 = vmatprep.mubr.msk.f32.mxu1 %vm1247_vm2, %v3911_v2 }
 0x651   : > { %6651 = vmatmul.mubr.msk.f32.gmra.mrb[36].mxu0 %vm1247_vm2, %v3912_v34  ;;  %6664 = vmatmul.mubr.msk.f32.gmra.mrb[56].mxu1 %vm1247_vm2, %v3912_v34 }
 0x652   : > { %6668 = vmatprep.mubr.msk.f32.mxu0 %vm6963_vm3, %v6962_v52  ;;  %6683 = vmatprep.mubr.msk.f32.mxu1 %vm6963_vm3, %v6962_v52 }
 0x71c   : > { %v6646_v3 = vpop.f32.mrb[32].mxu0  ;;  %v6659_v4 = vpop.f32.mrb[52].mxu1 }
 0x71d   : > { %v3997_v5 = vpop.f32.mrb[33].mxu0  ;;  %v4092_v7 = vpop.f32.mrb[53].mxu1  ;;  %6682 = vmatpush3.msra.mxu1 %v6646_v3 }
 0x71e   : > { %6667 = vmatpush3.msra.mxu0 %v4092_v7  ;;  %6684 = vmatmul.mubr.msk.f32.vlgmr.msra.gmra.mrb[58].mxu1 %vm1508_vm4, %v6952_v8  ;;  %v6133_v7 = vld [vmem:[%s7798_s15] ss:$0 sm:$0xff] }
 0x71f   : > { %6669 = vmatmul.mubr.msk.f32.vlgmr.msra.gmra.mrb[38].mxu0 %vm1508_vm4, %v6953_v9  ;;  %6671 = vmatprep.subr.mxu0 %v6962_v52 }
 0x720   : > { %v6649_v10 = vpop.f32.mrb[34].mxu0  ;;  %v6662_v11 = vpop.f32.mrb[54].mxu1  ;;  %6672 = vmatpush3.msra.mxu0 %v3997_v5  ;;  %6691 = vmatprep.subr.mxu1 %v6962_v52 }
 0x721   : > { %v4007_v37 = vpop.f32.mrb[35].mxu0  ;;  %v4102_v13 = vpop.f32.mrb[55].mxu1  ;;  %6673 = vmatprep.mubr.msk.f32.mxu0 %vm6963_vm3, %v6962_v52  ;;  %6676 = vmatprep.subr.mxu0 %v6962_v52 }
 0x722   : > { %6692 = vmatpush3.msra.mxu1 %v4007_v37  ;;  %6693 = vmatprep.mubr.msk.f32.mxu1 %vm6963_vm3, %v6962_v52 }
 0x723   : > { %6674 = vmatmul.mubr.msk.f32.vlgmr.msra.gmra.mrb[40].mxu0 %vm1508_vm4, %v6952_v8  ;;  %6694 = vmatmul.mubr.msk.f32.vlgmr.msra.gmra.mrb[60].mxu1 %vm1508_vm4, %v6952_v8 }
 0x724   : > { %6677 = vmatpush3.msra.mxu0 %v6659_v4  ;;  %6701 = vmatprep.subr.mxu1 %v6962_v52  ;;  %v6652_v38 = vpop.f32.mrb[36].mxu0  ;;  %v6665_v42 = vpop.f32.mrb[56].mxu1 }
 0x725   : > { %6702 = vmatpush3.msra.mxu1 %v6649_v10  ;;  %v4017_v14 = vpop.f32.mrb[37].mxu0  ;;  %v4112_v12 = vpop.f32.mrb[57].mxu1  ;;  %6678 = vmatprep.mubr.msk.f32.mxu0 %vm6963_vm3, %v6962_v52 }
 0x726   : > { %6686 = vmatprep.subr.mxu0 %v6962_v52  ;;  %6703 = vmatprep.mubr.msk.f32.mxu1 %vm6963_vm3, %v6962_v52 }
 0x727   : > { %6711 = vmatprep.subr.mxu1 %v6962_v52  ;;  %6679 = vmatmul.mubr.msk.f32.vlgmr.msra.gmra.mrb[42].mxu0 %vm1508_vm4, %v6953_v9 }
 0x728   : > { %6687 = vmatpush3.msra.mxu0 %v4102_v13  ;;  %6704 = vmatmul.mubr.msk.f32.vlgmr.msra.gmra.mrb[62].mxu1 %vm1508_vm4, %v6952_v8 }
 0x729   : > { %6712 = vmatpush3.msra.mxu1 %v4017_v14  ;;  %6688 = vmatprep.mubr.msk.f32.mxu0 %vm6963_vm3, %v6962_v52 }
 0x72a   : > { %6696 = vmatprep.subr.mxu0 %v6962_v52  ;;  %6713 = vmatprep.mubr.msk.f32.mxu1 %vm6963_vm3, %v6962_v52 }
 0x72b   : > { %6721 = vmatprep.subr.mxu1 %v6962_v52  ;;  %6689 = vmatmul.mubr.msk.f32.vlgmr.msra.gmra.mrb[44].mxu0 %vm1508_vm4, %v6953_v9 }
 0x72c   : > { %6697 = vmatpush3.msra.mxu0 %v6662_v11  ;;  %6714 = vmatmul.mubr.msk.f32.vlgmr.msra.gmra.mrb[64].mxu1 %vm1508_vm4, %v6952_v8 }
 0x72d   : > { %6722 = vmatpush3.msra.mxu1 %v6652_v38  ;;  %6698 = vmatprep.mubr.msk.f32.mxu0 %vm6963_vm3, %v6962_v52 }
 0x72e   : > { %6706 = vmatprep.subr.mxu0 %v6962_v52  ;;  %6723 = vmatprep.mubr.msk.f32.mxu1 %vm6963_vm3, %v6962_v52 }
 0x72f   : > { %6699 = vmatmul.mubr.msk.f32.vlgmr.msra.gmra.mrb[46].mxu0 %vm1508_vm4, %v6953_v9 }
 0x730   : > { %6707 = vmatpush3.msra.mxu0 %v4112_v12  ;;  %6708 = vmatprep.mubr.msk.f32.mxu0 %vm6963_vm3, %v6962_v52 }
 0x731   : > { %6716 = vmatprep.subr.mxu0 %v6962_v52  ;;  %6724 = vmatmul.mubr.msk.f32.vlgmr.msra.gmra.mrb[66].mxu1 %vm1508_vm4, %v6952_v8 }
 0x732   : > { %6754 = vmatprep.mubr.msk.f32.mxu1 %vm6963_vm3, %v6962_v52 }
 0x733   : > { %6709 = vmatmul.mubr.msk.f32.vlgmr.msra.gmra.mrb[48].mxu0 %vm1508_vm4, %v6953_v9 }
 0x734   : > { %6717 = vmatpush3.msra.mxu0 %v6665_v42  ;;  %6718 = vmatprep.mubr.msk.f32.mxu0 %vm6963_vm3, %v6962_v52 }
 0x735   : > { %6726 = vmatprep.subr.mxu0 %v3575_v15 }
 0x737   : > { %6719 = vmatmul.mubr.msk.f32.vlgmr.msra.gmra.mrb[50].mxu0 %vm1508_vm4, %v6953_v9 }
 0x738   : > { %6727 = vmatpush3.msra.mxu0 %v3575_v15 }
 0x739   : > { %6734 = vmatprep.subr.mxu0 %v3574_v41 }
 0x7f1   : > { %v4406_v36 = vpop.f32.mrb[58].mxu1 }
 0x7f2   : > { %v4187_v17 = vpop.f32.mrb[38].mxu0  ;;  %v6685_v6 = vpop.f32.mrb[59].mxu1 }
 0x7f3   : > { %v6670_v18 = vpop.f32.mrb[39].mxu0 }
 0x7f6   : > { %v4257_v20 = vpop.f32.mrb[40].mxu0  ;;  %v4550_v21 = vpop.f32.mrb[60].mxu1 }
 0x7f7   : > { %v4258_v22 = vadd.f32 %v4257_v20, %v4187_v17  ;;  %v6675_v23 = vpop.f32.mrb[41].mxu0  ;;  %v6695_v45 = vpop.f32.mrb[61].mxu1 }
 0x7f9   : > { %v4267_v51 = vadd.f32 %v6110_v19, %v4258_v22 }
 0x7fa   : > { %v4336_v43 = vpop.f32.mrb[42].mxu0 }
 0x7fb   : > { %v4268_v53 = vmax.f32 %v4267_v51, 0.0  ;;  %v4407_v26 = vadd.f32 %v4406_v36, %v4336_v43  ;;  %v6680_v16 = vpop.f32.mrb[43].mxu0  ;;  %v4694_v27 = vpop.f32.mrb[62].mxu1 }
 0x7fc   : > { %v6705_v28 = vpop.f32.mrb[63].mxu1 }
 0x7fd   : > { %4269 = vst.msk [vmem:[#allocation3] sm:$0xff] %vm1508_vm4, %v4268_v53  ;;  %v4410_v29 = vadd.f32 %v6110_v19, %v4407_v26 }
 0x7fe   : > { %v4480_v49 = vpop.f32.mrb[44].mxu0 }
 0x7ff   : > { %v4411_v24 = vmax.f32 %v4410_v29, 0.0  ;;  %v4551_v32 = vadd.f32 %v4550_v21, %v4480_v49  ;;  %v6690_v48 = vpop.f32.mrb[45].mxu0  ;;  %v4838_v59 = vpop.f32.mrb[64].mxu1 }
 0x800   : > { %v6715_v57 = vpop.f32.mrb[65].mxu1 }
 0x801   : > { %4413 = vst.msk [vmem:[#allocation3 + $0x8] sm:$0xff] %vm1508_vm4, %v4411_v24  ;;  %v4554_v61 = vadd.f32 %v6110_v19, %v4551_v32 }
 0x802   : > { %v4624_v30 = vpop.f32.mrb[46].mxu0 }
 0x803   : > { %v4555_v31 = vmax.f32 %v4554_v61, 0.0  ;;  %v4695_v25 = vadd.f32 %v4694_v27, %v4624_v30  ;;  %v6700_v58 = vpop.f32.mrb[47].mxu0 }
 0x804   : > { %v4982_v62 = vpop.f32.mrb[66].mxu1  ;;  %v4990_v4 = vld [vmem:[#allocation3] sm:$0xff] }
 0x805   : > { %4557 = vst.msk [vmem:[#allocation3 + $0x10] sm:$0xff] %vm1508_vm4, %v4555_v31  ;;  %v4698_v33 = vadd.f32 %v6110_v19, %v4695_v25  ;;  %v6725_v35 = vpop.f32.mrb[67].mxu1 }
 0x806   : > { %v4768_v39 = vpop.f32.mrb[48].mxu0 }
 0x807   : > { %v4699_v40 = vmax.f32 %v4698_v33, 0.0  ;;  %v4839_v44 = vadd.f32 %v4838_v59, %v4768_v39  ;;  %v6710_v46 = vpop.f32.mrb[49].mxu0 }
 0x808   : > { %v4991_v47 = vld [vmem:[#allocation3 + $0x8] sm:$0xff] }
 0x809   : > { %4701 = vst.msk [vmem:[#allocation3 + $0x18] sm:$0xff] %vm1508_vm4, %v4699_v40  ;;  %v4842_v50 = vadd.f32 %v6110_v19, %v4839_v44  ;;  %6728 = vmatprep.mubr.msk.f32.mxu0 %vm1508_vm4, %v4991_v47 }
 0x80a   : > { %v4912_v54 = vpop.f32.mrb[50].mxu0 }
 0x80b   : > { %v4843_v55 = vmax.f32 %v4842_v50, 0.0  ;;  %v4983_v56 = vadd.f32 %v4982_v62, %v4912_v54  ;;  %v6720_v60 = vpop.f32.mrb[51].mxu0 }
 0x80c   : > { %v4992_v63 = vld [vmem:[#allocation3 + $0x10] sm:$0xff] }
 0x80d   : > { %4845 = vst.msk [vmem:[#allocation3 + $0x20] sm:$0xff] %vm1508_vm4, %v4843_v55  ;;  %6729 = vmatmul.mubr.msk.f32.vlgmr.msra.gmra.mrb[52].mxu0 %vm1508_vm4, %v4992_v63  ;;  %v4986_v1 = vadd.f32 %v6110_v19, %v4983_v56 }
 0x80e   : > { %6735 = vmatpush3.msra.mxu0 %v3574_v41 }
 0x80f   : > { %v4987_v2 = vmax.f32 %v4986_v1, 0.0  ;;  %6742 = vmatprep.subr.mxu0 %v3576_v0 }
 0x810   : > { %v4993_v34 = vld [vmem:[#allocation3 + $0x18] sm:$0xff] }
 0x811   : > { %6731 = vmatprep.mubr.msk.f32.mxu0 %vm1508_vm4, %v4993_v34  ;;  %4989 = vst.msk [vmem:[#allocation3 + $0x28] sm:$0xff] %vm1508_vm4, %v4987_v2 }
 0x814   : > { %v4994_v3 = vld [vmem:[#allocation3 + $0x20] sm:$0xff] }
 0x815   : > { %6732 = vmatmul.mubr.msk.f32.gmra.mrb[54].mxu0 %vm1508_vm4, %v4994_v3 }
 0x816   : > { %6736 = vmatprep.mubr.msk.f32.mxu0 %vm1508_vm4, %v4990_v4  ;;  %v5397_v4 = vld [vmem:[%s7801_s18 + $0x10] sm:$0xff] }
 0x818   : > { %v4995_v5 = vld [vmem:[#allocation3 + $0x28] sm:$0xff] }
 0x819   : > { %6737 = vmatmul.mubr.msk.f32.vlgmr.msra.gmra.mrb[52].mxu0 %vm1508_vm4, %v4991_v47 }
 0x81a   : > { %6739 = vmatprep.mubr.msk.f32.mxu0 %vm1508_vm4, %v4992_v63  ;;  %6743 = vmatpush3.msra.mxu0 %v3576_v0 }
 0x81d   : > { %6740 = vmatmul.mubr.msk.f32.gmra.mrb[54].mxu0 %vm1508_vm4, %v4993_v34 }
 0x81e   : > { %6744 = vmatprep.mubr.msk.f32.mxu0 %vm1508_vm4, %v4992_v63 }
 0x821   : > { %6745 = vmatmul.mubr.msk.f32.vlgmr.msra.gmra.mrb[52].mxu0 %vm1508_vm4, %v4993_v34 }
 0x822   : > { %6747 = vmatprep.mubr.msk.f32.mxu0 %vm1508_vm4, %v4994_v3 }
 0x825   : > { %6748 = vmatmul.mubr.msk.f32.gmra.mrb[54].mxu0 %vm1508_vm4, %v4995_v5  ;;  %v5398_v5 = vld [vmem:[%s7801_s18 + $0x18] sm:$0xff] }
 0x826   : > { %6797 = vmatprep.mubr.msk.f32.mxu0 %vm6963_vm3, %v6962_v52 }
 0x8f4   : > { %v6746_v8 = vpop.f32.mrb[52].mxu0 }
 0x8f5   : > { %v5280_v9 = vadd.f32 %v6746_v8, %v6133_v7  ;;  %v5250_v10 = vpop.f32.mrb[53].mxu0  ;;  %v6829_v8 = vpack.c.bf16 %v5398_v5, %v5397_v4  ;;  %v5402_v4 = vld [vmem:[%s7801_s18 + $0x38] sm:$0xff] }
 0x8f6   : > { %v5279_v11 = vadd.f32 %v6133_v7, %v5250_v10 }
 0x8f7   : > { %v5284_v37 = vmax.f32 %v5280_v9, 0.0 }
 0x8f8   : > { %v5283_v13 = vmax.f32 %v5279_v11, 0.0  ;;  %v6749_v38 = vpop.f32.mrb[54].mxu0 }
 0x8f9   : > { %v5282_v42 = vadd.f32 %v6749_v38, %v6133_v7  ;;  %v5260_v14 = vpop.f32.mrb[55].mxu0  ;;  %v5290_v12 = vsel %vm1247_vm2, %v5284_v37, 0.0 }
 0x8fa   : > { %v5281_v15 = vadd.f32 %v6133_v7, %v5260_v14  ;;  %5291 = vadd.xlane.f32.xlu0 %v5290_v12  ;;  %v5287_v41 = vsel %vm1247_vm2, %v5283_v13, 0.0  ;;  %v6964_v7 = vmov 0.0|0.0  }
 0x8fb   : > { %v5286_v36 = vmax.f32 %v5282_v42, 0.0  ;;  %5288 = vadd.xlane.f32.xlu1 %v5287_v41  ;;  %6828 = vmatprep.subr.bf16.mxu1 %v6964_v7 }
 0x8fc   : > { %v5285_v17 = vmax.f32 %v5281_v15, 0.0  ;;  %6846 = vmatprep.subr.bf16.mxu0 %v6964_v7  ;;  %6830 = vmatpush3.bf16.msra.mxu1 %v6829_v8 }
 0x8fd   : > { %v5296_v6 = vsel %vm1247_vm2, %v5286_v36, 0.0  ;;  %6831 = vmatprep.subr.bf16.mxu1 %v6964_v7 }
 0x8fe   : > { %v5293_v18 = vsel %vm1247_vm2, %v5285_v17, 0.0 }
 0x8ff   : > { %5297 = vadd.xlane.f32.xlu1 %v5296_v6  ;;  %5294 = vadd.xlane.f32.xlu0 %v5293_v18 }
 0x987   : > { %v5292_v19 = vpop.xlane.xlu0 %5291 }
 0x988   : > { %v5305_v20 = vrot.slane %v5292_v19, 4  ;;  %v5289_v21 = vpop.xlane.xlu1 %5288 }
 0x989   : > { %v5299_v22 = vrot.slane %v5289_v21, 4 }
 0x98a   : > { %v5306_v23 = vadd.f32 %v5305_v20, %v5292_v19 }
 0x98b   : > { %v5300_v45 = vadd.f32 %v5299_v22, %v5289_v21 }
 0x98c   : > { %v5307_v51 = vrot.slane %v5306_v23, 2  ;;  %v5298_v43 = vpop.xlane.xlu1 %5297  ;;  %v5295_v53 = vpop.xlane.xlu0 %5294 }
 0x98d   : > { %v5301_v26 = vrot.slane %v5300_v45, 2  ;;  %v5317_v16 = vrot.slane %v5298_v43, 4  ;;  %v5311_v27 = vrot.slane %v5295_v53, 4 }
 0x98e   : > { %v5308_v28 = vadd.f32 %v5307_v51, %v5306_v23 }
 0x98f   : > { %v5302_v29 = vadd.f32 %v5301_v26, %v5300_v45  ;;  %v5318_v49 = vadd.f32 %v5317_v16, %v5298_v43  ;;  %v5312_v24 = vadd.f32 %v5311_v27, %v5295_v53 }
 0x990   : > { %v5309_v32 = vrot.slane %v5308_v28, 1 }
 0x991   : > { %v5303_v48 = vrot.slane %v5302_v29, 1  ;;  %v5319_v59 = vrot.slane %v5318_v49, 2  ;;  %v5313_v57 = vrot.slane %v5312_v24, 2 }
 0x992   : > { %v5310_v61 = vadd.f32 %v5309_v32, %v5308_v28 }
 0x993   : > { %v5304_v30 = vadd.f32 %v5303_v48, %v5302_v29  ;;  %v5320_v31 = vadd.f32 %v5319_v59, %v5318_v49  ;;  %v5314_v25 = vadd.f32 %v5313_v57, %v5312_v24 }
 0x994   : > { %v5324_v58 = vmul.f32 0.0078125, %v5310_v61 }
 0x995   : > { %v5323_v62 = vmul.f32 0.0078125, %v5304_v30  ;;  %v5321_v33 = vrot.slane %v5320_v31, 1  ;;  %v5315_v35 = vrot.slane %v5314_v25, 1 }
 0x996   : > { %v7659_v39 = vsub.f32 %v5284_v37, %v5324_v58 }
 0x997   : > { %v5322_v40 = vadd.f32 %v5321_v33, %v5320_v31  ;;  %v5316_v44 = vadd.f32 %v5315_v35, %v5314_v25  ;;  %v7661_v46 = vsub.f32 %v5283_v13, %v5323_v62  ;;  %v3578_v31 = vld [vmem:[%s7799_s16] sm:$0xff]  ;;  %v5396_v33 = vld [vmem:[%s7801_s18 + $0x8] sm:$0xff] }
 0x998   : > { %v5332_v47 = vmul.f32 %v7659_v39, %v7659_v39  ;;  %v5395_v62 = vld [vmem:[%s7801_s18] sm:$0xff] }
 0x999   : > { %v5326_v50 = vmul.f32 0.0078125, %v5322_v40  ;;  %v5325_v54 = vmul.f32 0.0078125, %v5316_v44  ;;  %v5331_v55 = vmul.f32 %v7661_v46, %v7661_v46  ;;  %v3579_v35 = vld [vmem:[%s7800_s17] sm:$0xff] }
 0x99a   : > { %v5338_v56 = vsel %vm1247_vm2, %v5332_v47, 0.0  ;;  %v6832_v47 = vpack.c.bf16 %v5396_v33, %v5395_v62 }
 0x99b   : > { %5339 = vadd.xlane.f32.xlu0 %v5338_v56  ;;  %v5335_v60 = vsel %vm1247_vm2, %v5331_v55, 0.0  ;;  %v7669_v63 = vsub.f32 %v5286_v36, %v5326_v50  ;;  %v7671_v0 = vsub.f32 %v5285_v17, %v5325_v54  ;;  %v5400_v56 = vld [vmem:[%s7801_s18 + $0x28] sm:$0xff] }
 0x99c   : > { %5336 = vadd.xlane.f32.xlu1 %v5335_v60 }
 0x99d   : > { %v5334_v1 = vmul.f32 %v7669_v63, %v7669_v63  ;;  %v5333_v2 = vmul.f32 %v7671_v0, %v7671_v0 }
 0x99f   : > { %v5344_v34 = vsel %vm1247_vm2, %v5334_v1, 0.0  ;;  %v5341_v3 = vsel %vm1247_vm2, %v5333_v2, 0.0 }
 0x9a0   : > { %5345 = vadd.xlane.f32.xlu1 %v5344_v34  ;;  %5342 = vadd.xlane.f32.xlu0 %v5341_v3  ;;  %v5401_v3 = vld [vmem:[%s7801_s18 + $0x30] sm:$0xff] }
 0xa28   : > { %v5340_v9 = vpop.xlane.xlu0 %5339 }
 0xa29   : > { %v5353_v10 = vrot.slane %v5340_v9, 4  ;;  %v5337_v11 = vpop.xlane.xlu1 %5336 }
 0xa2a   : > { %v5347_v37 = vrot.slane %v5337_v11, 4 }
 0xa2b   : > { %v5354_v13 = vadd.f32 %v5353_v10, %v5340_v9 }
 0xa2c   : > { %v5348_v38 = vadd.f32 %v5347_v37, %v5337_v11 }
 0xa2d   : > { %v5355_v42 = vrot.slane %v5354_v13, 2  ;;  %v5346_v14 = vpop.xlane.xlu1 %5345  ;;  %v5343_v12 = vpop.xlane.xlu0 %5342 }
 0xa2e   : > { %v5349_v15 = vrot.slane %v5348_v38, 2  ;;  %v5365_v41 = vrot.slane %v5346_v14, 4  ;;  %v5359_v36 = vrot.slane %v5343_v12, 4 }
 0xa2f   : > { %v5356_v17 = vadd.f32 %v5355_v42, %v5354_v13 }
 0xa30   : > { %v5350_v6 = vadd.f32 %v5349_v15, %v5348_v38  ;;  %v5366_v18 = vadd.f32 %v5365_v41, %v5346_v14  ;;  %v5360_v19 = vadd.f32 %v5359_v36, %v5343_v12  ;;  %v6138_v15 = vld [vmem:[%s7802_s19] ss:$0 sm:$0xff] }
 0xa31   : > { %v5357_v20 = vrot.slane %v5356_v17, 1 }
 0xa32   : > { %v5351_v21 = vrot.slane %v5350_v6, 1  ;;  %v5367_v22 = vrot.slane %v5366_v18, 2  ;;  %v5361_v23 = vrot.slane %v5360_v19, 2 }
 0xa33   : > { %v5358_v45 = vadd.f32 %v5357_v20, %v5356_v17 }
 0xa34   : > { %v5352_v51 = vadd.f32 %v5351_v21, %v5350_v6  ;;  %v5368_v43 = vadd.f32 %v5367_v22, %v5366_v18  ;;  %v5362_v53 = vadd.f32 %v5361_v23, %v5360_v19 }
 0xa35   : > { %v5372_v26 = vmul.f32 0.0078125, %v5358_v45 }
 0xa36   : > { %v5371_v16 = vmul.f32 0.0078125, %v5352_v51  ;;  %v5369_v27 = vrot.slane %v5368_v43, 1  ;;  %v5363_v28 = vrot.slane %v5362_v53, 1 }
 0xa37   : > { %v5376_v29 = vadd.f32 1e-05, %v5372_v26 }
 0xa38   : > { %v5375_v49 = vadd.f32 1e-05, %v5371_v16  ;;  %v5370_v24 = vadd.f32 %v5369_v27, %v5368_v43  ;;  %v5364_v32 = vadd.f32 %v5363_v28, %v5362_v53  ;;  %v5406_v28 = vld [vmem:[%s7805_s22] sm:$0xff] }
 0xa39   : > { %6942 = vrsqrt.f32 %v5376_v29  ;;  %v5407_v29 = vld [vmem:[%s7805_s22 + $0x8] sm:$0xff] }
 0xa3a   : > { %6944 = vrsqrt.f32 %v5375_v49  ;;  %v5374_v48 = vmul.f32 0.0078125, %v5370_v24  ;;  %v5373_v59 = vmul.f32 0.0078125, %v5364_v32  ;;  %v6841_v24 = vpack.c.bf16 %v5407_v29, %v5406_v28 }
 0xa3c   : > { %v5378_v57 = vadd.f32 1e-05, %v5374_v48  ;;  %v5377_v61 = vadd.f32 1e-05, %v5373_v59  ;;  %v5408_v48 = vld [vmem:[%s7805_s22 + $0x10] sm:$0xff]  ;;  %v5409_v59 = vld [vmem:[%s7805_s22 + $0x18] sm:$0xff] }
 0xa3e   : > { %6946 = vrsqrt.f32 %v5378_v57 }
 0xa3f   : > { %6948 = vrsqrt.f32 %v5377_v61  ;;  %v6844_v61 = vpack.c.bf16 %v5409_v59, %v5408_v48 }
 0xa43   : > { %v6943_v30 = vpop.eup %6942 }
 0xa44   : > { %v6945_v25 = vpop.eup %6944  ;;  %v5384_v58 = vmul.f32 %v6943_v30, %v7659_v39  ;;  %v5399_v39 = vld [vmem:[%s7801_s18 + $0x20] sm:$0xff] }
 0xa45   : > { %v5383_v40 = vmul.f32 %v6945_v25, %v7661_v46  ;;  %v6835_v46 = vpack.c.bf16 %v5400_v56, %v5399_v39  ;;  %v5412_v25 = vld [vmem:[%s7807_s24 + $0x8] sm:$0xff]  ;;  %v5413_v39 = vld [vmem:[%s7807_s24 + $0x10] sm:$0xff]  ;;  %v5414_v56 = vld [vmem:[%s7807_s24 + $0x18] sm:$0xff] }
 0xa46   : > { %v5388_v44 = vmul.f32 %v5384_v58, %v3578_v31 }
 0xa47   : > { %v5387_v55 = vmul.f32 %v5383_v40, %v3578_v31 }
 0xa48   : > { %v6947_v50 = vpop.eup %6946  ;;  %v5392_v54 = vadd.f32 %v5388_v44, %v3579_v35  ;;  %v5404_v44 = vld [vmem:[%s7803_s20] sm:$0xff] }
 0xa49   : > { %v6949_v60 = vpop.eup %6948  ;;  %v5391_v2 = vadd.f32 %v5387_v55, %v3579_v35  ;;  %v5386_v5 = vmul.f32 %v6947_v50, %v7669_v63 }
 0xa4a   : > { %6755 = vmatmul.mubr.msk.f32.vlgmr.msra.gmra.mrb[68].mxu1 %vm1247_vm2, %v5392_v54  ;;  %v5385_v1 = vmul.f32 %v6949_v60, %v7671_v0  ;;  %v6838_v0 = vpack.c.bf16 %v5402_v4, %v5401_v3  ;;  %v6850_v60 = vpack.c.bf16 %v5414_v56, %v5413_v39  ;;  %v6141_v4 = vld [vmem:[%s7808_s25] ss:$0 sm:$0xff] }
 0xa4b   : > { %6833 = vmatpush3.bf16.msra.mxu1 %v6832_v47  ;;  %6761 = vmatprep.mubr.msk.f32.mxu1 %vm6963_vm3, %v6962_v52  ;;  %v5390_v9 = vmul.f32 %v5386_v5, %v3578_v31 }
 0xa4c   : > { %6834 = vmatprep.subr.bf16.mxu1 %v6964_v7  ;;  %v5389_v34 = vmul.f32 %v5385_v1, %v3578_v31  ;;  %v5411_v31 = vld [vmem:[%s7807_s24] sm:$0xff] }
 0xa4d   : > { %v5394_v10 = vadd.f32 %v5390_v9, %v3579_v35  ;;  %v6847_v62 = vpack.c.bf16 %v5412_v25, %v5411_v31  ;;  %v6139_v1 = vld [vmem:[%s7806_s23] ss:$0 sm:$0xff] }
 0xa4e   : > { %6762 = vmatmul.mubr.msk.f32.vlgmr.msra.gmra.mrb[70].mxu1 %vm1247_vm2, %v5391_v2  ;;  %v5393_v8 = vadd.f32 %v5389_v34, %v3579_v35 }
 0xa4f   : > { %6836 = vmatpush3.bf16.msra.mxu1 %v6835_v46  ;;  %6768 = vmatprep.mubr.msk.f32.mxu1 %vm6963_vm3, %v6962_v52 }
 0xa50   : > { %6837 = vmatprep.subr.bf16.mxu1 %v6964_v7  ;;  %6848 = vmatpush3.bf16.msra.mxu0 %v6847_v62 }
 0xa51   : > { %6849 = vmatprep.subr.bf16.mxu0 %v6964_v7 }
 0xa52   : > { %6769 = vmatmul.mubr.msk.f32.vlgmr.msra.gmra.mrb[72].mxu1 %vm1247_vm2, %v5393_v8 }
 0xa53   : > { %6839 = vmatpush3.bf16.msra.mxu1 %v6838_v0  ;;  %6775 = vmatprep.mubr.msk.f32.mxu1 %vm6963_vm3, %v6962_v52 }
 0xa54   : > { %6840 = vmatprep.subr.bf16.mxu1 %v6964_v7  ;;  %6851 = vmatpush3.bf16.msra.mxu0 %v6850_v60 }
 0xa56   : > { %6776 = vmatmul.mubr.msk.f32.vlgmr.msra.gmra.mrb[74].mxu1 %vm1247_vm2, %v5394_v10 }
 0xa57   : > { %6786 = vmatprep.mubr.msk.f32.mxu1 %vm6963_vm3, %v6962_v52  ;;  %6842 = vmatpush3.bf16.msra.mxu1 %v6841_v24 }
 0xa58   : > { %6843 = vmatprep.subr.bf16.mxu1 %v6964_v7  ;;  %v5405_v7 = vld [vmem:[%s7804_s21] sm:$0xff] }
 0xa5b   : > { %6845 = vmatpush3.bf16.msra.mxu1 %v6844_v61 }
 0xb1d   : > { %v5485_v63 = vpop.f32.mrb[68].mxu1 }
 0xb1e   : > { %v6756_v11 = vpop.f32.mrb[69].mxu1 }
 0xb21   : > { %v5558_v37 = vpop.f32.mrb[70].mxu1 }
 0xb22   : > { %v5559_v13 = vadd.f32 %v5558_v37, %v5485_v63  ;;  %v6763_v38 = vpop.f32.mrb[71].mxu1 }
 0xb25   : > { %v5631_v42 = vpop.f32.mrb[72].mxu1 }
 0xb26   : > { %v5635_v14 = vadd.f32 %v5631_v42, %v5559_v13  ;;  %v6770_v12 = vpop.f32.mrb[73].mxu1 }
 0xb29   : > { %v5705_v41 = vpop.f32.mrb[74].mxu1 }
 0xb2a   : > { %v5709_v36 = vadd.f32 %v5705_v41, %v5635_v14  ;;  %v6777_v17 = vpop.f32.mrb[75].mxu1 }
 0xb2c   : > { %v5716_v6 = vadd.f32 %v6138_v15, %v5709_v36 }
 0xb2e   : > { %v5717_v18 = vmax.f32 %v5716_v6, 0.0 }
 0xb30   : > { %v5719_v52 = vsel %vm5718_vm5, %v5717_v18, 0.0 }
 0xb31   : > { %5720 = vadd.xlane.f32.xlu0 %v5719_v52 }
 0xbbe   : > { %v5721_v19 = vpop.xlane.xlu0 %5720 }
 0xbbf   : > { %v5722_v20 = vrot.slane %v5721_v19, 4 }
 0xbc1   : > { %v5723_v21 = vadd.f32 %v5722_v20, %v5721_v19 }
 0xbc3   : > { %v5724_v22 = vrot.slane %v5723_v21, 2 }
 0xbc5   : > { %v5725_v23 = vadd.f32 %v5724_v22, %v5723_v21 }
 0xbc7   : > { %v5726_v45 = vrot.slane %v5725_v23, 1 }
 0xbc9   : > { %v5727_v51 = vadd.f32 %v5726_v45, %v5725_v23 }
 0xbcb   : > { %6909 = vpush %v5727_v51 }
 0xbfc   : > { %s6910_s10 = spop %6909 }
 0xbfd   : > { %s5731_s6 = smul.f32 0.00390625, %s6910_s10 }
 0xbff   : > { %v5732_v43 = vstv %s5731_s6 }
 0xc00   : > { %v5733_v53 = vsub.f32 %v5717_v18, %v5732_v43 }
 0xc02   : > { %v5734_v26 = vmul.f32 %v5733_v53, %v5733_v53 }
 0xc04   : > { %v5735_v16 = vsel %vm5718_vm5, %v5734_v26, 0.0 }
 0xc05   : > { %5736 = vadd.xlane.f32.xlu1 %v5735_v16 }
 0xc92   : > { %v5737_v27 = vpop.xlane.xlu1 %5736 }
 0xc93   : > { %v5738_v49 = vrot.slane %v5737_v27, 4 }
 0xc95   : > { %v5739_v32 = vadd.f32 %v5738_v49, %v5737_v27 }
 0xc97   : > { %v5740_v57 = vrot.slane %v5739_v32, 2 }
 0xc99   : > { %v5741_v30 = vadd.f32 %v5740_v57, %v5739_v32 }
 0xc9b   : > { %v5742_v58 = vrot.slane %v5741_v30, 1 }
 0xc9d   : > { %v5743_v33 = vadd.f32 %v5742_v58, %v5741_v30 }
 0xc9f   : > { %6911 = vpush %v5743_v33 }
 0xcd0   : > { %s6912_s30 = spop %6911 }
 0xcd1   : > { %s5747_s5 = smul.f32 0.00390625, %s6912_s30 }
 0xcd3   : > { %s5748_s10 = sadd.f32 1e-05, %s5747_s5  ;;  %s789_s5 = scalar_lea.vmem %s7809_s26, %s5976_s29 }
 0xcd5   : > { %v5749_v35 = vstv %s5748_s10 }
 0xcd6   : > { %6950 = vrsqrt.f32 %v5749_v35 }
 0xce0   : > { %v6951_v40 = vpop.eup %6950 }
 0xce1   : > { %6913 = vpush %v6951_v40 }
 0xd12   : > { %s6914_s6 = spop %6913 }
 0xd13   : > { %v5752_v47 = vstv %s6914_s6 }
 0xd14   : > { %v5753_v50 = vmul.f32 %v5752_v47, %v5733_v53 }
 0xd16   : > { %v5754_v54 = vmul.f32 %v5753_v50, %v5404_v44 }
 0xd18   : > { %v5755_v55 = vadd.f32 %v5754_v54, %v5405_v7 }
 0xd1a   : > { %6787 = vmatmul.mubr.msk.f32.vlgmr.msra.gmra.mrb[76].mxu1 %vm5718_vm5, %v5755_v55 }
 0xded   : > { %v5831_v46 = vpop.f32.mrb[76].mxu1 }
 0xdee   : > { %v5832_v2 = vadd.f32 %v6139_v1, %v5831_v46  ;;  %v6788_v34 = vpop.f32.mrb[77].mxu1 }
 0xdf0   : > { %v5835_v3 = vmax.f32 %v5832_v2, 0.0 }
 0xdf2   : > { %6798 = vmatmul.mubr.msk.f32.vlgmr.msra.gmra.mrb[56].mxu0 %vm5718_vm5, %v5835_v3 }
 0xec5   : > { %v5911_v5 = vpop.f32.mrb[56].mxu0 }
 0xec6   : > { %v5912_v0 = vadd.f32 %v6141_v4, %v5911_v5  ;;  %v6799_v8 = vpop.f32.mrb[57].mxu0 }
 0xec8   : > { %5916 = vst.msk [vmem:[%s789_s5] sm:$0xff] %vm5915_vm6, %v5912_v0 }
 0xec9 PF: > { %s36_s27 = sadd.s32 1, %s6960_s27  }
 0xeca   : > { %p33_p4 = scmp.ge.s32.totalorder %s36_s27, 4  }
 0xecc   :  { %35 = sbr.rel (!%p33_p4) target bundleno = 12 (0xc), region = 168 }

</bundles_post_ra>
